<compile_context>
chip_gen: v5e
topology: v5e:2x2
jax: 0.10.0
libtpu: 0.0.40
codegen_flags: <defaults>
</compile_context>

<pallas_src>
import functools

import jax
import jax.numpy as jnp
from jax import lax
from jax.experimental import pallas as pl
from jax.experimental.pallas import tpu as pltpu


def _edge_loss_kernel(labels_ref, h_ref, raw_h_ref, out_ref, *, transpose):
    # labels_ref: (B, N), h_ref / raw_h_ref: (B, N, N), out_ref: (B, 128)
    B, N = labels_ref.shape

    lab = labels_ref[...].astype(jnp.float32)                       # (B, N)

    # (gt @ gt * gt) > 0  ==  gt * (sum(labels) >= 3) for 0/1 labels with a
    # zeroed diagonal, so fold the check into the O(N) row factor instead of
    # running an O(N^3) MXU matmul.
    s = jnp.sum(lab, axis=1, keepdims=True)                         # (B, 1)
    lab_keep = lab * (s >= 3.0).astype(jnp.float32)                 # (B, N)

    gt = lab_keep[:, :, None] * lab[:, None, :]                     # (B, N, N)
    ri = lax.broadcasted_iota(jnp.int32, (N, N), 0)
    ci = lax.broadcasted_iota(jnp.int32, (N, N), 1)
    gt = jnp.where((ri == ci)[None], 0.0, gt)                       # zero diagonal

    gt = gt * raw_h_ref[...].astype(jnp.float32)                    # (B, N, N)

    H = h_ref[...].astype(jnp.float32)                              # (B, N, N)
    if transpose:
        # H.mT done in VMEM on the XLU (idle slot here); no HBM round trip.
        H = jnp.swapaxes(H, -1, -2)

    # torch sums over dim=1 of (bs, N, N)
    degree_gt = jnp.sum(gt, axis=1)                                 # (B, N)
    degree_H = jnp.sum(H, axis=1)                                   # (B, N)
    correct_num_H = jnp.sum(H * gt, axis=1)                         # (B, N)

    valid_edge_gt = jnp.sum((degree_gt > 0.0).astype(jnp.float32),
                            axis=1, keepdims=True)                  # (B, 1)

    d_h_inv = jnp.where(degree_H == 0.0, 0.0, 1.0 / degree_H)       # inf -> 0
    e_gt_inv = jnp.where(valid_edge_gt == 0.0, 0.0, 1.0 / valid_edge_gt)
    # (D_gt_1 is computed but never used by the PyTorch forward -> omitted.)

    loss_b = jnp.sum(correct_num_H * d_h_inv, axis=1,
                     keepdims=True) * e_gt_inv                      # (B, 1)

    # lane-dense, unmasked (B, 128) store; wrapper reads column 0
    out_ref[...] = jnp.broadcast_to(loss_b, (B, 128)).astype(jnp.float32)


def edge_feature_loss(H, raw_H, gt_labels, transpose=False):
    """Pallas implementation of EdgeFeatureLoss.forward (returns scalar loss)."""
    bs, N = gt_labels.shape

    # Batch tile: 8 gives unmasked (8,128) output stores and large DMAs.
    # Shrink only if the double-buffered inputs would not fit a conservative
    # VMEM budget (v7x has 64 MiB per TensorCore).
    # TODO(synk): for very large N (>~1024 on v7x) add a second "arbitrary"
    # grid axis over N-column tiles with running accumulators instead.
    itemsize = max(jnp.dtype(H.dtype).itemsize, jnp.dtype(raw_H.dtype).itemsize)
    b_tile = 8
    while b_tile > 1 and 2 * 2 * b_tile * N * N * itemsize > 48 * 1024 * 1024:
        b_tile //= 2

    # Pad the batch so b_tile divides it; padded rows produce exact zeros and
    # are sliced off before the mean.
    b_pad = pl.cdiv(bs, b_tile) * b_tile
    if b_pad != bs:
        p = b_pad - bs
        gt_labels = jnp.pad(gt_labels, ((0, p), (0, 0)))
        H = jnp.pad(H, ((0, p), (0, 0), (0, 0)))
        raw_H = jnp.pad(raw_H, ((0, p), (0, 0), (0, 0)))

    kernel = functools.partial(_edge_loss_kernel, transpose=transpose)

    vmem_limit = int(min(100 * 1024 * 1024,
                         max(32 * 1024 * 1024, 16 * b_tile * N * N * 4)))

    per_batch = pl.pallas_call(
        kernel,
        out_shape=jax.ShapeDtypeStruct((b_pad, 128), jnp.float32),
        grid=(b_pad // b_tile,),
        in_specs=[
            pl.BlockSpec((b_tile, N), lambda b: (b, 0)),
            pl.BlockSpec((b_tile, N, N), lambda b: (b, 0, 0)),
            pl.BlockSpec((b_tile, N, N), lambda b: (b, 0, 0)),
        ],
        out_specs=pl.BlockSpec((b_tile, 128), lambda b: (b, 0)),
        compiler_params=pltpu.CompilerParams(
            dimension_semantics=("parallel",),
            vmem_limit_bytes=vmem_limit,
        ),
    )(gt_labels, H, raw_H)

    # loss = mean over the (real) batch of sum(precision) * E_gt_1
    return jnp.mean(per_batch[:bs, 0])


def _ref_loss(H, raw_H, gt_labels, transpose=False):
    """Pure-JAX reference, mirroring the PyTorch code exactly."""
    bs, N = gt_labels.shape
    H = H.astype(jnp.float32)
    raw_H = raw_H.astype(jnp.float32)
    gt_labels = gt_labels.astype(jnp.float32)
    gt_H = ((gt_labels[:, None, :] + gt_labels[:, :, None]) == 2).astype(jnp.float32)
    gt_H = gt_H * (1.0 - jnp.eye(N, dtype=jnp.float32))
    gt_H = jnp.where((jnp.matmul(gt_H, gt_H) * gt_H) > 0, 1.0, 0.0)
    gt_H = gt_H * raw_H
    if transpose:
        H = jnp.swapaxes(H, -1, -2)
    degree_gt = gt_H.sum(axis=1)
    degree_H = H.sum(axis=1)
    valid_edge_gt = (degree_gt > 0).astype(jnp.float32).sum(axis=1)
    correct_num_H = (H * gt_H).sum(axis=1)
    D_H_1 = jnp.where(degree_H == 0, 0.0, 1.0 / degree_H)
    E_gt_1 = jnp.where(valid_edge_gt == 0, 0.0, 1.0 / valid_edge_gt)
    precision = correct_num_H * D_H_1
    return jnp.mean(precision.sum(axis=1) * E_gt_1)


if __name__ == "__main__":
    key = jax.random.PRNGKey(0)
    bs, N = 2, 128
    k1, k2, k3 = jax.random.split(key, 3)

    gt_labels = (jax.random.uniform(k1, (bs, N)) > 0.5).astype(jnp.float32)
    raw_H = (jax.random.uniform(k2, (bs, N, N)) > 0.5).astype(jnp.float32)
    H = jax.random.uniform(k3, (bs, N, N), dtype=jnp.float32)

    for transpose in (False, True):
        loss = edge_feature_loss(H, raw_H, gt_labels, transpose=transpose)
        loss = jax.block_until_ready(loss)
        ref = _ref_loss(H, raw_H, gt_labels, transpose=transpose)
        assert jnp.allclose(loss, ref, rtol=1e-4, atol=1e-5), (
            transpose, float(loss), float(ref))

    print("KERNEL_OK")
</pallas_src>

<mosaic_0001>
module attributes {stable_mosaic.version = 11 : i64} {
  func.func @_edge_loss_kernel(%arg0: i32, %arg1: memref<8x128xf32, #tpu.memory_space<vmem>>, %arg2: memref<8x128x128xf32, #tpu.memory_space<vmem>>, %arg3: memref<8x128x128xf32, #tpu.memory_space<vmem>>, %arg4: memref<8x128xf32, #tpu.memory_space<vmem>>) attributes {dimension_semantics = [#tpu.dimension_semantics<parallel>], iteration_bounds = array<i64: 1>, scalar_prefetch = 0 : i64, scratch_operands = 0 : i64, tpu.core_type = #tpu.core_type<tc>, window_params = [{transform_indices = @transform_0, window_bounds = array<i64: 8, 128>}, {transform_indices = @transform_1, window_bounds = array<i64: 8, 128, 128>}, {transform_indices = @transform_2, window_bounds = array<i64: 8, 128, 128>}, {transform_indices = @transform_3, window_bounds = array<i64: 8, 128>}]} {
    %c0 = arith.constant 0 : index
    %c0_0 = arith.constant 0 : index
    %0 = vector.load %arg1[%c0, %c0_0] : memref<8x128xf32, #tpu.memory_space<vmem>>, vector<8x128xf32>
    %cst = arith.constant dense<0.000000e+00> : vector<8xf32>
    %1 = vector.multi_reduction <add>, %0, %cst [1] : vector<8x128xf32> to vector<8xf32>
    %2 = vector.shape_cast %1 : vector<8xf32> to vector<8x1xf32>
    %cst_1 = arith.constant 3.000000e+00 : f32
    %3 = vector.broadcast %cst_1 : f32 to vector<8x1xf32>
    %4 = arith.cmpf oge, %2, %3 : vector<8x1xf32>
    %5 = arith.extui %4 : vector<8x1xi1> to vector<8x1xi32>
    %6 = arith.sitofp %5 : vector<8x1xi32> to vector<8x1xf32>
    %7 = vector.broadcast %6 : vector<8x1xf32> to vector<8x128xf32>
    %8 = arith.mulf %0, %7 : vector<8x128xf32>
    %9 = vector.shape_cast %8 : vector<8x128xf32> to vector<8x128x1xf32>
    %10 = vector.shape_cast %0 : vector<8x128xf32> to vector<8x1x128xf32>
    %11 = vector.broadcast %9 : vector<8x128x1xf32> to vector<8x128x128xf32>
    %12 = vector.broadcast %10 : vector<8x1x128xf32> to vector<8x128x128xf32>
    %13 = arith.mulf %11, %12 : vector<8x128x128xf32>
    %14 = tpu.iota {dimensions = array<i32: 0>} : vector<128x128xi32>
    %15 = tpu.iota {dimensions = array<i32: 1>} : vector<128x128xi32>
    %16 = arith.cmpi eq, %14, %15 : vector<128x128xi32>
    %17 = vector.shape_cast %16 : vector<128x128xi1> to vector<1x128x128xi1>
    %cst_2 = arith.constant 0.000000e+00 : f32
    %18 = vector.shape_cast %17 : vector<1x128x128xi1> to vector<1x128x128xi1>
    %19 = vector.broadcast %18 : vector<1x128x128xi1> to vector<8x128x128xi1>
    %20 = vector.broadcast %cst_2 : f32 to vector<8x128x128xf32>
    %21 = arith.select %19, %20, %13 : vector<8x128x128xi1>, vector<8x128x128xf32>
    %c0_3 = arith.constant 0 : index
    %c0_4 = arith.constant 0 : index
    %c0_5 = arith.constant 0 : index
    %22 = vector.load %arg3[%c0_3, %c0_4, %c0_5] : memref<8x128x128xf32, #tpu.memory_space<vmem>>, vector<8x128x128xf32>
    %23 = arith.mulf %21, %22 : vector<8x128x128xf32>
    %c0_6 = arith.constant 0 : index
    %c0_7 = arith.constant 0 : index
    %c0_8 = arith.constant 0 : index
    %24 = vector.load %arg2[%c0_6, %c0_7, %c0_8] : memref<8x128x128xf32, #tpu.memory_space<vmem>>, vector<8x128x128xf32>
    %cst_9 = arith.constant dense<0.000000e+00> : vector<8x128xf32>
    %25 = vector.multi_reduction <add>, %23, %cst_9 [1] : vector<8x128x128xf32> to vector<8x128xf32>
    %cst_10 = arith.constant dense<0.000000e+00> : vector<8x128xf32>
    %26 = vector.multi_reduction <add>, %24, %cst_10 [1] : vector<8x128x128xf32> to vector<8x128xf32>
    %27 = arith.mulf %24, %23 : vector<8x128x128xf32>
    %cst_11 = arith.constant dense<0.000000e+00> : vector<8x128xf32>
    %28 = vector.multi_reduction <add>, %27, %cst_11 [1] : vector<8x128x128xf32> to vector<8x128xf32>
    %cst_12 = arith.constant 0.000000e+00 : f32
    %29 = vector.broadcast %cst_12 : f32 to vector<8x128xf32>
    %30 = arith.cmpf ogt, %25, %29 : vector<8x128xf32>
    %31 = arith.extui %30 : vector<8x128xi1> to vector<8x128xi32>
    %32 = arith.sitofp %31 : vector<8x128xi32> to vector<8x128xf32>
    %cst_13 = arith.constant dense<0.000000e+00> : vector<8xf32>
    %33 = vector.multi_reduction <add>, %32, %cst_13 [1] : vector<8x128xf32> to vector<8xf32>
    %34 = vector.shape_cast %33 : vector<8xf32> to vector<8x1xf32>
    %cst_14 = arith.constant 0.000000e+00 : f32
    %35 = vector.broadcast %cst_14 : f32 to vector<8x128xf32>
    %36 = arith.cmpf oeq, %26, %35 : vector<8x128xf32>
    %cst_15 = arith.constant 1.000000e+00 : f32
    %37 = vector.broadcast %cst_15 : f32 to vector<8x128xf32>
    %38 = arith.divf %37, %26 : vector<8x128xf32>
    %cst_16 = arith.constant 0.000000e+00 : f32
    %39 = vector.broadcast %cst_16 : f32 to vector<8x128xf32>
    %40 = arith.select %36, %39, %38 : vector<8x128xi1>, vector<8x128xf32>
    %cst_17 = arith.constant 0.000000e+00 : f32
    %41 = vector.broadcast %cst_17 : f32 to vector<8x1xf32>
    %42 = arith.cmpf oeq, %34, %41 : vector<8x1xf32>
    %cst_18 = arith.constant 1.000000e+00 : f32
    %43 = vector.broadcast %cst_18 : f32 to vector<8x1xf32>
    %44 = arith.divf %43, %34 : vector<8x1xf32>
    %cst_19 = arith.constant 0.000000e+00 : f32
    %45 = vector.broadcast %cst_19 : f32 to vector<8x1xf32>
    %46 = arith.select %42, %45, %44 : vector<8x1xi1>, vector<8x1xf32>
    %47 = arith.mulf %28, %40 : vector<8x128xf32>
    %cst_20 = arith.constant dense<0.000000e+00> : vector<8xf32>
    %48 = vector.multi_reduction <add>, %47, %cst_20 [1] : vector<8x128xf32> to vector<8xf32>
    %49 = vector.shape_cast %48 : vector<8xf32> to vector<8x1xf32>
    %50 = arith.mulf %49, %46 : vector<8x1xf32>
    %51 = vector.shape_cast %50 : vector<8x1xf32> to vector<8x1xf32>
    %52 = vector.broadcast %51 : vector<8x1xf32> to vector<8x128xf32>
    %c0_21 = arith.constant 0 : index
    %c0_22 = arith.constant 0 : index
    %53 = vector.load %arg4[%c0_21, %c0_22] : memref<8x128xf32, #tpu.memory_space<vmem>>, vector<8x128xf32>
    tpu.vector_store %arg4[%c0_21, %c0_22], %52 {strides = array<i32>} : memref<8x128xf32, #tpu.memory_space<vmem>>, vector<8x128xf32>,
    return
  }
  func.func @transform_0(%arg0: i32) -> (i32, i32) {
    %c0_i32 = arith.constant 0 : i32
    %c0_i32_0 = arith.constant 0 : i32
    return %arg0, %c0_i32 : i32, i32
  }
  func.func @transform_1(%arg0: i32) -> (i32, i32, i32) {
    %c0_i32 = arith.constant 0 : i32
    %c0_i32_0 = arith.constant 0 : i32
    %c0_i32_1 = arith.constant 0 : i32
    return %arg0, %c0_i32, %c0_i32_0 : i32, i32, i32
  }
  func.func @transform_2(%arg0: i32) -> (i32, i32, i32) {
    %c0_i32 = arith.constant 0 : i32
    %c0_i32_0 = arith.constant 0 : i32
    %c0_i32_1 = arith.constant 0 : i32
    return %arg0, %c0_i32, %c0_i32_0 : i32, i32, i32
  }
  func.func @transform_3(%arg0: i32) -> (i32, i32) {
    %c0_i32 = arith.constant 0 : i32
    %c0_i32_0 = arith.constant 0 : i32
    return %arg0, %c0_i32 : i32, i32
  }
}

</mosaic_0001>

<bundles_post_ra>
// kernel: tpu_custom_call.1
= control target key start
LH: loop header
LB: loop body
LE: loop exit
PB: predicated region body
PF: predicated region fallthrough
CT: control target
= control target key end

     0   :  { %8 = vsyncpa [#allocation3], 0  ;;  %s4335_s0 = inlined_call_operand.hbm [shape: f32[8,128], index: 0, kind: input, shape index: {}]   ;;  %s4336_s1 = inlined_call_operand.hbm [shape: f32[8,128,128], index: 1, kind: input, shape index: {}]   ;;  %s4337_s2 = inlined_call_operand.hbm [shape: f32[8,128,128], index: 2, kind: input, shape index: {}]   ;;  %s4338_s3 = inlined_call_operand.hbm [shape: f32[8,128], index: 3, kind: output, shape index: {}]  }
   0x1   :  { %9 = vsyncpa [#allocation6], 0  ;;  %s26_s14 = sshll.u32 %s4336_s1, 4  ;;  %s27_s14 = int_to_ptr.hbm [resolvable:$true] %s26_s14 }
   0x2   :  { %10 = vsyncpa [#allocation4], 0  ;;  %s2714_s15 = smov [#allocation5]   ;;  %s16_s19 = sshll.u32 %s4335_s0, 4  ;;  %s17_s19 = int_to_ptr.hbm [resolvable:$true] %s16_s19 }
   0x3   :  { %s28_s16 = sshll.u32 %s2714_s15, 4  ;;  %s2715_s20 = smov 128   ;;  %s29_s16 = int_to_ptr.vmem [resolvable:$true] %s28_s16 }
   0x4   :  { %s2716_s21 = smov 8   ;;  %s2717_s22 = smov [#allocation2]  }
   0x5   :  { %34 = dma.hbm_to_vmem [thread:$0]  %s27_s14, 16384, %s29_s16, [#allocation6], %s2715_s20, %s2715_s20, %s2716_s21  }
   0x6   :  { %s18_s23 = sshll.u32 %s2717_s22, 4  ;;  %s39_s26 = sshll.u32 %s4337_s2, 4  ;;  %s19_s23 = int_to_ptr.vmem [resolvable:$true] %s18_s23  ;;  %s40_s26 = int_to_ptr.hbm [resolvable:$true] %s39_s26 }
   0x7   :  { %21 = dma.hbm_to_vmem [thread:$0]  %s17_s19, 128, %s19_s23, [#allocation3]  }
   0x8   :  { %s2718_s1 = smov [#allocation7]  }
   0x9   :  { %s41_s27 = sshll.u32 %s2718_s1, 4  ;;  %s42_s27 = int_to_ptr.vmem [resolvable:$true] %s41_s27 }
   0xa   :  { %47 = dma.hbm_to_vmem [thread:$0]  %s40_s26, 16384, %s42_s27, [#allocation6], %s2715_s20, %s2715_s20, %s2716_s21  }
   0xb   :  { %2708 = dma.done.wait [#allocation3], 128  }
   0xc   :  { %2709 = vsyncadd [#allocation3], 4294967168 }
   0xd   :  { %2710 = dma.done.wait [#allocation6], 32768  }
   0xe   :  { %2711 = vsyncadd [#allocation6], 4294934528  ;;  %v68_v0 = vlaneseq  ;;  %v2762_v4 = vld [vmem:[#allocation2] sm:$0xff]  ;;  %v4339_v6 = vmov 0.0   ;;  %v4439_v34 = vmov 0  ;;  %v4442_v35 = vmov 0 }
   0xf   :  { %61 = vadd.xlane.f32.xlu0 %v2762_v4  ;;  %v2872_v29 = vperm.slane %v2762_v4, 0  ;;  %v1191_v39 = vld [vmem:[#allocation7 + $0x8] sm:$0xff]  ;;  %v1190_v41 = vld [vmem:[#allocation7] sm:$0xff]  ;;  %v1192_v43 = vld [vmem:[#allocation7 + $0x10] sm:$0xff]  ;;  %v4447_v50 = vmov 0  ;;  %s2720_s0 = smov [#allocation8]  }
  0x10   :  { %v2751_v1 = vshrl.u32 %v68_v0, 7  ;;  %v2875_v30 = vand.u32 127, %v68_v0  ;;  %v2910_v48 = vld [vmem:[#allocation5 + $0x8] sm:$0xff]  ;;  %v2912_v49 = vld [vmem:[#allocation5] sm:$0xff]  ;;  %v2921_v53 = vld [vmem:[#allocation5 + $0x10] sm:$0xff]  ;;  %v4452_v0 = vmov 0 }
  0x11   :  { %4438 = vst [vmem:[#allocation27_spill] sm:$0xff] %v2872_v29  ;;  %v1193_v57 = vld [vmem:[#allocation7 + $0x18] sm:$0xff]  ;;  %s2441_s2 = sshll.u32 %s2720_s0, 4  ;;  %s2443_s30 = sshll.u32 %s4338_s3, 4  ;;  %s2442_s2 = int_to_ptr.vmem [resolvable:$true] %s2441_s2  ;;  %s2444_s30 = int_to_ptr.hbm [resolvable:$true] %s2443_s30 }
  0x12   :  { %4423 = vst [vmem:[#allocation12_spill] sm:$0xff] %v2751_v1  ;;  %2470 = vset.pattern.permute.xlu0 %v2751_v1  ;;  %v2755_v2 = vadd.s32 24, %v2751_v1  ;;  %v2758_v3 = vadd.s32 8, %v2751_v1  ;;  %v2776_v10 = vadd.s32 32, %v2751_v1  ;;  %v2779_v11 = vadd.s32 16, %v2751_v1 }
  0x13   :  { %v2782_v12 = vadd.s32 96, %v2751_v1  ;;  %v2794_v14 = vadd.s32 48, %v2751_v1  ;;  %v2797_v15 = vadd.s32 40, %v2751_v1  ;;  %v2809_v17 = vadd.s32 64, %v2751_v1 }
  0x14   :  { %4424 = vst [vmem:[#allocation13_spill] sm:$0xff] %v2755_v2  ;;  %2473 = vset.pattern.permute.xlu2 %v2755_v2  ;;  %2471 = vset.pattern.permute.xlu1 %v2758_v3  ;;  %v2812_v18 = vadd.s32 56, %v2751_v1  ;;  %v2821_v19 = vadd.s32 80, %v2751_v1  ;;  %v2824_v20 = vadd.s32 72, %v2751_v1  ;;  %v2836_v22 = vadd.s32 88, %v2751_v1 }
  0x15   :  { %4425 = vst [vmem:[#allocation14_spill] sm:$0xff] %v2758_v3  ;;  %v2845_v23 = vadd.s32 120, %v2751_v1  ;;  %v2848_v24 = vadd.s32 112, %v2751_v1  ;;  %vm2884_vm1 = vcmp.eq.s32.totalorder %v2758_v3, %v2875_v30  ;;  %vm2890_vm2 = vcmp.eq.s32.totalorder %v2751_v1, %v2875_v30 }
  0x16   :  { %4426 = vst [vmem:[#allocation15_spill] sm:$0xff] %v2776_v10  ;;  %v4440_v34 = vsel %vm2884_vm1, 4294967295, %v4439_v34  ;;  %v4443_v35 = vsel %vm2890_vm2, 4294967295, %v4442_v35  ;;  %vm2897_vm3 = vcmp.eq.s32.totalorder %v2779_v11, %v2875_v30  ;;  %vm2917_vm4 = vcmp.eq.s32.totalorder %v2755_v2, %v2875_v30 }
  0x17   :  { %4427 = vst [vmem:[#allocation16_spill] sm:$0xff] %v2779_v11  ;;  %v4448_v50 = vsel %vm2917_vm4, 4294967295, %v4447_v50  ;;  %vm2931_vm5 = vcmp.eq.s32.totalorder %v2776_v10, %v2875_v30  ;;  %vm2938_vm6 = vcmp.eq.s32.totalorder %v2797_v15, %v2875_v30  ;;  %vm2953_vm7 = vcmp.eq.s32.totalorder %v2794_v14, %v2875_v30 }
  0x18   :  { %4428 = vst [vmem:[#allocation17_spill] sm:$0xff] %v2782_v12  ;;  %v4453_v0 = vsel %vm2938_vm6, 4294967295, %v4452_v0  ;;  %vm2967_vm8 = vcmp.eq.s32.totalorder %v2809_v17, %v2875_v30  ;;  %vm2979_vm9 = vcmp.eq.s32.totalorder %v2812_v18, %v2875_v30  ;;  %vm3006_vm10 = vcmp.eq.s32.totalorder %v2821_v19, %v2875_v30 }
  0x19   :  { %4429 = vst [vmem:[#allocation18_spill] sm:$0xff] %v2797_v15  ;;  %vm3015_vm11 = vcmp.eq.s32.totalorder %v2824_v20, %v2875_v30  ;;  %vm3042_vm12 = vcmp.eq.s32.totalorder %v2782_v12, %v2875_v30  ;;  %vm3048_vm13 = vcmp.eq.s32.totalorder %v2836_v22, %v2875_v30  ;;  %vm3331_vm14 = vcmp.eq.s32.totalorder %v2848_v24, %v2875_v30 }
  0x1a   :  { %4430 = vst [vmem:[#allocation19_spill] sm:$0xff] %v2809_v17 }
  0x1b   :  { %4431 = vst [vmem:[#allocation20_spill] sm:$0xff] %v2812_v18 }
  0x1c   :  { %4432 = vst [vmem:[#allocation21_spill] sm:$0xff] %v2821_v19 }
  0x1d   :  { %4433 = vst [vmem:[#allocation22_spill] sm:$0xff] %v2824_v20 }
  0x1e   :  { %4434 = vst [vmem:[#allocation23_spill] sm:$0xff] %v2836_v22 }
  0x1f   :  { %4435 = vst [vmem:[#allocation24_spill] sm:$0xff] %v2845_v23 }
  0x20   :  { %4436 = vst [vmem:[#allocation25_spill] sm:$0xff] %v2848_v24 }
  0x21   :  { %4441 = vst [vmem:[#allocation28_spill] sm:$0xff] %v4440_v34 }
  0x22   :  { %4444 = vst [vmem:[#allocation29_spill] sm:$0xff] %v4443_v35  ;;  %v1210_v35 = vld [vmem:[#allocation7 + $0xa0] sm:$0xff] }
  0x23   :  { %4449 = vst [vmem:[#allocation30_spill] sm:$0xff] %v4448_v50 }
  0x24   :  { %4454 = vst [vmem:[#allocation31_spill] sm:$0xff] %v4453_v0  ;;  %v3368_v0 = vld [vmem:[#allocation5 + $0x150] sm:$0xff] }
  0x82   :  { %v62_v5 = vpop.xlane.xlu0 %61 }
  0x83   :  { %vm63_vm0 = vcmp.ge.f32.partialorder %v62_v5, 3.0 }
  0x84   :  { %v2454_v7 = vsel %vm63_vm0, 1.0, %v4339_v6 }
  0x85   :  { %v2767_v8 = vmul.f32 %v2454_v7, %v2762_v4 }
  0x87   :  { %v2770_v9 = vperm.slane %v2767_v8, 0  ;;  %v2788_v13 = vperm.slane %v2767_v8, 1  ;;  %v2803_v16 = vperm.slane %v2767_v8, 2  ;;  %v2830_v21 = vperm.slane %v2767_v8, 3 }
  0x88   :  { %v2866_v25 = vperm.slane %v2767_v8, 4 }
  0x89   :  { %90 = vperm.xlu2 %2473, %v2770_v9   ;;  %78 = vperm.xlu1 %2471, %v2770_v9  }
  0x8a   :  { %72 = vperm.xlu0 %2470, %v2770_v9   ;;  %4437 = vst [vmem:[#allocation26_spill] sm:$0xff] %v2866_v25 }
  0x91   :  { %2474 = vset.pattern.permute.xlu2 %v2776_v10  ;;  %2472 = vset.pattern.permute.xlu1 %v2779_v11 }
  0x92   :  { %2495 = vset.pattern.permute.xlu0 %v2782_v12 }
  0x99   :  { %96 = vperm.xlu2 %2474, %v2770_v9   ;;  %84 = vperm.xlu1 %2472, %v2770_v9  }
  0x9a   :  { %241 = vperm.xlu0 %2495, %v2788_v13  }
  0xa1   :  { %2476 = vset.pattern.permute.xlu2 %v2794_v14  ;;  %2475 = vset.pattern.permute.xlu1 %v2797_v15 }
  0xa2   :  { %2500 = vset.pattern.permute.xlu0 %v2758_v3 }
  0xa9   :  { %108 = vperm.xlu2 %2476, %v2770_v9   ;;  %102 = vperm.xlu1 %2475, %v2770_v9  }
  0xaa   :  { %272 = vperm.xlu0 %2500, %v2803_v16  }
  0xb1   :  { %2478 = vset.pattern.permute.xlu2 %v2809_v17  ;;  %2477 = vset.pattern.permute.xlu1 %v2812_v18 }
  0xb2   :  { %2505 = vset.pattern.permute.xlu0 %v2794_v14 }
  0xb9   :  { %120 = vperm.xlu2 %2478, %v2770_v9   ;;  %114 = vperm.xlu1 %2477, %v2770_v9  }
  0xba   :  { %302 = vperm.xlu0 %2505, %v2803_v16  }
  0xc1   :  { %2480 = vset.pattern.permute.xlu2 %v2821_v19  ;;  %2479 = vset.pattern.permute.xlu1 %v2824_v20 }
  0xc2   :  { %2514 = vset.pattern.permute.xlu0 %v2751_v1 }
  0xc9   :  { %132 = vperm.xlu2 %2480, %v2770_v9   ;;  %126 = vperm.xlu1 %2479, %v2770_v9  }
  0xca   :  { %363 = vperm.xlu0 %2514, %v2830_v21  }
  0xd1   :  { %2482 = vset.pattern.permute.xlu2 %v2782_v12  ;;  %2481 = vset.pattern.permute.xlu1 %v2836_v22 }
  0xd2   :  { %2519 = vset.pattern.permute.xlu0 %v2797_v15 }
  0xd9   :  { %144 = vperm.xlu2 %2482, %v2770_v9   ;;  %138 = vperm.xlu1 %2481, %v2770_v9  }
  0xda   :  { %393 = vperm.xlu0 %2519, %v2830_v21  }
  0xe1   :  { %2484 = vset.pattern.permute.xlu2 %v2845_v23  ;;  %2483 = vset.pattern.permute.xlu1 %v2848_v24 }
  0xe2   :  { %2524 = vset.pattern.permute.xlu0 %v2821_v19 }
  0xe3   :  { %v91_v27 = vpop.permute.xlu2 %90 }
  0xe4   :  { %v870_v47 = vmul.f32 %v2872_v29, %v91_v27  ;;  %v2944_v27 = vld [vmem:[#allocation5 + $0x18] sm:$0xff] }
  0xe6   :  { %v1065_v58 = vsel %vm2917_vm4, 0.0, %v870_v47 }
  0xe7   :  { %v1321_v5 = vmul.f32 %v1193_v57, %v1065_v58 }
  0xe9   :  { %162 = vperm.xlu2 %2484, %v2770_v9   ;;  %156 = vperm.xlu1 %2483, %v2770_v9  }
  0xea   :  { %423 = vperm.xlu0 %2524, %v2830_v21  }
  0xf1   :  { %2486 = vset.pattern.permute.xlu2 %v2758_v3  ;;  %2485 = vset.pattern.permute.xlu1 %v2751_v1 }
  0xf2   :  { %2529 = vset.pattern.permute.xlu0 %v2845_v23 }
  0xf3   :  { %v97_v37 = vpop.permute.xlu2 %96 }
  0xf4   :  { %v871_v59 = vmul.f32 %v2872_v29, %v97_v37  ;;  %v4455_v37 = vmov 0 }
  0xf5   :  { %v4456_v37 = vsel %vm2953_vm7, 4294967295, %v4455_v37 }
  0xf6   :  { %4457 = vst [vmem:[#allocation32_spill] sm:$0xff] %v4456_v37  ;;  %v3350_v37 = vld [vmem:[#allocation5 + $0x148] sm:$0xff] }
  0xf9   :  { %175 = vperm.xlu2 %2486, %v2788_v13   ;;  %169 = vperm.xlu1 %2485, %v2788_v13  }
  0xfa   :  { %453 = vperm.xlu0 %2529, %v2830_v21  }
  0xfb   :  { %v79_v26 = vpop.permute.xlu1 %78 }
  0xfc   :  { %v73_v28 = vpop.permute.xlu0 %72  ;;  %v868_v32 = vmul.f32 %v2872_v29, %v79_v26 }
  0xfd   :  { %v867_v33 = vmul.f32 %v2872_v29, %v73_v28  ;;  %v1194_v28 = vld [vmem:[#allocation7 + $0x20] sm:$0xff] }
  0xfe   :  { %v1063_v40 = vsel %vm2884_vm1, 0.0, %v868_v32  ;;  %v1195_v32 = vld [vmem:[#allocation7 + $0x28] sm:$0xff] }
  0xff   :  { %v1062_v42 = vsel %vm2890_vm2, 0.0, %v867_v33  ;;  %v1319_v45 = vmul.f32 %v1191_v39, %v1063_v40  ;;  %v1913_v40 = vmul.f32 %v2944_v27, %v1321_v5 }
 0x100   :  { %v1318_v46 = vmul.f32 %v1190_v41, %v1062_v42 }
 0x101   :  { %2488 = vset.pattern.permute.xlu2 %v2776_v10  ;;  %2487 = vset.pattern.permute.xlu1 %v2755_v2  ;;  %v1911_v54 = vmul.f32 %v2910_v48, %v1319_v45 }
 0x102   :  { %2534 = vset.pattern.permute.xlu0 %v2776_v10  ;;  %v1910_v55 = vmul.f32 %v2912_v49, %v1318_v46  ;;  %v1574_v62 = vadd.f32 %v1319_v45, %v1318_v46  ;;  %v2959_v45 = vld [vmem:[#allocation5 + $0x20] sm:$0xff]  ;;  %v2961_v46 = vld [vmem:[#allocation5 + $0x28] sm:$0xff] }
 0x103   :  { %v109_v56 = vpop.permute.xlu2 %108 }
 0x104   :  { %v2038_v7 = vadd.f32 %v1911_v54, %v1910_v55  ;;  %v873_v39 = vmul.f32 %v2872_v29, %v109_v56  ;;  %v4458_v54 = vmov 0 }
 0x105   :  { %v4459_v54 = vsel %vm2967_vm8, 4294967295, %v4458_v54 }
 0x109   :  { %193 = vperm.xlu2 %2488, %v2788_v13   ;;  %187 = vperm.xlu1 %2487, %v2788_v13  }
 0x10a   :  { %484 = vperm.xlu0 %2534, %v2866_v25  }
 0x10b   :  { %v85_v31 = vpop.permute.xlu1 %84 }
 0x10c   :  { %v869_v36 = vmul.f32 %v2872_v29, %v85_v31  ;;  %v1066_v31 = vsel %vm2931_vm5, 0.0, %v871_v59 }
 0x10d   :  { %v1322_v41 = vmul.f32 %v1194_v28, %v1066_v31  ;;  %v1197_v31 = vld [vmem:[#allocation7 + $0x38] sm:$0xff] }
 0x10e   :  { %v1064_v44 = vsel %vm2897_vm3, 0.0, %v869_v36 }
 0x10f   :  { %v1320_v51 = vmul.f32 %v1192_v43, %v1064_v44  ;;  %v1914_v56 = vmul.f32 %v2959_v45, %v1322_v41 }
 0x111   :  { %2490 = vset.pattern.permute.xlu2 %v2794_v14  ;;  %2489 = vset.pattern.permute.xlu1 %v2797_v15  ;;  %v1912_v63 = vmul.f32 %v2921_v53, %v1320_v51  ;;  %v1575_v26 = vadd.f32 %v1574_v62, %v1320_v51  ;;  %v1196_v51 = vld [vmem:[#allocation7 + $0x30] sm:$0xff] }
 0x112   :  { %2539 = vset.pattern.permute.xlu0 %v2824_v20 }
 0x113   :  { %v2039_v36 = vadd.f32 %v2038_v7, %v1912_v63  ;;  %v1576_v42 = vadd.f32 %v1575_v26, %v1321_v5  ;;  %v121_v43 = vpop.permute.xlu2 %120  ;;  %v4460_v63 = vmov 0  ;;  %v2983_v7 = vld [vmem:[#allocation5 + $0x30] sm:$0xff]  ;;  %v1198_v26 = vld [vmem:[#allocation7 + $0x40] sm:$0xff] }
 0x114   :  { %v875_v55 = vmul.f32 %v2872_v29, %v121_v43  ;;  %v4461_v63 = vsel %vm2979_vm9, 4294967295, %v4460_v63 }
 0x115   :  { %v2040_v47 = vadd.f32 %v2039_v36, %v1913_v40  ;;  %v1577_v57 = vadd.f32 %v1576_v42, %v1322_v41  ;;  %4462 = vst [vmem:[#allocation33_spill] sm:$0xff] %v4461_v63  ;;  %v2988_v36 = vld [vmem:[#allocation5 + $0x38] sm:$0xff]  ;;  %v1212_v63 = vld [vmem:[#allocation7 + $0xb0] sm:$0xff] }
 0x116   :  { %v1070_v28 = vsel %vm2967_vm8, 0.0, %v875_v55 }
 0x117   :  { %v2041_v62 = vadd.f32 %v2040_v47, %v1914_v56  ;;  %v1326_v41 = vmul.f32 %v1198_v26, %v1070_v28 }
 0x119   :  { %205 = vperm.xlu2 %2490, %v2788_v13   ;;  %199 = vperm.xlu1 %2489, %v2788_v13  }
 0x11a   :  { %514 = vperm.xlu0 %2539, %v2866_v25  }
 0x11b   :  { %v103_v52 = vpop.permute.xlu1 %102 }
 0x11c   :  { %v872_v60 = vmul.f32 %v2872_v29, %v103_v52  ;;  %v1068_v52 = vsel %vm2953_vm7, 0.0, %v873_v39 }
 0x11d   :  { %v1324_v59 = vmul.f32 %v1196_v51, %v1068_v52 }
 0x11e   :  { %v1067_v33 = vsel %vm2938_vm6, 0.0, %v872_v60 }
 0x11f   :  { %v1323_v44 = vmul.f32 %v1195_v32, %v1067_v33  ;;  %v1916_v40 = vmul.f32 %v2983_v7, %v1324_v59 }
 0x121   :  { %2492 = vset.pattern.permute.xlu2 %v2824_v20  ;;  %2491 = vset.pattern.permute.xlu1 %v2809_v17  ;;  %v1915_v58 = vmul.f32 %v2961_v46, %v1323_v44  ;;  %v1578_v60 = vadd.f32 %v1577_v57, %v1323_v44  ;;  %v2993_v44 = vld [vmem:[#allocation5 + $0x40] sm:$0xff] }
 0x122   :  { %2544 = vset.pattern.permute.xlu0 %v2848_v24  ;;  %v1918_v55 = vmul.f32 %v2993_v44, %v1326_v41 }
 0x123   :  { %v2042_v33 = vadd.f32 %v2041_v62, %v1915_v58  ;;  %v1579_v43 = vadd.f32 %v1578_v60, %v1324_v59  ;;  %v133_v58 = vpop.permute.xlu2 %132  ;;  %v3001_v59 = vperm.slane %v2767_v8, 5 }
 0x124   :  { %v877_v60 = vmul.f32 %v2872_v29, %v133_v58 }
 0x125   :  { %v2043_v52 = vadd.f32 %v2042_v33, %v1916_v40  ;;  %4463 = vst [vmem:[#allocation34_spill] sm:$0xff] %v3001_v59  ;;  %v1199_v33 = vld [vmem:[#allocation7 + $0x48] sm:$0xff]  ;;  %v3023_v40 = vadd.s32 104, %v2751_v1 }
 0x127   :  { %4469 = vst [vmem:[#allocation36_spill] sm:$0xff] %v3023_v40 }
 0x129   :  { %223 = vperm.xlu2 %2492, %v2788_v13   ;;  %217 = vperm.xlu1 %2491, %v2788_v13  }
 0x12a   :  { %544 = vperm.xlu0 %2544, %v2866_v25  }
 0x12b   :  { %v115_v5 = vpop.permute.xlu1 %114 }
 0x12c   :  { %v874_v32 = vmul.f32 %v2872_v29, %v115_v5  ;;  %v4464_v5 = vmov 0 }
 0x12d   :  { %v4465_v5 = vsel %vm3006_vm10, 4294967295, %v4464_v5 }
 0x12e   :  { %v1069_v39 = vsel %vm2979_vm9, 0.0, %v874_v32  ;;  %4466 = vst [vmem:[#allocation35_spill] sm:$0xff] %v4465_v5  ;;  %v1072_v32 = vsel %vm3006_vm10, 0.0, %v877_v60 }
 0x12f   :  { %v1325_v42 = vmul.f32 %v1197_v31, %v1069_v39  ;;  %v1200_v31 = vld [vmem:[#allocation7 + $0x50] sm:$0xff] }
 0x131   :  { %v1580_v47 = vadd.f32 %v1579_v43, %v1325_v42  ;;  %v1917_v51 = vmul.f32 %v2988_v36, %v1325_v42  ;;  %2494 = vset.pattern.permute.xlu2 %v2836_v22  ;;  %2493 = vset.pattern.permute.xlu1 %v2821_v19  ;;  %v1328_v43 = vmul.f32 %v1200_v31, %v1072_v32 }
 0x132   :  { %2549 = vset.pattern.permute.xlu0 %v2755_v2 }
 0x133   :  { %v2044_v56 = vadd.f32 %v2043_v52, %v1917_v51  ;;  %v1581_v57 = vadd.f32 %v1580_v47, %v1326_v41  ;;  %v3025_v41 = vld [vmem:[#allocation5 + $0x48] sm:$0xff]  ;;  %v3029_v51 = vld [vmem:[#allocation5 + $0x50] sm:$0xff] }
 0x135   :  { %v2045_v62 = vadd.f32 %v2044_v56, %v1918_v55  ;;  %v1920_v56 = vmul.f32 %v3029_v51, %v1328_v43 }
 0x139   :  { %235 = vperm.xlu2 %2494, %v2788_v13   ;;  %229 = vperm.xlu1 %2493, %v2788_v13  }
 0x13a   :  { %575 = vperm.xlu0 %2549, %v3001_v59  }
 0x13b   :  { %v127_v28 = vpop.permute.xlu1 %126 }
 0x13c   :  { %v876_v39 = vmul.f32 %v2872_v29, %v127_v28  ;;  %v145_v28 = vpop.permute.xlu2 %144 }
 0x13d   :  { %v879_v31 = vmul.f32 %v2872_v29, %v145_v28 }
 0x13e   :  { %v1071_v42 = vsel %vm3015_vm11, 0.0, %v876_v39 }
 0x13f   :  { %v1327_v47 = vmul.f32 %v1199_v33, %v1071_v42  ;;  %v1202_v33 = vld [vmem:[#allocation7 + $0x60] sm:$0xff]  ;;  %v1074_v39 = vsel %vm3042_vm12, 0.0, %v879_v31  ;;  %v1201_v42 = vld [vmem:[#allocation7 + $0x58] sm:$0xff] }
 0x141   :  { %v1582_v52 = vadd.f32 %v1581_v57, %v1327_v47  ;;  %v1919_v55 = vmul.f32 %v3025_v41, %v1327_v47  ;;  %2497 = vset.pattern.permute.xlu2 %v2848_v24  ;;  %2496 = vset.pattern.permute.xlu1 %v3023_v40  ;;  %v4470_v57 = vmov 0  ;;  %v3055_v47 = vld [vmem:[#allocation5 + $0x58] sm:$0xff] }
 0x142   :  { %2554 = vset.pattern.permute.xlu0 %v2809_v17  ;;  %v4471_v57 = vsel %vm3042_vm12, 4294967295, %v4470_v57 }
 0x143   :  { %v2046_v58 = vadd.f32 %v2045_v62, %v1919_v55  ;;  %v1583_v60 = vadd.f32 %v1582_v52, %v1328_v43  ;;  %v4472_v62 = vmov 0  ;;  %v1330_v55 = vmul.f32 %v1202_v33, %v1074_v39 }
 0x144   :  { %v4473_v62 = vsel %vm3048_vm13, 4294967295, %v4472_v62  ;;  %v3076_v33 = vperm.slane %v2767_v8, 6  ;;  %v844_v39 = vrot.slane %v2762_v4, 1 }
 0x145   :  { %v2047_v6 = vadd.f32 %v2046_v58, %v1920_v56  ;;  %v3059_v58 = vld [vmem:[#allocation5 + $0x60] sm:$0xff] }
 0x146   :  { %4474 = vst [vmem:[#allocation37_spill] sm:$0xff] %v3059_v58  ;;  %v1922_v31 = vmul.f32 %v3059_v58, %v1330_v55  ;;  %v1222_v58 = vld [vmem:[#allocation7 + $0x100] sm:$0xff] }
 0x147   :  { %4478 = vst [vmem:[#allocation41_spill] sm:$0xff] %v3076_v33 }
 0x149   :  { %253 = vperm.xlu2 %2497, %v2788_v13   ;;  %247 = vperm.xlu1 %2496, %v2788_v13  }
 0x14a   :  { %605 = vperm.xlu0 %2554, %v3001_v59  }
 0x14b   :  { %v139_v32 = vpop.permute.xlu1 %138 }
 0x14c   :  { %v878_v43 = vmul.f32 %v2872_v29, %v139_v32 }
 0x14e   :  { %v1073_v52 = vsel %vm3048_vm13, 0.0, %v878_v43 }
 0x14f   :  { %v1329_v56 = vmul.f32 %v1201_v42, %v1073_v52  ;;  %v3084_v42 = vperm.slane %v844_v39, 0  ;;  %v3088_v52 = vperm.slane %v2767_v8, 7  ;;  %v1462_v8 = vld [vmem:[#allocation5 + $0x80] sm:$0xff] }
 0x151   :  { %v1584_v28 = vadd.f32 %v1583_v60, %v1329_v56  ;;  %v1921_v25 = vmul.f32 %v3055_v47, %v1329_v56  ;;  %2499 = vset.pattern.permute.xlu2 %v2751_v1  ;;  %2498 = vset.pattern.permute.xlu1 %v2845_v23  ;;  %v3073_v60 = vpop.permute.xlu2 %162  ;;  %4480 = vst [vmem:[#allocation43_spill] sm:$0xff] %v3088_v52 }
 0x152   :  { %2555 = vset.pattern.permute.xlu0 %v2779_v11  ;;  %4477 = vst [vmem:[#allocation40_spill] sm:$0xff] %v3073_v60 }
 0x153   :  { %v2048_v32 = vadd.f32 %v2047_v6, %v1921_v25  ;;  %v3066_v29 = vadd.f32 %v1584_v28, %v1330_v55  ;;  %v1207_v55 = vld [vmem:[#allocation7 + $0x88] sm:$0xff] }
 0x155   :  { %4475 = vst [vmem:[#allocation38_spill] sm:$0xff] %v3066_v29  ;;  %v3068_v5 = vadd.f32 %v2048_v32, %v1922_v31  ;;  %v3095_v31 = vpop.permute.xlu0 %241  ;;  %v1206_v32 = vld [vmem:[#allocation7 + $0x80] sm:$0xff] }
 0x157   :  { %4476 = vst [vmem:[#allocation39_spill] sm:$0xff] %v3068_v5  ;;  %v3098_v5 = vld [vmem:[#allocation5 + $0x88] sm:$0xff] }
 0x158   :  { %v1763_v34 = vadd.f32 %v3098_v5, %v1462_v8 }
 0x159   :  { %266 = vperm.xlu2 %2499, %v2803_v16   ;;  %259 = vperm.xlu1 %2498, %v2788_v13   ;;  %v176_v6 = vpop.permute.xlu2 %175 }
 0x15a   :  { %181 = vperm.xlu0 %2555, %v2788_v13   ;;  %v884_v43 = vmul.f32 %v3084_v42, %v176_v6 }
 0x15b   :  { %v3082_v25 = vpop.permute.xlu1 %156 }
 0x15c   :  { %4479 = vst [vmem:[#allocation42_spill] sm:$0xff] %v3082_v25  ;;  %v1079_v56 = vsel %vm2884_vm1, 0.0, %v884_v43 }
 0x15d   :  { %v1335_v6 = vmul.f32 %v1207_v55, %v1079_v56  ;;  %v273_v55 = vpop.permute.xlu0 %272 }
 0x15f   :  { %v1927_v60 = vmul.f32 %v3098_v5, %v1335_v6 }
 0x161   :  { %2502 = vset.pattern.permute.xlu2 %v2755_v2  ;;  %2501 = vset.pattern.permute.xlu1 %v2779_v11 }
 0x162   :  { %666 = vperm.xlu0 %2555, %v3076_v33  }
 0x169   :  { %284 = vperm.xlu2 %2502, %v2803_v16   ;;  %278 = vperm.xlu1 %2501, %v2803_v16  }
 0x16a   :  { %763 = vperm.xlu0 %2555, %v3088_v52  }
 0x16b   :  { %v170_v28 = vpop.permute.xlu1 %169 }
 0x16c   :  { %v883_v39 = vmul.f32 %v3084_v42, %v170_v28 }
 0x16e   :  { %v1078_v29 = vsel %vm2890_vm2, 0.0, %v883_v39 }
 0x16f   :  { %v1334_v1 = vmul.f32 %v1206_v32, %v1078_v29  ;;  %v3113_v29 = vpop.permute.xlu0 %302 }
 0x171   :  { %v3103_v25 = vadd.f32 %v1335_v6, %v1334_v1  ;;  %v1926_v43 = vmul.f32 %v1462_v8, %v1334_v1  ;;  %2504 = vset.pattern.permute.xlu2 %v2797_v15  ;;  %2503 = vset.pattern.permute.xlu1 %v2776_v10  ;;  %v1742_v8 = vadd.f32 %v2910_v48, %v2912_v49  ;;  %v1468_v49 = vld [vmem:[#allocation5 + $0xb0] sm:$0xff] }
 0x172   :  { %2572 = vset.pattern.permute.xlu0 %v2812_v18 }
 0x173   :  { %v3108_v28 = vadd.f32 %v1927_v60, %v1926_v43  ;;  %v3123_v60 = vpop.permute.xlu2 %193 }
 0x177   :  { %v3118_v1 = vpop.permute.xlu0 %363 }
 0x178   :  { %4481 = vst [vmem:[#allocation44_spill] sm:$0xff] %v3118_v1 }
 0x179   :  { %296 = vperm.xlu2 %2504, %v2803_v16   ;;  %290 = vperm.xlu1 %2503, %v2803_v16  }
 0x17a   :  { %211 = vperm.xlu0 %2572, %v2788_v13  }
 0x17b   :  { %v3130_v13 = vpop.permute.xlu2 %205 }
 0x17f   :  { %v3125_v56 = vpop.permute.xlu0 %393 }
 0x180   :  { %4482 = vst [vmem:[#allocation45_spill] sm:$0xff] %v3125_v56 }
 0x181   :  { %2507 = vset.pattern.permute.xlu2 %v2809_v17  ;;  %2506 = vset.pattern.permute.xlu1 %v2812_v18  ;;  %v3167_v17 = vld [vmem:[#allocation5 + $0x108] sm:$0xff] }
 0x182   :  { %696 = vperm.xlu0 %2572, %v3076_v33  }
 0x183   :  { %v3137_v39 = vpop.permute.xlu2 %223 }
 0x187   :  { %v3132_v32 = vpop.permute.xlu0 %423 }
 0x188   :  { %4483 = vst [vmem:[#allocation46_spill] sm:$0xff] %v3132_v32  ;;  %v845_v32 = vrot.slane %v2762_v4, 2  ;;  %v1223_v4 = vld [vmem:[#allocation7 + $0x108] sm:$0xff] }
 0x189   :  { %314 = vperm.xlu2 %2507, %v2803_v16   ;;  %308 = vperm.xlu1 %2506, %v2803_v16  }
 0x18a   :  { %793 = vperm.xlu0 %2572, %v3088_v52   ;;  %v3151_v56 = vperm.slane %v845_v32, 0 }
 0x18f   :  { %v3139_v6 = vpop.permute.xlu0 %453 }
 0x190   :  { %4484 = vst [vmem:[#allocation47_spill] sm:$0xff] %v3139_v6  ;;  %v188_v6 = vpop.permute.xlu1 %187 }
 0x191   :  { %2509 = vset.pattern.permute.xlu2 %v2821_v19  ;;  %2508 = vset.pattern.permute.xlu1 %v2824_v20 }
 0x192   :  { %2577 = vset.pattern.permute.xlu0 %v2836_v22 }
 0x193   :  { %v3144_v43 = vpop.permute.xlu2 %235 }
 0x197   :  { %v3146_v19 = vpop.permute.xlu0 %484 }
 0x198   :  { %4485 = vst [vmem:[#allocation48_spill] sm:$0xff] %v3146_v19  ;;  %v200_v32 = vpop.permute.xlu1 %199 }
 0x199   :  { %326 = vperm.xlu2 %2509, %v2803_v16   ;;  %320 = vperm.xlu1 %2508, %v2803_v16  }
 0x19a   :  { %332 = vperm.xlu0 %2577, %v2803_v16  }
 0x19f   :  { %v3156_v1 = vpop.permute.xlu0 %514 }
 0x1a0   :  { %4487 = vst [vmem:[#allocation50_spill] sm:$0xff] %v3156_v1 }
 0x1a1   :  { %2511 = vset.pattern.permute.xlu2 %v3023_v40  ;;  %2510 = vset.pattern.permute.xlu1 %v2782_v12 }
 0x1a2   :  { %720 = vperm.xlu0 %2577, %v3076_v33   ;;  %v900_v33 = vmul.f32 %v3151_v56, %v273_v55  ;;  %v3169_v55 = vld [vmem:[#allocation5 + $0x100] sm:$0xff] }
 0x1a3   :  { %v3154_v15 = vpop.permute.xlu2 %253 }
 0x1a4   :  { %4486 = vst [vmem:[#allocation49_spill] sm:$0xff] %v3154_v15  ;;  %v1095_v19 = vsel %vm2884_vm1, 0.0, %v900_v33 }
 0x1a5   :  { %v1351_v1 = vmul.f32 %v1223_v4, %v1095_v19  ;;  %v1464_v19 = vld [vmem:[#allocation5 + $0x90] sm:$0xff] }
 0x1a7   :  { %v3164_v12 = vpop.permute.xlu0 %544 }
 0x1a8   :  { %4488 = vst [vmem:[#allocation51_spill] sm:$0xff] %v3164_v12 }
 0x1a9   :  { %344 = vperm.xlu2 %2511, %v2803_v16   ;;  %338 = vperm.xlu1 %2510, %v2803_v16  }
 0x1aa   :  { %2582 = vset.pattern.permute.xlu0 %v3023_v40 }
 0x1af   :  { %v3185_v5 = vpop.permute.xlu0 %575 }
 0x1b0   :  { %4489 = vst [vmem:[#allocation52_spill] sm:$0xff] %v3185_v5 }
 0x1b1   :  { %2513 = vset.pattern.permute.xlu2 %v2845_v23  ;;  %2512 = vset.pattern.permute.xlu1 %v2848_v24 }
 0x1b2   :  { %150 = vperm.xlu0 %2582, %v2770_v9   ;;  %v1943_v9 = vmul.f32 %v3167_v17, %v1351_v1 }
 0x1b3   :  { %v267_v22 = vpop.permute.xlu2 %266 }
 0x1b4   :  { %v899_v15 = vmul.f32 %v3151_v56, %v267_v22  ;;  %v3181_v22 = vpop.permute.xlu1 %217 }
 0x1b6   :  { %v1094_v20 = vsel %vm2890_vm2, 0.0, %v899_v15  ;;  %v1764_v15 = vadd.f32 %v1763_v34, %v1464_v19  ;;  %v1743_v34 = vadd.f32 %v1742_v8, %v2921_v53  ;;  %v888_v53 = vmul.f32 %v3084_v42, %v200_v32 }
 0x1b7   :  { %v1350_v33 = vmul.f32 %v1222_v58, %v1094_v20  ;;  %v1465_v20 = vld [vmem:[#allocation5 + $0x98] sm:$0xff] }
 0x1b8   :  { %v1765_v58 = vadd.f32 %v1764_v15, %v1465_v20  ;;  %v886_v15 = vmul.f32 %v3084_v42, %v188_v6  ;;  %v1744_v48 = vadd.f32 %v1743_v34, %v2944_v27  ;;  %v1209_v6 = vld [vmem:[#allocation7 + $0x98] sm:$0xff] }
 0x1b9   :  { %v3175_v40 = vadd.f32 %v1351_v1, %v1350_v33  ;;  %v1942_v12 = vmul.f32 %v3169_v55, %v1350_v33  ;;  %356 = vperm.xlu2 %2513, %v2803_v16   ;;  %350 = vperm.xlu1 %2512, %v2803_v16   ;;  %v1466_v16 = vld [vmem:[#allocation5 + $0xa0] sm:$0xff] }
 0x1ba   :  { %635 = vperm.xlu0 %2582, %v3001_v59   ;;  %v1766_v33 = vadd.f32 %v1765_v58, %v1466_v16  ;;  %v887_v58 = vmul.f32 %v3084_v42, %v3123_v60  ;;  %v1081_v59 = vsel %vm2917_vm4, 0.0, %v886_v15  ;;  %v1745_v34 = vadd.f32 %v1744_v48, %v2959_v45  ;;  %v3224_v48 = vld [vmem:[#allocation5 + $0xc0] sm:$0xff] }
 0x1bb   :  { %v3183_v4 = vadd.f32 %v1943_v9, %v1942_v12  ;;  %v1467_v9 = vld [vmem:[#allocation5 + $0xa8] sm:$0xff]  ;;  %v1083_v15 = vsel %vm2938_vm6, 0.0, %v888_v53 }
 0x1bc   :  { %v3192_v1 = vpop.permute.xlu1 %229  ;;  %v3194_v12 = vpop.permute.xlu0 %605  ;;  %v1767_v5 = vadd.f32 %v1766_v33, %v1467_v9  ;;  %v3207_v33 = vld [vmem:[#allocation5 + $0xb8] sm:$0xff]  ;;  %v1082_v60 = vsel %vm2931_vm5, 0.0, %v887_v58 }
 0x1bd   :  { %4490 = vst [vmem:[#allocation53_spill] sm:$0xff] %v3194_v12  ;;  %v1338_v45 = vmul.f32 %v1210_v35, %v1082_v60  ;;  %v1784_v35 = vadd.f32 %v3167_v17, %v3169_v55 }
 0x1be   :  { %v1768_v12 = vadd.f32 %v1767_v5, %v1468_v49  ;;  %v889_v5 = vmul.f32 %v3084_v42, %v3130_v13 }
 0x1c1   :  { %2516 = vset.pattern.permute.xlu2 %v2779_v11  ;;  %2515 = vset.pattern.permute.xlu1 %v2758_v3  ;;  %v1208_v11 = vld [vmem:[#allocation7 + $0x90] sm:$0xff]  ;;  %v1769_v3 = vadd.f32 %v1768_v12, %v3207_v33 }
 0x1c2   :  { %829 = vperm.xlu0 %2582, %v3088_v52  }
 0x1c4   :  { %v3204_v52 = vpop.permute.xlu1 %247 }
 0x1c5   :  { %4491 = vst [vmem:[#allocation54_spill] sm:$0xff] %v3204_v52  ;;  %v1211_v52 = vld [vmem:[#allocation7 + $0xa8] sm:$0xff] }
 0x1c6   :  { %v1339_v12 = vmul.f32 %v1211_v52, %v1083_v15  ;;  %v1480_v15 = vld [vmem:[#allocation5 + $0x110] sm:$0xff] }
 0x1c7   :  { %v1785_v17 = vadd.f32 %v1784_v35, %v1480_v15 }
 0x1c9   :  { %375 = vperm.xlu2 %2516, %v2830_v21   ;;  %369 = vperm.xlu1 %2515, %v2830_v21  }
 0x1ca   :  { %2591 = vset.pattern.permute.xlu0 %v2845_v23  ;;  %v1337_v23 = vmul.f32 %v1209_v6, %v1081_v59  ;;  %v1084_v59 = vsel %vm2953_vm7, 0.0, %v889_v5  ;;  %v1931_v5 = vmul.f32 %v1467_v9, %v1339_v12 }
 0x1cc   :  { %v182_v8 = vpop.permute.xlu0 %181  ;;  %v3230_v6 = vpop.permute.xlu1 %259  ;;  %v1929_v53 = vmul.f32 %v1465_v20, %v1337_v23 }
 0x1cd   :  { %v885_v27 = vmul.f32 %v3084_v42, %v182_v8 }
 0x1cf   :  { %v1080_v32 = vsel %vm2897_vm3, 0.0, %v885_v27  ;;  %v1746_v27 = vadd.f32 %v1745_v34, %v2961_v46  ;;  %v3236_v46 = vld [vmem:[#allocation5 + $0xc8] sm:$0xff] }
 0x1d0   :  { %v1336_v8 = vmul.f32 %v1208_v11, %v1080_v32  ;;  %v1770_v11 = vadd.f32 %v1769_v3, %v3224_v48 }
 0x1d1   :  { %2518 = vset.pattern.permute.xlu2 %v2776_v10  ;;  %2517 = vset.pattern.permute.xlu1 %v2755_v2  ;;  %v1747_v52 = vadd.f32 %v1746_v27, %v2983_v7 }
 0x1d2   :  { %v1596_v13 = vadd.f32 %v3103_v25, %v1336_v8  ;;  %v1928_v58 = vmul.f32 %v1464_v19, %v1336_v8  ;;  %v285_v25 = vpop.permute.xlu2 %284  ;;  %v1930_v19 = vmul.f32 %v1466_v16, %v1338_v45  ;;  %v1340_v8 = vmul.f32 %v1212_v63, %v1084_v59  ;;  %v1224_v59 = vld [vmem:[#allocation7 + $0x110] sm:$0xff] }
 0x1d3   :  { %v1771_v3 = vadd.f32 %v1770_v11, %v3236_v46  ;;  %v902_v20 = vmul.f32 %v3151_v56, %v285_v25  ;;  %v1748_v9 = vadd.f32 %v1747_v52, %v2988_v36  ;;  %v3268_v52 = vld [vmem:[#allocation5 + $0xe0] sm:$0xff] }
 0x1d4   :  { %v1597_v60 = vadd.f32 %v1596_v13, %v1337_v23  ;;  %v2060_v32 = vadd.f32 %v3108_v28, %v1928_v58  ;;  %v1932_v63 = vmul.f32 %v1468_v49, %v1340_v8  ;;  %v3243_v28 = vld [vmem:[#allocation5 + $0xd0] sm:$0xff]  ;;  %v3245_v55 = vpop.permute.xlu0 %666  ;;  %v1225_v58 = vld [vmem:[#allocation7 + $0x118] sm:$0xff] }
 0x1d5   :  { %4492 = vst [vmem:[#allocation55_spill] sm:$0xff] %v3245_v55  ;;  %v1097_v27 = vsel %vm2917_vm4, 0.0, %v902_v20  ;;  %v1749_v25 = vadd.f32 %v1748_v9, %v2993_v44  ;;  %v892_v44 = vmul.f32 %v3084_v42, %v3137_v39  ;;  %v4498_v55 = vmov 0 }
 0x1d6   :  { %v1598_v34 = vadd.f32 %v1597_v60, %v1338_v45  ;;  %v2061_v10 = vadd.f32 %v2060_v32, %v1929_v53  ;;  %v1481_v45 = vld [vmem:[#allocation5 + $0x118] sm:$0xff]  ;;  %v1353_v36 = vmul.f32 %v1225_v58, %v1097_v27  ;;  %v3260_v60 = vld [vmem:[#allocation5 + $0x120] sm:$0xff]  ;;  %v1215_v58 = vld [vmem:[#allocation7 + $0xc8] sm:$0xff] }
 0x1d7   :  { %v3256_v53 = vld [vmem:[#allocation5 + $0xd8] sm:$0xff] }
 0x1d8   :  { %v2062_v2 = vadd.f32 %v2061_v10, %v1930_v19  ;;  %v1599_v23 = vadd.f32 %v1598_v34, %v1339_v12  ;;  %v1772_v10 = vadd.f32 %v1771_v3, %v3243_v28  ;;  %v1786_v12 = vadd.f32 %v1785_v17, %v1481_v45  ;;  %v3276_v17 = vld [vmem:[#allocation5 + $0x128] sm:$0xff] }
 0x1d9   :  { %387 = vperm.xlu2 %2518, %v2830_v21   ;;  %381 = vperm.xlu1 %2517, %v2830_v21   ;;  %v905_v3 = vmul.f32 %v3151_v56, %v3113_v29  ;;  %v1945_v20 = vmul.f32 %v1481_v45, %v1353_v36  ;;  %v3286_v29 = vld [vmem:[#allocation5 + $0xe8] sm:$0xff]  ;;  %v1228_v45 = vld [vmem:[#allocation7 + $0x130] sm:$0xff] }
 0x1da   :  { %v3247_v16 = vadd.f32 %v1599_v23, %v1340_v8  ;;  %v2063_v7 = vadd.f32 %v2062_v2, %v1931_v5  ;;  %v1773_v32 = vadd.f32 %v1772_v10, %v3256_v53  ;;  %v1787_v19 = vadd.f32 %v1786_v12, %v3260_v60  ;;  %v297_v9 = vpop.permute.xlu2 %296  ;;  %v1484_v10 = vld [vmem:[#allocation5 + $0x130] sm:$0xff] }
 0x1db   :  { %v279_v13 = vpop.permute.xlu1 %278  ;;  %v895_v5 = vmul.f32 %v3084_v42, %v3095_v31  ;;  %v894_v12 = vmul.f32 %v3084_v42, %v3144_v43 }
 0x1dc   :  { %v901_v49 = vmul.f32 %v3151_v56, %v279_v13  ;;  %v3254_v11 = vadd.f32 %v2063_v7, %v1932_v63  ;;  %v1774_v23 = vadd.f32 %v1773_v32, %v3268_v52  ;;  %v1750_v63 = vadd.f32 %v1749_v25, %v3025_v41  ;;  %v3281_v7 = vpop.permute.xlu0 %763  ;;  %v3303_v32 = vld [vmem:[#allocation5 + $0x138] sm:$0xff] }
 0x1dd   :  { %4493 = vst [vmem:[#allocation56_spill] sm:$0xff] %v3281_v7  ;;  %v1788_v31 = vadd.f32 %v1787_v19, %v3276_v17  ;;  %v1090_v39 = vsel %vm3042_vm12, 0.0, %v895_v5  ;;  %v1087_v41 = vsel %vm3015_vm11, 0.0, %v892_v44  ;;  %v1227_v44 = vld [vmem:[#allocation7 + $0x128] sm:$0xff] }
 0x1de   :  { %v1096_v2 = vsel %vm2897_vm3, 0.0, %v901_v49  ;;  %v1775_v27 = vadd.f32 %v1774_v23, %v3286_v29  ;;  %v1751_v49 = vadd.f32 %v1750_v63, %v3029_v51  ;;  %v3305_v19 = vmul.f32 %v1215_v58, %v1087_v41  ;;  %v1226_v23 = vld [vmem:[#allocation7 + $0x120] sm:$0xff]  ;;  %v4497_v7 = vld [vmem:[#allocation36_spill] sm:$0xff] }
 0x1df   :  { %v1352_v35 = vmul.f32 %v1224_v59, %v1096_v2  ;;  %v1218_v59 = vld [vmem:[#allocation7 + $0xe0] sm:$0xff]  ;;  %v904_v2 = vmul.f32 %v3151_v56, %v297_v9  ;;  %v1217_v9 = vld [vmem:[#allocation7 + $0xd8] sm:$0xff]  ;;  %vm3346_vm15 = vcmp.eq.s32.totalorder %v4497_v7, %v2875_v30 }
 0x1e0   :  { %v3310_v43 = vmul.f32 %v1218_v59, %v1090_v39  ;;  %v1214_v39 = vld [vmem:[#allocation7 + $0xc0] sm:$0xff]  ;;  %v4494_v59 = vmov 0  ;;  %v4499_v55 = vsel %vm3346_vm15, 4294967295, %v4498_v55 }
 0x1e1   :  { %v1617_v8 = vadd.f32 %v3175_v40, %v1352_v35  ;;  %v1944_v34 = vmul.f32 %v1480_v15, %v1352_v35  ;;  %2521 = vset.pattern.permute.xlu2 %v2812_v18  ;;  %2520 = vset.pattern.permute.xlu1 %v2794_v14  ;;  %v891_v35 = vmul.f32 %v3084_v42, %v3181_v22  ;;  %v4495_v59 = vsel %vm3331_vm14, 4294967295, %v4494_v59  ;;  %v1216_v18 = vld [vmem:[#allocation7 + $0xd0] sm:$0xff] }
 0x1e2   :  { %v3314_v22 = vadd.f32 %v1751_v49, %v3055_v47  ;;  %v893_v47 = vmul.f32 %v3084_v42, %v3192_v1  ;;  %v1935_v49 = vmul.f32 %v3236_v46, %v3305_v19 }
 0x1e3   :  { %v2081_v40 = vadd.f32 %v3183_v4, %v1944_v34  ;;  %v1618_v15 = vadd.f32 %v1617_v8, %v1353_v36  ;;  %v1100_v4 = vsel %vm2953_vm7, 0.0, %v905_v3  ;;  %v1789_v36 = vadd.f32 %v1788_v31, %v1484_v10  ;;  %v3307_v8 = vld [vmem:[#allocation5 + $0xf0] sm:$0xff] }
 0x1e4   :  { %v1356_v25 = vmul.f32 %v1228_v45, %v1100_v4  ;;  %v1776_v5 = vadd.f32 %v1775_v27, %v3307_v8  ;;  %v1089_v3 = vsel %vm3048_vm13, 0.0, %v894_v12  ;;  %v1086_v45 = vsel %vm2967_vm8, 0.0, %v891_v35  ;;  %v1213_v4 = vld [vmem:[#allocation7 + $0xb8] sm:$0xff] }
 0x1e5   :  { %v3284_v13 = vadd.f32 %v2081_v40, %v1945_v20  ;;  %v1790_v51 = vadd.f32 %v1789_v36, %v3303_v32  ;;  %v1099_v20 = vsel %vm2938_vm6, 0.0, %v904_v2  ;;  %v3320_v40 = vld [vmem:[#allocation5 + $0x140] sm:$0xff]  ;;  %v3337_v12 = vld [vmem:[#allocation5 + $0xf8] sm:$0xff] }
 0x1e6   :  { %v1948_v27 = vmul.f32 %v1484_v10, %v1356_v25  ;;  %v1355_v2 = vmul.f32 %v1227_v44, %v1099_v20  ;;  %v1777_v35 = vadd.f32 %v1776_v5, %v3337_v12  ;;  %v1088_v44 = vsel %vm3006_vm10, 0.0, %v893_v47  ;;  %v315_v47 = vpop.permute.xlu2 %314 }
 0x1e7   :  { %v1791_v41 = vadd.f32 %v1790_v51, %v3320_v40 }
 0x1e9   :  { %405 = vperm.xlu2 %2521, %v2830_v21   ;;  %399 = vperm.xlu1 %2520, %v2830_v21  }
 0x1eb   :  { %v291_v34 = vpop.permute.xlu1 %290 }
 0x1ec   :  { %v903_v63 = vmul.f32 %v3151_v56, %v291_v34  ;;  %v212_v31 = vpop.permute.xlu0 %211  ;;  %v1345_v34 = vmul.f32 %v1217_v9, %v1089_v3  ;;  %v4502_v3 = vld [vmem:[#allocation19_spill] sm:$0xff]  ;;  %v1792_v9 = vadd.f32 %v1791_v41, %v3350_v37  ;;  %v1344_v41 = vmul.f32 %v1216_v18, %v1088_v44  ;;  %v1220_v44 = vld [vmem:[#allocation7 + $0xf0] sm:$0xff] }
 0x1ed   :  { %v890_v58 = vmul.f32 %v3084_v42, %v212_v31  ;;  %v1342_v31 = vmul.f32 %v1214_v39, %v1086_v45  ;;  %v4503_v39 = vld [vmem:[#allocation49_spill] sm:$0xff] }
 0x1ee   :  { %v1098_v1 = vsel %vm2931_vm5, 0.0, %v903_v63  ;;  %v897_v45 = vmul.f32 %v3084_v42, %v4503_v39 }
 0x1ef   :  { %v1354_v36 = vmul.f32 %v1226_v23, %v1098_v1  ;;  %v1085_v10 = vsel %vm2979_vm9, 0.0, %v890_v58  ;;  %v4501_v23 = vld [vmem:[#allocation22_spill] sm:$0xff] }
 0x1f0   :  { %v1341_v46 = vmul.f32 %v1213_v4, %v1085_v10  ;;  %v4504_v58 = vld [vmem:[#allocation54_spill] sm:$0xff] }
 0x1f1   :  { %v1619_v20 = vadd.f32 %v1618_v15, %v1354_v36  ;;  %v1946_v5 = vmul.f32 %v3260_v60, %v1354_v36  ;;  %2523 = vset.pattern.permute.xlu2 %v4501_v23  ;;  %2522 = vset.pattern.permute.xlu1 %v4502_v3  ;;  %v896_v4 = vmul.f32 %v3084_v42, %v4504_v58  ;;  %v1778_v23 = vrot.slane %v1777_v35, 4 }
 0x1f2   :  { %v1601_v1 = vadd.f32 %v3247_v16, %v1341_v46  ;;  %v1933_v10 = vmul.f32 %v3207_v33, %v1341_v46  ;;  %v1947_v15 = vmul.f32 %v3276_v17, %v1355_v2  ;;  %v1934_v3 = vmul.f32 %v3224_v48, %v1342_v31  ;;  %v1219_v46 = vld [vmem:[#allocation7 + $0xe8] sm:$0xff] }
 0x1f3   :  { %v1620_v60 = vadd.f32 %v1619_v20, %v1355_v2  ;;  %v2083_v36 = vadd.f32 %v3284_v13, %v1946_v5  ;;  %v898_v16 = vmul.f32 %v3084_v42, %v3230_v6  ;;  %v1793_v17 = vadd.f32 %v1792_v9, %v3368_v0 }
 0x1f4   :  { %v1602_v50 = vadd.f32 %v1601_v1, %v1342_v31  ;;  %v2065_v39 = vadd.f32 %v3254_v11, %v1933_v10  ;;  %v1091_v13 = vsel %vm3346_vm15, 0.0, %v896_v4  ;;  %v907_v2 = vmul.f32 %v3151_v56, %v315_v47  ;;  %v4505_v11 = vld [vmem:[#allocation24_spill] sm:$0xff]  ;;  %v3386_v4 = vld [vmem:[#allocation5 + $0x158] sm:$0xff]  ;;  %v3405_v47 = vld [vmem:[#allocation5 + $0x70] sm:$0xff] }
 0x1f5   :  { %v2084_v58 = vadd.f32 %v2083_v36, %v1947_v15  ;;  %v1621_v33 = vadd.f32 %v1620_v60, %v1356_v25  ;;  %vm3379_vm0 = vcmp.eq.s32.totalorder %v4505_v11, %v2875_v30  ;;  %v4506_v31 = vmov 0 }
 0x1f6   :  { %v1603_v18 = vadd.f32 %v1602_v50, %v3305_v19  ;;  %v2066_v48 = vadd.f32 %v2065_v39, %v1934_v3  ;;  %v4507_v31 = vsel %vm3379_vm0, 4294967295, %v4506_v31  ;;  %v1092_v42 = vsel %vm3331_vm14, 0.0, %v897_v45  ;;  %v4509_v50 = vld [vmem:[#allocation37_spill] sm:$0xff] }
 0x1f7   :  { %4508 = vst [vmem:[#allocation33_spill] sm:$0xff] %v4507_v31  ;;  %v1779_v6 = vadd.f32 %v1778_v23, %v1777_v35  ;;  %v2085_v25 = vadd.f32 %v2084_v58, %v1948_v27  ;;  %v1936_v20 = vmul.f32 %v3243_v28, %v1344_v41  ;;  %v1753_v19 = vadd.f32 %v3314_v22, %v4509_v50  ;;  %v3396_v28 = vld [vmem:[#allocation5 + $0x68] sm:$0xff]  ;;  %v1230_v35 = vld [vmem:[#allocation7 + $0x140] sm:$0xff]  ;;  %v1229_v58 = vld [vmem:[#allocation7 + $0x138] sm:$0xff] }
 0x1f8   :  { %v1604_v5 = vadd.f32 %v1603_v18, %v1344_v41  ;;  %v2067_v9 = vadd.f32 %v2066_v48, %v1935_v49  ;;  %v1937_v30 = vmul.f32 %v3256_v53, %v1345_v34  ;;  %v1347_v3 = vmul.f32 %v1219_v46, %v1091_v13  ;;  %v1221_v49 = vld [vmem:[#allocation7 + $0xf8] sm:$0xff]  ;;  %v3400_v53 = vld [vmem:[#allocation5 + $0x160] sm:$0xff] }
 0x1f9   :  { %v1093_v1 = vsel %vm3379_vm0, 0.0, %v898_v16  ;;  %417 = vperm.xlu2 %2523, %v2830_v21   ;;  %411 = vperm.xlu1 %2522, %v2830_v21   ;;  %v1794_v27 = vadd.f32 %v1793_v17, %v3386_v4  ;;  %v1102_v23 = vsel %vm2967_vm8, 0.0, %v907_v2  ;;  %v1754_v10 = vadd.f32 %v1753_v19, %v3396_v28  ;;  %v3410_v46 = vld [vmem:[#allocation5 + $0x78] sm:$0xff] }
 0x1fa   :  { %v1605_v22 = vadd.f32 %v1604_v5, %v1345_v34  ;;  %v2068_v45 = vadd.f32 %v2067_v9, %v1936_v20  ;;  %v1938_v15 = vmul.f32 %v3268_v52, %v3310_v43  ;;  %v1348_v60 = vmul.f32 %v1220_v44, %v1092_v42  ;;  %v3418_v5 = vpop.permute.xlu0 %696 }
 0x1fb   :  { %v1780_v36 = vrot.slane %v1779_v6, 2  ;;  %v309_v41 = vpop.permute.xlu1 %308  ;;  %v1755_v34 = vadd.f32 %v1754_v10, %v3405_v47  ;;  %v1939_v13 = vmul.f32 %v3286_v29, %v1347_v3  ;;  %v1349_v2 = vmul.f32 %v1221_v49, %v1093_v1  ;;  %4510 = vst [vmem:[#allocation36_spill] sm:$0xff] %v3418_v5  ;;  %v3420_v29 = vld [vmem:[#allocation5 + $0x168] sm:$0xff] }
 0x1fc   :  { %v1606_v39 = vadd.f32 %v1605_v22, %v3310_v43  ;;  %v2069_v16 = vadd.f32 %v2068_v45, %v1937_v30  ;;  %v906_v17 = vmul.f32 %v3151_v56, %v309_v41  ;;  %v1358_v18 = vmul.f32 %v1230_v35, %v1102_v23  ;;  %v4512_v35 = vld [vmem:[#allocation23_spill] sm:$0xff]  ;;  %v3425_v23 = vld [vmem:[#allocation5 + $0x170] sm:$0xff]  ;;  %v3433_v41 = vld [vmem:[#allocation5 + $0x178] sm:$0xff] }
 0x1fd   :  { %v1795_v52 = vadd.f32 %v1794_v27, %v3400_v53  ;;  %v1756_v43 = vadd.f32 %v1755_v34, %v3410_v46  ;;  %v1940_v20 = vmul.f32 %v3307_v8, %v1348_v60  ;;  %v1781_v50 = vadd.f32 %v1780_v36, %v1779_v6  ;;  %v4511_v27 = vld [vmem:[#allocation17_spill] sm:$0xff] }
 0x1fe   :  { %v1607_v48 = vadd.f32 %v1606_v39, %v1347_v3  ;;  %v2070_v42 = vadd.f32 %v2069_v16, %v1938_v15  ;;  %v1101_v44 = vsel %vm2979_vm9, 0.0, %v906_v17  ;;  %v1941_v22 = vmul.f32 %v3337_v12, %v1349_v2  ;;  %v327_v16 = vpop.permute.xlu2 %326 }
 0x1ff   :  { %v1357_v9 = vmul.f32 %v1229_v58, %v1101_v44  ;;  %v1757_v1 = vrot.slane %v1756_v43, 4  ;;  %v1796_v8 = vadd.f32 %v1795_v52, %v3420_v29  ;;  %v1950_v6 = vmul.f32 %v3320_v40, %v1358_v18  ;;  %v1232_v52 = vld [vmem:[#allocation7 + $0x150] sm:$0xff] }
 0x200   :  { %v1608_v19 = vadd.f32 %v1607_v48, %v1348_v60  ;;  %v2071_v30 = vadd.f32 %v2070_v42, %v1939_v13  ;;  %v1782_v39 = vrot.slane %v1781_v50, 1  ;;  %v909_v12 = vmul.f32 %v3151_v56, %v327_v16  ;;  %v1231_v42 = vld [vmem:[#allocation7 + $0x148] sm:$0xff] }
 0x201   :  { %v1622_v49 = vadd.f32 %v1621_v33, %v1357_v9  ;;  %v1949_v3 = vmul.f32 %v3303_v32, %v1357_v9  ;;  %2526 = vset.pattern.permute.xlu2 %v4511_v27  ;;  %2525 = vset.pattern.permute.xlu1 %v4512_v35  ;;  %v1758_v36 = vadd.f32 %v1757_v1, %v1756_v43 }
 0x202   :  { %v1609_v45 = vadd.f32 %v1608_v19, %v1349_v2  ;;  %v2072_v10 = vadd.f32 %v2071_v30, %v1940_v20  ;;  %v1797_v33 = vadd.f32 %v1796_v8, %v3425_v23  ;;  %v3437_v40 = vadd.f32 %v1782_v39, %v1781_v50  ;;  %v3439_v13 = vpop.permute.xlu0 %793 }
 0x203   :  { %v2086_v15 = vadd.f32 %v2085_v25, %v1949_v3  ;;  %v1623_v60 = vadd.f32 %v1622_v49, %v1358_v18  ;;  %v1759_v34 = vrot.slane %v1758_v36, 2  ;;  %4513 = vst [vmem:[#allocation49_spill] sm:$0xff] %v3439_v13  ;;  %v1104_v48 = vsel %vm3006_vm10, 0.0, %v909_v12 }
 0x204   :  { %v3431_v32 = vadd.f32 %v2072_v10, %v1941_v22  ;;  %v1798_v17 = vadd.f32 %v1797_v33, %v3433_v41  ;;  %2592 = vrcp.f32 %v3437_v40  ;;  %v1360_v9 = vmul.f32 %v1232_v52, %v1104_v48  ;;  %v4514_v52 = vld [vmem:[#allocation42_spill] sm:$0xff]  ;;  %v4515_v48 = vld [vmem:[#allocation27_spill] sm:$0xff] }
 0x205   :  { %v2087_v58 = vadd.f32 %v2086_v15, %v1950_v6  ;;  %v1760_v18 = vadd.f32 %v1759_v34, %v1758_v36  ;;  %v1610_v36 = vrot.slane %v1609_v45, 4 }
 0x206   :  { %v1799_v25 = vrot.slane %v1798_v17, 4  ;;  %v1952_v22 = vmul.f32 %v3368_v0, %v1360_v9  ;;  %v345_v39 = vpop.permute.xlu2 %344 }
 0x207   :  { %v1761_v19 = vrot.slane %v1760_v18, 1  ;;  %v912_v0 = vmul.f32 %v3151_v56, %v345_v39 }
 0x208   :  { %v1800_v43 = vadd.f32 %v1799_v25, %v1798_v17  ;;  %v1611_v25 = vadd.f32 %v1610_v36, %v1609_v45 }
 0x209   :  { %435 = vperm.xlu2 %2526, %v2830_v21   ;;  %429 = vperm.xlu1 %2525, %v2830_v21   ;;  %v3455_v15 = vadd.f32 %v1761_v19, %v1760_v18  ;;  %v1107_v19 = vsel %vm3346_vm15, 0.0, %v912_v0 }
 0x20a   :  { %v1801_v3 = vrot.slane %v1800_v43, 2  ;;  %v3452_v8 = vpop.eup %2592 }
 0x20b   :  { %v321_v2 = vpop.permute.xlu1 %320  ;;  %v2279_v34 = vmul.f32 %v3452_v8, %v3437_v40  ;;  %2594 = vrcp.f32 %v3455_v15  ;;  %vm2284_vm8 = vweird.f32 %v3452_v8 }
 0x20c   :  { %v908_v44 = vmul.f32 %v3151_v56, %v321_v2  ;;  %v333_v49 = vpop.permute.xlu0 %332  ;;  %v1802_v17 = vadd.f32 %v1801_v3, %v1800_v43  ;;  %v4517_v3 = vld [vmem:[#allocation44_spill] sm:$0xff] }
 0x20d   :  { %v910_v33 = vmul.f32 %v3151_v56, %v333_v49  ;;  %v1612_v49 = vrot.slane %v1611_v25, 2 }
 0x20e   :  { %v1103_v20 = vsel %vm3015_vm11, 0.0, %v908_v44  ;;  %v1803_v18 = vrot.slane %v1802_v17, 1  ;;  %v2280_v44 = vsub.f32 1.0, %v2279_v34 }
 0x20f   :  { %v1359_v50 = vmul.f32 %v1231_v42, %v1103_v20  ;;  %v1105_v12 = vsel %vm3048_vm13, 0.0, %v910_v33  ;;  %v881_v42 = vmul.f32 %v4515_v48, %v4514_v52  ;;  %vm2283_vm13 = vweird.f32 %v3437_v40 }
 0x210   :  { %v3485_v33 = vadd.f32 %v1803_v18, %v1802_v17  ;;  %v2281_v34 = vmul.f32 %v3452_v8, %v2280_v44  ;;  %v1613_v18 = vadd.f32 %v1612_v49, %v1611_v25 }
 0x211   :  { %v1624_v30 = vadd.f32 %v1623_v60, %v1359_v50  ;;  %v1951_v1 = vmul.f32 %v3350_v37, %v1359_v50  ;;  %2528 = vset.pattern.permute.xlu2 %v2848_v24  ;;  %2527 = vset.pattern.permute.xlu1 %v4497_v7  ;;  %v3458_v60 = vld [vmem:[#allocation2] sm:$0xff]  ;;  %v1235_v50 = vld [vmem:[#allocation7 + $0x168] sm:$0xff] }
 0x212   :  { %v846_v37 = vrot.slane %v3458_v60, 3  ;;  %v1363_v0 = vmul.f32 %v1235_v50, %v1107_v19  ;;  %v4520_v50 = vld [vmem:[#allocation12_spill] sm:$0xff]  ;;  %2596 = vrcp.f32 %v3485_v33  ;;  %v4521_v19 = vld [vmem:[#allocation29_spill] sm:$0xff] }
 0x213   :  { %v2088_v6 = vadd.f32 %v2087_v58, %v1951_v1  ;;  %v1625_v10 = vadd.f32 %v1624_v30, %v1360_v9  ;;  %v1233_v58 = vld [vmem:[#allocation7 + $0x158] sm:$0xff]  ;;  %v2074_v9 = vrot.slane %v3431_v32, 4  ;;  %v1234_v30 = vld [vmem:[#allocation7 + $0x160] sm:$0xff] }
 0x214   :  { %v3467_v2 = vperm.slane %v846_v37, 0  ;;  %v1361_v43 = vmul.f32 %v1233_v58, %v1105_v12  ;;  %v3476_v45 = vpop.permute.xlu0 %720  ;;  %v1076_v37 = vsel %vm3331_vm14, 0.0, %v881_v42  ;;  %v1204_v42 = vld [vmem:[#allocation7 + $0x70] sm:$0xff] }
 0x215   :  { %v2089_v16 = vadd.f32 %v2088_v6, %v1952_v22  ;;  %4516 = vst [vmem:[#allocation54_spill] sm:$0xff] %v3476_v45  ;;  %v4518_v6 = vld [vmem:[#allocation40_spill] sm:$0xff]  ;;  %v1332_v49 = vmul.f32 %v1204_v42, %v1076_v37 }
 0x216   :  { %v915_v22 = vmul.f32 %v3467_v2, %v4517_v3  ;;  %v882_v36 = vmul.f32 %v4515_v48, %v4518_v6  ;;  %v1626_v58 = vadd.f32 %v1625_v10, %v1361_v43  ;;  %v1953_v12 = vmul.f32 %v3386_v4, %v1361_v43  ;;  %v4519_v6 = vld [vmem:[#allocation14_spill] sm:$0xff] }
 0x217   :  { %v2282_v4 = vadd.f32 %v3452_v8, %v2281_v34  ;;  %v1955_v10 = vmul.f32 %v3420_v29, %v1363_v0  ;;  %v1205_v34 = vld [vmem:[#allocation7 + $0x78] sm:$0xff] }
 0x218   :  { %v2090_v3 = vadd.f32 %v2089_v16, %v1953_v12  ;;  %v2287_v16 = vand.u32 2147483647, %v3437_v40  ;;  %v1203_v12 = vld [vmem:[#allocation7 + $0x68] sm:$0xff] }
 0x219   :  { %447 = vperm.xlu2 %2528, %v2830_v21   ;;  %441 = vperm.xlu1 %2527, %v2830_v21   ;;  %v3479_v21 = vpop.eup %2594 }
 0x21a   :  { %v2264_v17 = vmul.f32 %v3479_v21, %v3455_v15  ;;  %v3523_v42 = vpop.eup %2596 }
 0x21b   :  { %v339_v20 = vpop.permute.xlu1 %338 }
 0x21c   :  { %v911_v1 = vmul.f32 %v3151_v56, %v339_v20  ;;  %v2075_v20 = vadd.f32 %v2074_v9, %v3431_v32  ;;  %v2289_v32 = vand.u32 2147483648, %v3437_v40  ;;  %v1238_v9 = vld [vmem:[#allocation7 + $0x180] sm:$0xff] }
 0x21e   :  { %v1106_v39 = vsel %vm3042_vm12, 0.0, %v911_v1  ;;  %vm3516_vm12 = vmor %vm2283_vm13, %vm2284_vm8  ;;  %v2290_v37 = vor.u32 1.1754944e-38, %v2289_v32  ;;  %vm2288_vm8 = vcmp.eq.f32.partialorder %v2287_v16, 8.507059e+37  ;;  %v2272_v16 = vand.u32 2147483647, %v3455_v15 }
 0x21f   :  { %v1362_v52 = vmul.f32 %v1234_v30, %v1106_v39  ;;  %v1077_v30 = vsel %vm3379_vm0, 0.0, %v882_v36  ;;  %v1614_v36 = vrot.slane %v1613_v18, 1  ;;  %v2286_v45 = vsel %vm3516_vm12, %v3452_v8, %v2282_v4 }
 0x220   :  { %v1333_v5 = vmul.f32 %v1205_v34, %v1077_v30  ;;  %v2291_v4 = vsel %vm2288_vm8, %v2290_v37, %v2286_v45  ;;  %vm2268_vm12 = vweird.f32 %v3455_v15  ;;  %v2274_v30 = vand.u32 2147483648, %v3455_v15  ;;  %v1236_v45 = vld [vmem:[#allocation7 + $0x170] sm:$0xff] }
 0x221   :  { %v1627_v1 = vadd.f32 %v1626_v58, %v1362_v52  ;;  %v1954_v44 = vmul.f32 %v3400_v53, %v1362_v52  ;;  %2531 = vset.pattern.permute.xlu2 %v4519_v6  ;;  %2530 = vset.pattern.permute.xlu1 %v4520_v50  ;;  %v1110_v53 = vsel %vm2890_vm2, 0.0, %v915_v22  ;;  %v2076_v58 = vrot.slane %v2075_v20, 2 }
 0x222   :  { %v2265_v52 = vsub.f32 1.0, %v2264_v17  ;;  %v1924_v17 = vmul.f32 %v3405_v47, %v1332_v49  ;;  %v2294_v47 = vmul.f32 %v3523_v42, %v3485_v33  ;;  %vm2269_vm2 = vweird.f32 %v3479_v21 }
 0x223   :  { %v2091_v25 = vadd.f32 %v2090_v3, %v1954_v44  ;;  %v3505_v43 = vadd.f32 %v1627_v1, %v1363_v0  ;;  %v357_v0 = vpop.permute.xlu2 %356  ;;  %v3525_v1 = vmul.f32 %v1238_v9, %v1110_v53  ;;  %v1615_v9 = vadd.f32 %v1614_v36, %v1613_v18 }
 0x224   :  { %v151_v39 = vpop.permute.xlu0 %150  ;;  %v2266_v32 = vmul.f32 %v3479_v21, %v2265_v52  ;;  %v2077_v53 = vadd.f32 %v2076_v58, %v2075_v20  ;;  %v1237_v20 = vld [vmem:[#allocation7 + $0x178] sm:$0xff]  ;;  %v1925_v52 = vmul.f32 %v3410_v46, %v1333_v5  ;;  %vm2255_vm13 = vcmp.eq.f32.partialorder %v3455_v15, 0.0 }
 0x225   :  { %v880_v22 = vmul.f32 %v4515_v48, %v151_v39  ;;  %v3521_v3 = vadd.f32 %v2091_v25, %v1955_v10  ;;  %v914_v48 = vmul.f32 %v3151_v56, %v357_v0  ;;  %v4524_v25 = vld [vmem:[#allocation26_spill] sm:$0xff]  ;;  %v4526_v0 = vld [vmem:[#allocation39_spill] sm:$0xff]  ;;  %vm4529_vm8 = vcmp.eq.f32.partialorder %v3437_v40, 0.0 }
 0x226   :  { %v4525_v39 = vld [vmem:[#allocation38_spill] sm:$0xff]  ;;  %v2078_v36 = vrot.slane %v2077_v53, 1 }
 0x227   :  { %v1075_v44 = vsel %vm3346_vm15, 0.0, %v880_v22  ;;  %v1109_v58 = vsel %vm3379_vm0, 0.0, %v914_v48  ;;  %v2267_v22 = vadd.f32 %v3479_v21, %v2266_v32  ;;  %vm3559_vm15 = vmor %vm2268_vm12, %vm2269_vm2  ;;  %vm3565_vm0 = vcmp.eq.f32.partialorder %v2272_v16, 8.507059e+37 }
 0x228   :  { %v1331_v10 = vmul.f32 %v1203_v12, %v1075_v44  ;;  %v1365_v13 = vmul.f32 %v1237_v20, %v1109_v58  ;;  %v4534_v20 = vmov 0.0   ;;  %vm4535_vm2 = vcmp.gt.f32.partialorder %v1615_v9, 0.0 }
 0x229   :  { %466 = vperm.xlu2 %2531, %v4524_v25   ;;  %460 = vperm.xlu1 %2530, %v4524_v25   ;;  %v3575_v58 = vsel %vm4535_vm2, 1.0, %v4534_v20  ;;  %v2079_v40 = vadd.f32 %v2078_v36, %v2077_v53  ;;  %v2271_v16 = vsel %vm3559_vm15, %v3479_v21, %v2267_v22  ;;  %vm2298_vm12 = vweird.f32 %v3485_v33 }
 0x22a   :  { %v1586_v29 = vadd.f32 %v4525_v39, %v1331_v10  ;;  %v1923_v8 = vmul.f32 %v3396_v28, %v1331_v10  ;;  %v2295_v39 = vsub.f32 1.0, %v2294_v47  ;;  %v4532_v47 = vld [vmem:[#allocation13_spill] sm:$0xff]  ;;  %vm2299_vm15 = vweird.f32 %v3523_v42 }
 0x22b   :  { %v351_v18 = vpop.permute.xlu1 %350 }
 0x22c   :  { %v1587_v34 = vadd.f32 %v1586_v29, %v1332_v49  ;;  %v2050_v28 = vadd.f32 %v4526_v0, %v1923_v8  ;;  %v913_v12 = vmul.f32 %v3151_v56, %v351_v18  ;;  %v4533_v18 = vld [vmem:[#allocation16_spill] sm:$0xff]  ;;  %v1957_v0 = vmul.f32 %v3433_v41, %v1365_v13 }
 0x22d   :  { %v2304_v41 = vand.u32 2147483648, %v3485_v33 }
 0x22e   :  { %v1588_v37 = vadd.f32 %v1587_v34, %v1333_v5  ;;  %v2051_v44 = vadd.f32 %v2050_v28, %v1924_v17  ;;  %v1108_v10 = vsel %vm3331_vm14, 0.0, %v913_v12  ;;  %v2384_v5 = vsel %vm4529_vm8, 0.0, %v2291_v4  ;;  %v3577_v4 = vld [vmem:[#allocation5 + $0x180] sm:$0xff]  ;;  %vm3597_vm8 = vmor %vm2298_vm12, %vm2299_vm15 }
 0x22f   :  { %v1364_v46 = vmul.f32 %v1236_v45, %v1108_v10  ;;  %v2275_v17 = vor.u32 1.1754944e-38, %v2274_v30  ;;  %v376_v45 = vpop.permute.xlu2 %375  ;;  %v1496_v10 = vld [vmem:[#allocation5 + $0x190] sm:$0xff]  ;;  %v2409_v49 = vmul.f32 %v2384_v5, %v2079_v40  ;;  %vm2240_vm15 = vcmask 1042434  }
 0x230   :  { %v1589_v48 = vrot.slane %v1588_v37, 4  ;;  %v2052_v32 = vadd.f32 %v2051_v44, %v1925_v52  ;;  %v2302_v44 = vand.u32 2147483647, %v3485_v33  ;;  %v1240_v40 = vld [vmem:[#allocation7 + $0x190] sm:$0xff] }
 0x231   :  { %v1629_v29 = vadd.f32 %v3505_v43, %v1364_v46  ;;  %v1956_v8 = vmul.f32 %v3425_v23, %v1364_v46  ;;  %2533 = vset.pattern.permute.xlu2 %v4532_v47  ;;  %2532 = vset.pattern.permute.xlu1 %v4533_v18  ;;  %v3582_v43 = vld [vmem:[#allocation5 + $0x188] sm:$0xff]  ;;  %v2296_v23 = vmul.f32 %v3523_v42, %v2295_v39 }
 0x232   :  { %v1590_v30 = vadd.f32 %v1589_v48, %v1588_v37  ;;  %v2053_v34 = vrot.slane %v2052_v32, 4  ;;  %v1805_v53 = vadd.f32 %v3582_v43, %v3577_v4  ;;  %v2276_v21 = vsel %vm3565_vm0, %v2275_v17, %v2271_v16 }
 0x233   :  { %v1630_v28 = vadd.f32 %v1629_v29, %v1365_v13  ;;  %v2093_v9 = vadd.f32 %v3521_v3, %v1956_v8  ;;  %v2297_v3 = vadd.f32 %v3523_v42, %v2296_v23  ;;  %v917_v39 = vmul.f32 %v3467_v2, %v376_v45 }
 0x234   :  { %v1591_v12 = vrot.slane %v1590_v30, 2  ;;  %v2054_v52 = vadd.f32 %v2053_v34, %v2052_v32  ;;  %v2383_v17 = vsel %vm2255_vm13, 0.0, %v2276_v21  ;;  %v1806_v8 = vadd.f32 %v1805_v53, %v1496_v10  ;;  %v1239_v21 = vld [vmem:[#allocation7 + $0x188] sm:$0xff] }
 0x235   :  { %v1631_v22 = vrot.slane %v1630_v28, 4  ;;  %v2094_v36 = vadd.f32 %v2093_v9, %v1957_v0  ;;  %vm2238_vm0 = vcmask 1041409   ;;  %v2305_v34 = vor.u32 1.1754944e-38, %v2304_v41 }
 0x236   :  { %v1592_v13 = vadd.f32 %v1591_v12, %v1590_v30  ;;  %v2055_v37 = vrot.slane %v2054_v52, 2  ;;  %v2301_v5 = vsel %vm3597_vm8, %v3523_v42, %v2297_v3  ;;  %vm3608_vm2 = vcmp.eq.f32.partialorder %v2302_v44, 8.507059e+37  ;;  %v1497_v12 = vld [vmem:[#allocation5 + $0x198] sm:$0xff] }
 0x237   :  { %v1632_v56 = vadd.f32 %v1631_v22, %v1630_v28  ;;  %v2095_v46 = vrot.slane %v2094_v36, 4  ;;  %v1112_v28 = vsel %vm2897_vm3, 0.0, %v917_v39  ;;  %vm2257_vm13 = vcmp.eq.f32.partialorder %v3485_v33, 0.0  ;;  %v4540_v39 = vld [vmem:[#allocation28_spill] sm:$0xff] }
 0x238   :  { %v1593_v32 = vrot.slane %v1592_v13, 1  ;;  %v2056_v29 = vadd.f32 %v2055_v37, %v2054_v52  ;;  %v1807_v42 = vadd.f32 %v1806_v8, %v1497_v12  ;;  %v2306_v37 = vsel %vm3608_vm2, %v2305_v34, %v2301_v5  ;;  %v1498_v8 = vld [vmem:[#allocation5 + $0x1a0] sm:$0xff] }
 0x239   :  { %v1633_v16 = vrot.slane %v1632_v56, 2  ;;  %v2096_v30 = vadd.f32 %v2095_v46, %v2094_v36  ;;  %478 = vperm.xlu2 %2533, %v4524_v25   ;;  %472 = vperm.xlu1 %2532, %v4524_v25   ;;  %v1368_v3 = vmul.f32 %v1240_v40, %v1112_v28  ;;  %v1958_v48 = vmul.f32 %v3577_v4, %v3525_v1  ;;  %v4541_v4 = vld [vmem:[#allocation18_spill] sm:$0xff] }
 0x23a   :  { %v1594_v23 = vadd.f32 %v1593_v32, %v1592_v13  ;;  %v2057_v0 = vrot.slane %v2056_v29, 1  ;;  %v2385_v34 = vsel %vm2257_vm13, 0.0, %v2306_v37  ;;  %v1501_v37 = vld [vmem:[#allocation5 + $0x1b8] sm:$0xff]  ;;  %vm4551_vm2 = vnez %v4471_v57 }
 0x23b   :  { %v1634_v9 = vadd.f32 %v1633_v16, %v1632_v56  ;;  %v2097_v53 = vrot.slane %v2096_v30, 2  ;;  %v370_v45 = vpop.permute.xlu1 %369  ;;  %v1960_v5 = vmul.f32 %v1496_v10, %v1368_v3  ;;  %vm4552_vm13 = vnez %v4473_v62 }
 0x23c   :  { %v2058_v52 = vadd.f32 %v2057_v0, %v2056_v29  ;;  %vm2206_vm12 = vcmp.gt.f32.partialorder %v1594_v23, 0.0  ;;  %v916_v22 = vmul.f32 %v3467_v2, %v370_v45 }
 0x23d   :  { %v1635_v36 = vrot.slane %v1634_v9, 1  ;;  %v2098_v41 = vadd.f32 %v2097_v53, %v2096_v30  ;;  %v2455_v13 = vsel %vm2206_vm12, 1.0, %v4534_v20  ;;  %v1808_v30 = vadd.f32 %v1807_v42, %v1498_v8  ;;  %v388_v53 = vpop.permute.xlu2 %387 }
 0x23e   :  { %v2408_v44 = vmul.f32 %v2383_v17, %v2058_v52  ;;  %v1111_v56 = vsel %vm2884_vm1, 0.0, %v916_v22  ;;  %v2239_v46 = vsel %vm2238_vm0, %v3575_v58, %v2455_v13  ;;  %v4542_v22 = vld [vmem:[#allocation45_spill] sm:$0xff]  ;;  %vm4555_vm12 = vnez %v4507_v31 }
 0x23f   :  { %v1636_v32 = vadd.f32 %v1635_v36, %v1634_v9  ;;  %v2099_v29 = vrot.slane %v2098_v41, 1  ;;  %v1367_v16 = vmul.f32 %v1239_v21, %v1111_v56  ;;  %v1500_v21 = vld [vmem:[#allocation5 + $0x1b0] sm:$0xff]  ;;  %v920_v10 = vmul.f32 %v3467_v2, %v4542_v22  ;;  %v1243_v56 = vld [vmem:[#allocation7 + $0x1a8] sm:$0xff] }
 0x240   :  { %v2424_v17 = vsel %vm2238_vm0, %v2409_v49, %v2408_v44  ;;  %v1499_v49 = vld [vmem:[#allocation5 + $0x1a8] sm:$0xff]  ;;  %vm4550_vm0 = vnez %v4459_v54 }
 0x241   :  { %v2100_v23 = vadd.f32 %v2099_v29, %v2098_v41  ;;  %vm2208_vm8 = vcmp.gt.f32.partialorder %v1636_v32, 0.0  ;;  %v1637_v0 = vadd.f32 %v1367_v16, %v3525_v1  ;;  %v1959_v58 = vmul.f32 %v3582_v43, %v1367_v16  ;;  %2536 = vset.pattern.permute.xlu2 %v2794_v14  ;;  %2535 = vset.pattern.permute.xlu1 %v4541_v4  ;;  %v1242_v41 = vld [vmem:[#allocation7 + $0x1a0] sm:$0xff] }
 0x242   :  { %v2457_v15 = vsel %vm2208_vm8, 1.0, %v4534_v20  ;;  %v1809_v52 = vadd.f32 %v1808_v30, %v1499_v49  ;;  %v919_v43 = vmul.f32 %v3467_v2, %v388_v53  ;;  %v1306_v29 = vld [vmem:[#allocation7 + $0x3a0] sm:$0xff] }
 0x243   :  { %v2101_v40 = vadd.f32 %v1959_v58, %v1958_v48  ;;  %v1638_v28 = vadd.f32 %v1637_v0, %v1368_v3  ;;  %v3634_v33 = vsel %vm2240_vm15, %v2457_v15, %v2239_v46  ;;  %v2410_v9 = vmul.f32 %v2385_v34, %v2100_v23  ;;  %v1241_v3 = vld [vmem:[#allocation7 + $0x198] sm:$0xff]  ;;  %v3651_v23 = vld [vmem:[#allocation5 + $0x1c0] sm:$0xff]  ;;  %v4546_v15 = vld [vmem:[#allocation20_spill] sm:$0xff] }
 0x244   :  { %v1810_v42 = vadd.f32 %v1809_v52, %v1500_v21  ;;  %v1114_v13 = vsel %vm2931_vm5, 0.0, %v919_v43  ;;  %v1115_v48 = vsel %vm2938_vm6, 0.0, %v920_v10  ;;  %v1503_v43 = vld [vmem:[#allocation5 + $0x1c8] sm:$0xff] }
 0x245   :  { %v2102_v45 = vadd.f32 %v2101_v40, %v1960_v5  ;;  %v3637_v1 = vsel %vm2240_vm15, %v2410_v9, %v2424_v17  ;;  %v1370_v30 = vmul.f32 %v1242_v41, %v1114_v13  ;;  %v1371_v17 = vmul.f32 %v1243_v56, %v1115_v48  ;;  %v4545_v5 = vld [vmem:[#allocation19_spill] sm:$0xff]  ;;  %v406_v10 = vpop.permute.xlu2 %405  ;;  %v1245_v56 = vld [vmem:[#allocation7 + $0x1b8] sm:$0xff] }
 0x246   :  { %v1811_v32 = vadd.f32 %v1810_v42, %v1501_v37  ;;  %vm4556_vm15 = vnez %v4499_v55 }
 0x247   :  { %v1962_v9 = vmul.f32 %v1498_v8, %v1370_v30  ;;  %v1963_v22 = vmul.f32 %v1499_v49, %v1371_v17 }
 0x248   :  { %v1812_v40 = vadd.f32 %v1811_v32, %v3651_v23 }
 0x249   :  { %496 = vperm.xlu2 %2536, %v4524_v25   ;;  %490 = vperm.xlu1 %2535, %v4524_v25  }
 0x24a   :  { %v1813_v41 = vadd.f32 %v1812_v40, %v1503_v43 }
 0x24b   :  { %v382_v36 = vpop.permute.xlu1 %381 }
 0x24c   :  { %v918_v44 = vmul.f32 %v3467_v2, %v382_v36 }
 0x24e   :  { %v1113_v16 = vsel %vm2917_vm4, 0.0, %v918_v44 }
 0x24f   :  { %v1369_v34 = vmul.f32 %v1241_v3, %v1113_v16  ;;  %v1504_v3 = vld [vmem:[#allocation5 + $0x1d0] sm:$0xff] }
 0x250   :  { %v1814_v44 = vadd.f32 %v1813_v41, %v1504_v3 }
 0x251   :  { %v1639_v0 = vadd.f32 %v1638_v28, %v1369_v34  ;;  %v1961_v58 = vmul.f32 %v1497_v12, %v1369_v34  ;;  %2538 = vset.pattern.permute.xlu2 %v4545_v5  ;;  %2537 = vset.pattern.permute.xlu1 %v4546_v15  ;;  %v922_v28 = vmul.f32 %v3467_v2, %v406_v10  ;;  %v3659_v12 = vld [vmem:[#allocation5 + $0x1d8] sm:$0xff] }
 0x252   :  { %v1815_v32 = vadd.f32 %v1814_v44, %v3659_v12 }
 0x253   :  { %v1640_v53 = vadd.f32 %v1639_v0, %v1370_v30  ;;  %v2103_v52 = vadd.f32 %v2102_v45, %v1961_v58  ;;  %v1117_v49 = vsel %vm2979_vm9, 0.0, %v922_v28  ;;  %v1244_v45 = vld [vmem:[#allocation7 + $0x1b0] sm:$0xff]  ;;  %v3667_v0 = vld [vmem:[#allocation5 + $0x1e0] sm:$0xff] }
 0x254   :  { %v1373_v34 = vmul.f32 %v1245_v56, %v1117_v49  ;;  %v1816_v58 = vadd.f32 %v1815_v32, %v3667_v0  ;;  %v3675_v28 = vld [vmem:[#allocation5 + $0x1f0] sm:$0xff]  ;;  %v3678_v49 = vld [vmem:[#allocation5 + $0x1f8] sm:$0xff]  ;;  %v1247_v32 = vld [vmem:[#allocation7 + $0x1c8] sm:$0xff] }
 0x255   :  { %v2104_v42 = vadd.f32 %v2103_v52, %v1962_v9  ;;  %v1641_v36 = vadd.f32 %v1640_v53, %v1371_v17  ;;  %v4548_v53 = vld [vmem:[#allocation21_spill] sm:$0xff]  ;;  %v3672_v52 = vld [vmem:[#allocation5 + $0x1e8] sm:$0xff] }
 0x256   :  { %v1965_v10 = vmul.f32 %v1501_v37, %v1373_v34 }
 0x257   :  { %v2105_v13 = vadd.f32 %v2104_v42, %v1963_v22  ;;  %v1817_v22 = vadd.f32 %v1816_v58, %v3672_v52  ;;  %v1248_v58 = vld [vmem:[#allocation7 + $0x1d0] sm:$0xff] }
 0x259   :  { %508 = vperm.xlu2 %2538, %v4524_v25   ;;  %502 = vperm.xlu1 %2537, %v4524_v25   ;;  %v1818_v44 = vadd.f32 %v1817_v22, %v3675_v28 }
 0x25b   :  { %v400_v8 = vpop.permute.xlu1 %399 }
 0x25c   :  { %v921_v48 = vmul.f32 %v3467_v2, %v400_v8  ;;  %v418_v8 = vpop.permute.xlu2 %417 }
 0x25e   :  { %v1116_v30 = vsel %vm2953_vm7, 0.0, %v921_v48 }
 0x25f   :  { %v1372_v17 = vmul.f32 %v1244_v45, %v1116_v30  ;;  %v4549_v45 = vld [vmem:[#allocation46_spill] sm:$0xff] }
 0x260   :  { %v925_v37 = vmul.f32 %v3467_v2, %v4549_v45 }
 0x261   :  { %v1642_v40 = vadd.f32 %v1641_v36, %v1372_v17  ;;  %v1964_v9 = vmul.f32 %v1500_v21, %v1372_v17  ;;  %2541 = vset.pattern.permute.xlu2 %v4512_v35  ;;  %2540 = vset.pattern.permute.xlu1 %v4548_v53  ;;  %v1819_v21 = vadd.f32 %v1818_v44, %v3678_v49 }
 0x262   :  { %v924_v36 = vmul.f32 %v3467_v2, %v418_v8 }
 0x263   :  { %v2106_v42 = vadd.f32 %v2105_v13, %v1964_v9  ;;  %v1643_v41 = vadd.f32 %v1642_v40, %v1373_v34  ;;  %v1820_v48 = vrot.slane %v1819_v21, 4  ;;  %v1246_v34 = vld [vmem:[#allocation7 + $0x1c0] sm:$0xff]  ;;  %v1120_v40 = vsel %vm3006_vm10, 0.0, %v925_v37 }
 0x264   :  { %v1119_v30 = vsel %vm3015_vm11, 0.0, %v924_v36  ;;  %v1376_v44 = vmul.f32 %v1248_v58, %v1120_v40  ;;  %v436_v37 = vpop.permute.xlu2 %435 }
 0x265   :  { %v2107_v56 = vadd.f32 %v2106_v42, %v1965_v10  ;;  %v1375_v22 = vmul.f32 %v1247_v32, %v1119_v30  ;;  %v1821_v42 = vadd.f32 %v1820_v48, %v1819_v21  ;;  %v927_v21 = vmul.f32 %v3467_v2, %v436_v37  ;;  %v1250_v48 = vld [vmem:[#allocation7 + $0x1e0] sm:$0xff] }
 0x266   :  { %v1968_v24 = vmul.f32 %v1504_v3, %v1376_v44 }
 0x267   :  { %v1967_v36 = vmul.f32 %v1503_v43, %v1375_v22  ;;  %v1822_v47 = vrot.slane %v1821_v42, 2  ;;  %v1122_v43 = vsel %vm4551_vm2, 0.0, %v927_v21 }
 0x269   :  { %526 = vperm.xlu2 %2541, %v4524_v25   ;;  %520 = vperm.xlu1 %2540, %v4524_v25   ;;  %v1823_v32 = vadd.f32 %v1822_v47, %v1821_v42 }
 0x26b   :  { %v412_v13 = vpop.permute.xlu1 %411 }
 0x26c   :  { %v923_v17 = vmul.f32 %v3467_v2, %v412_v13 }
 0x26e   :  { %v1118_v9 = vsel %vm4550_vm0, 0.0, %v923_v17 }
 0x26f   :  { %v1374_v10 = vmul.f32 %v1246_v34, %v1118_v9 }
 0x271   :  { %v1644_v8 = vadd.f32 %v1643_v41, %v1374_v10  ;;  %v1966_v45 = vmul.f32 %v3651_v23, %v1374_v10  ;;  %2543 = vset.pattern.permute.xlu2 %v4497_v7  ;;  %2542 = vset.pattern.permute.xlu1 %v4511_v27  ;;  %v1824_v41 = vrot.slane %v1823_v32, 1 }
 0x273   :  { %v1645_v13 = vadd.f32 %v1644_v8, %v1375_v22  ;;  %v2108_v5 = vadd.f32 %v2107_v56, %v1966_v45  ;;  %v1249_v56 = vld [vmem:[#allocation7 + $0x1d8] sm:$0xff]  ;;  %v3704_v47 = vadd.f32 %v1824_v41, %v1823_v32  ;;  %v448_v22 = vpop.permute.xlu2 %447 }
 0x274   :  { %v929_v42 = vmul.f32 %v3467_v2, %v448_v22  ;;  %v4553_v8 = vld [vmem:[#allocation34_spill] sm:$0xff] }
 0x275   :  { %v2109_v63 = vadd.f32 %v2108_v5, %v1967_v36  ;;  %v1646_v35 = vadd.f32 %v1645_v13, %v1376_v44  ;;  %2598 = vrcp.f32 %v3704_v47  ;;  %v1252_v36 = vld [vmem:[#allocation7 + $0x1f0] sm:$0xff]  ;;  %v1251_v13 = vld [vmem:[#allocation7 + $0x1e8] sm:$0xff]  ;;  %v1253_v32 = vld [vmem:[#allocation7 + $0x1f8] sm:$0xff]  ;;  %vm2313_vm8 = vweird.f32 %v3704_v47 }
 0x277   :  { %v2110_v17 = vadd.f32 %v2109_v63, %v1968_v24  ;;  %v1378_v24 = vmul.f32 %v1250_v48, %v1122_v43 }
 0x279   :  { %538 = vperm.xlu2 %2543, %v4524_v25   ;;  %532 = vperm.xlu1 %2542, %v4524_v25   ;;  %v1970_v58 = vmul.f32 %v3667_v0, %v1378_v24  ;;  %v1124_v0 = vsel %vm3331_vm14, 0.0, %v929_v42  ;;  %v2319_v42 = vand.u32 2147483648, %v3704_v47 }
 0x27a   :  { %v1380_v41 = vmul.f32 %v1252_v36, %v1124_v0  ;;  %v1513_v36 = vld [vmem:[#allocation5 + $0x218] sm:$0xff] }
 0x27b   :  { %v430_v23 = vpop.permute.xlu1 %429  ;;  %v3712_v44 = vpop.eup %2598 }
 0x27c   :  { %v926_v3 = vmul.f32 %v3467_v2, %v430_v23  ;;  %v847_v23 = vrot.slane %v3458_v60, 4 }
 0x27e   :  { %v1121_v5 = vsel %vm4552_vm13, 0.0, %v926_v3 }
 0x27f   :  { %v1377_v63 = vmul.f32 %v1249_v56, %v1121_v5 }
 0x281   :  { %v1647_v30 = vadd.f32 %v1646_v35, %v1377_v63  ;;  %v1969_v34 = vmul.f32 %v3659_v12, %v1377_v63  ;;  %2546 = vset.pattern.permute.xlu2 %v4520_v50  ;;  %2545 = vset.pattern.permute.xlu1 %v4505_v11  ;;  %v4554_v35 = vld [vmem:[#allocation47_spill] sm:$0xff]  ;;  %v1972_v63 = vmul.f32 %v3675_v28, %v1380_v41 }
 0x282   :  { %v930_v12 = vmul.f32 %v3467_v2, %v4554_v35  ;;  %v1255_v35 = vld [vmem:[#allocation7 + $0x208] sm:$0xff] }
 0x283   :  { %v2111_v40 = vadd.f32 %v2110_v17, %v1969_v34  ;;  %v1648_v9 = vadd.f32 %v1647_v30, %v1378_v24  ;;  %v2309_v17 = vmul.f32 %v3712_v44, %v3704_v47  ;;  %v3731_v24 = vperm.slane %v847_v23, 0 }
 0x284   :  { %v1125_v21 = vsel %vm4555_vm12, 0.0, %v930_v12  ;;  %vm2314_vm12 = vweird.f32 %v3712_v44 }
 0x285   :  { %v2112_v10 = vadd.f32 %v2111_v40, %v1970_v58  ;;  %v2310_v43 = vsub.f32 1.0, %v2309_v17  ;;  %v1381_v56 = vmul.f32 %v1253_v32, %v1125_v21  ;;  %vm3746_vm2 = vmor %vm2313_vm8, %vm2314_vm12  ;;  %v2320_v17 = vor.u32 1.1754944e-38, %v2319_v42  ;;  %v1254_v21 = vld [vmem:[#allocation7 + $0x200] sm:$0xff] }
 0x286   :  { %vm4559_vm12 = vnez %v4521_v19  ;;  %vm2258_vm8 = vcmp.eq.f32.partialorder %v3704_v47, 0.0 }
 0x287   :  { %v2311_v60 = vmul.f32 %v3712_v44, %v2310_v43  ;;  %v1973_v58 = vmul.f32 %v3678_v49, %v1381_v56 }
 0x289   :  { %557 = vperm.xlu2 %2546, %v4553_v8   ;;  %550 = vperm.xlu1 %2545, %v4524_v25   ;;  %v2312_v28 = vadd.f32 %v3712_v44, %v2311_v60 }
 0x28b   :  { %v442_v45 = vpop.permute.xlu1 %441  ;;  %v2316_v23 = vsel %vm3746_vm2, %v3712_v44, %v2312_v28  ;;  %v4560_v44 = vld [vmem:[#allocation15_spill] sm:$0xff]  ;;  %vm2242_vm2 = vcmask 1043459  }
 0x28c   :  { %v928_v37 = vmul.f32 %v3467_v2, %v442_v45  ;;  %v467_v2 = vpop.permute.xlu2 %466 }
 0x28d   :  { %v932_v40 = vmul.f32 %v3731_v24, %v467_v2 }
 0x28e   :  { %v1123_v25 = vsel %vm4556_vm15, 0.0, %v928_v37 }
 0x28f   :  { %v1379_v48 = vmul.f32 %v1251_v13, %v1123_v25  ;;  %v1127_v49 = vsel %vm2884_vm1, 0.0, %v932_v40 }
 0x290   :  { %v1383_v32 = vmul.f32 %v1255_v35, %v1127_v49 }
 0x291   :  { %v1649_v3 = vadd.f32 %v1648_v9, %v1379_v48  ;;  %v1971_v5 = vmul.f32 %v3672_v52, %v1379_v48  ;;  %2548 = vset.pattern.permute.xlu2 %v4533_v18  ;;  %2547 = vset.pattern.permute.xlu1 %v4519_v6 }
 0x293   :  { %v1650_v30 = vadd.f32 %v1649_v3, %v1380_v41  ;;  %v2113_v34 = vadd.f32 %v2112_v10, %v1971_v5  ;;  %v2317_v10 = vand.u32 2147483647, %v3704_v47  ;;  %v1511_v41 = vld [vmem:[#allocation5 + $0x208] sm:$0xff]  ;;  %v1512_v47 = vld [vmem:[#allocation5 + $0x210] sm:$0xff] }
 0x295   :  { %v1651_v9 = vadd.f32 %v1650_v30, %v1381_v56  ;;  %v2114_v22 = vadd.f32 %v2113_v34, %v1972_v63  ;;  %vm2318_vm1 = vcmp.eq.f32.partialorder %v2317_v10, 8.507059e+37  ;;  %v1510_v56 = vld [vmem:[#allocation5 + $0x200] sm:$0xff]  ;;  %v1975_v34 = vmul.f32 %v1511_v41, %v1383_v32  ;;  %v479_v10 = vpop.permute.xlu2 %478 }
 0x296   :  { %v2321_v30 = vsel %vm2318_vm1, %v2320_v17, %v2316_v23  ;;  %v1826_v60 = vadd.f32 %v1511_v41, %v1510_v56  ;;  %v1256_v23 = vld [vmem:[#allocation7 + $0x210] sm:$0xff]  ;;  %v1258_v41 = vld [vmem:[#allocation7 + $0x220] sm:$0xff]  ;;  %vm4568_vm1 = vnez %v4471_v57 }
 0x297   :  { %v1652_v18 = vrot.slane %v1651_v9, 4  ;;  %v2115_v52 = vadd.f32 %v2114_v22, %v1973_v58 }
 0x298   :  { %v1827_v35 = vadd.f32 %v1826_v60, %v1512_v47 }
 0x299   :  { %v1653_v12 = vadd.f32 %v1652_v18, %v1651_v9  ;;  %v2116_v45 = vrot.slane %v2115_v52, 4  ;;  %569 = vperm.xlu2 %2548, %v4553_v8   ;;  %563 = vperm.xlu1 %2547, %v4553_v8   ;;  %v2386_v18 = vsel %vm2258_vm8, 0.0, %v2321_v30 }
 0x29a   :  { %v1828_v17 = vadd.f32 %v1827_v35, %v1513_v36 }
 0x29b   :  { %v1654_v0 = vrot.slane %v1653_v12, 2  ;;  %v2117_v13 = vadd.f32 %v2116_v45, %v2115_v52  ;;  %v461_v37 = vpop.permute.xlu1 %460 }
 0x29c   :  { %v931_v25 = vmul.f32 %v3731_v24, %v461_v37 }
 0x29d   :  { %v1655_v48 = vadd.f32 %v1654_v0, %v1653_v12  ;;  %v2118_v43 = vrot.slane %v2117_v13, 2  ;;  %v934_v0 = vmul.f32 %v3731_v24, %v479_v10 }
 0x29e   :  { %v1126_v3 = vsel %vm4559_vm12, 0.0, %v931_v25  ;;  %v1257_v25 = vld [vmem:[#allocation7 + $0x218] sm:$0xff] }
 0x29f   :  { %v2119_v5 = vadd.f32 %v2118_v43, %v2117_v13  ;;  %v1382_v2 = vmul.f32 %v1254_v21, %v1126_v3  ;;  %v1656_v63 = vrot.slane %v1655_v48, 1  ;;  %v4561_v13 = vld [vmem:[#allocation48_spill] sm:$0xff]  ;;  %v1514_v21 = vld [vmem:[#allocation5 + $0x220] sm:$0xff] }
 0x2a0   :  { %v935_v37 = vmul.f32 %v3731_v24, %v4561_v13  ;;  %v1829_v43 = vadd.f32 %v1828_v17, %v1514_v21  ;;  %v1259_v17 = vld [vmem:[#allocation7 + $0x228] sm:$0xff] }
 0x2a1   :  { %v2120_v58 = vrot.slane %v2119_v5, 1  ;;  %v1658_v40 = vadd.f32 %v1383_v32, %v1382_v2  ;;  %v1974_v9 = vmul.f32 %v1510_v56, %v1382_v2  ;;  %2551 = vset.pattern.permute.xlu2 %v4541_v4  ;;  %2550 = vset.pattern.permute.xlu1 %v4560_v44  ;;  %v1657_v22 = vadd.f32 %v1656_v63, %v1655_v48  ;;  %v1515_v63 = vld [vmem:[#allocation5 + $0x228] sm:$0xff] }
 0x2a2   :  { %v1130_v48 = vsel %vm2931_vm5, 0.0, %v935_v37  ;;  %v1830_v60 = vadd.f32 %v1829_v43, %v1515_v63  ;;  %v1517_v37 = vld [vmem:[#allocation5 + $0x238] sm:$0xff] }
 0x2a3   :  { %v2122_v52 = vadd.f32 %v1975_v34, %v1974_v9  ;;  %vm2209_vm12 = vcmp.gt.f32.partialorder %v1657_v22, 0.0  ;;  %v2121_v42 = vadd.f32 %v2120_v58, %v2119_v5  ;;  %v1386_v2 = vmul.f32 %v1258_v41, %v1130_v48  ;;  %v4562_v43 = vld [vmem:[#allocation22_spill] sm:$0xff] }
 0x2a4   :  { %v2458_v28 = vsel %vm2209_vm12, 1.0, %v4534_v20  ;;  %vm4570_vm12 = vnez %v4507_v31 }
 0x2a5   :  { %v3761_v49 = vsel %vm2242_vm2, %v2458_v28, %v3634_v33  ;;  %v2411_v12 = vmul.f32 %v2386_v18, %v2121_v42  ;;  %v1129_v33 = vsel %vm2917_vm4, 0.0, %v934_v0  ;;  %v1516_v18 = vld [vmem:[#allocation5 + $0x230] sm:$0xff]  ;;  %v1978_v42 = vmul.f32 %v1514_v21, %v1386_v2  ;;  %v497_v28 = vpop.permute.xlu2 %496 }
 0x2a6   :  { %v1385_v3 = vmul.f32 %v1257_v25, %v1129_v33  ;;  %v937_v13 = vmul.f32 %v3731_v24, %v497_v28  ;;  %v4563_v28 = vld [vmem:[#allocation50_spill] sm:$0xff] }
 0x2a7   :  { %v3764_v45 = vsel %vm2242_vm2, %v2411_v12, %v3637_v1  ;;  %v1831_v12 = vadd.f32 %v1830_v60, %v1516_v18 }
 0x2a8   :  { %v1977_v58 = vmul.f32 %v1513_v36, %v1385_v3  ;;  %v1518_v36 = vld [vmem:[#allocation5 + $0x240] sm:$0xff] }
 0x2a9   :  { %587 = vperm.xlu2 %2551, %v4553_v8   ;;  %581 = vperm.xlu1 %2550, %v4553_v8  }
 0x2ab   :  { %v473_v32 = vpop.permute.xlu1 %472 }
 0x2ac   :  { %v933_v1 = vmul.f32 %v3731_v24, %v473_v32 }
 0x2ae   :  { %v1128_v56 = vsel %vm2897_vm3, 0.0, %v933_v1  ;;  %v1519_v1 = vld [vmem:[#allocation5 + $0x248] sm:$0xff] }
 0x2af   :  { %v1384_v5 = vmul.f32 %v1256_v23, %v1128_v56 }
 0x2b1   :  { %v1659_v30 = vadd.f32 %v1658_v40, %v1384_v5  ;;  %v1976_v34 = vmul.f32 %v1512_v47, %v1384_v5  ;;  %2553 = vset.pattern.permute.xlu2 %v4546_v15  ;;  %2552 = vset.pattern.permute.xlu1 %v2794_v14  ;;  %v1832_v15 = vadd.f32 %v1831_v12, %v1517_v37  ;;  %v1260_v47 = vld [vmem:[#allocation7 + $0x230] sm:$0xff]  ;;  %v1262_v12 = vld [vmem:[#allocation7 + $0x240] sm:$0xff] }
 0x2b3   :  { %v1660_v9 = vadd.f32 %v1659_v30, %v1385_v3  ;;  %v2123_v22 = vadd.f32 %v2122_v52, %v1976_v34  ;;  %v1132_v52 = vsel %vm2953_vm7, 0.0, %v937_v13  ;;  %v1833_v21 = vadd.f32 %v1832_v15, %v1518_v36  ;;  %v1520_v30 = vld [vmem:[#allocation5 + $0x250] sm:$0xff]  ;;  %v509_v34 = vpop.permute.xlu2 %508  ;;  %v1261_v13 = vld [vmem:[#allocation7 + $0x238] sm:$0xff] }
 0x2b4   :  { %v1388_v33 = vmul.f32 %v1260_v47, %v1132_v52  ;;  %v1263_v52 = vld [vmem:[#allocation7 + $0x248] sm:$0xff] }
 0x2b5   :  { %v2124_v10 = vadd.f32 %v2123_v22, %v1977_v58  ;;  %v1661_v35 = vadd.f32 %v1660_v9, %v1386_v2  ;;  %v1834_v56 = vadd.f32 %v1833_v21, %v1519_v1  ;;  %v939_v9 = vmul.f32 %v3731_v24, %v509_v34  ;;  %v1521_v22 = vld [vmem:[#allocation5 + $0x258] sm:$0xff]  ;;  %v3808_v21 = vld [vmem:[#allocation5 + $0x270] sm:$0xff] }
 0x2b6   :  { %v1980_v3 = vmul.f32 %v1516_v18, %v1388_v33 }
 0x2b7   :  { %v2125_v0 = vadd.f32 %v2124_v10, %v1978_v42  ;;  %v1835_v58 = vadd.f32 %v1834_v56, %v1520_v30  ;;  %v940_v10 = vmul.f32 %v3731_v24, %v4563_v28 }
 0x2b9   :  { %599 = vperm.xlu2 %2553, %v4553_v8   ;;  %593 = vperm.xlu1 %2552, %v4553_v8   ;;  %v1836_v42 = vadd.f32 %v1835_v58, %v1521_v22 }
 0x2bb   :  { %v491_v40 = vpop.permute.xlu1 %490 }
 0x2bc   :  { %v936_v32 = vmul.f32 %v3731_v24, %v491_v40  ;;  %v3801_v40 = vld [vmem:[#allocation5 + $0x268] sm:$0xff] }
 0x2be   :  { %v1131_v25 = vsel %vm2938_vm6, 0.0, %v936_v32 }
 0x2bf   :  { %v1387_v23 = vmul.f32 %v1259_v17, %v1131_v25  ;;  %v1135_v17 = vsel %vm3015_vm11, 0.0, %v940_v10 }
 0x2c1   :  { %v1662_v41 = vadd.f32 %v1661_v35, %v1387_v23  ;;  %v1979_v48 = vmul.f32 %v1515_v63, %v1387_v23  ;;  %2557 = vset.pattern.permute.xlu2 %v4548_v53  ;;  %2556 = vset.pattern.permute.xlu1 %v4562_v43  ;;  %v3793_v63 = vld [vmem:[#allocation5 + $0x260] sm:$0xff] }
 0x2c2   :  { %v1837_v35 = vadd.f32 %v1836_v42, %v3793_v63 }
 0x2c3   :  { %v2126_v5 = vadd.f32 %v2125_v0, %v1979_v48  ;;  %v1663_v2 = vadd.f32 %v1662_v41, %v1388_v33  ;;  %v1134_v0 = vsel %vm4550_vm0, 0.0, %v939_v9  ;;  %v1391_v41 = vmul.f32 %v1263_v52, %v1135_v17  ;;  %v527_v10 = vpop.permute.xlu2 %526 }
 0x2c4   :  { %v1838_v47 = vadd.f32 %v1837_v35, %v3801_v40  ;;  %v1390_v25 = vmul.f32 %v1262_v12, %v1134_v0 }
 0x2c5   :  { %v2127_v60 = vadd.f32 %v2126_v5, %v1980_v3  ;;  %v4564_v3 = vld [vmem:[#allocation23_spill] sm:$0xff]  ;;  %v3813_v5 = vld [vmem:[#allocation5 + $0x278] sm:$0xff]  ;;  %v1983_v28 = vmul.f32 %v1519_v1, %v1391_v41 }
 0x2c6   :  { %v1839_v23 = vadd.f32 %v1838_v47, %v3808_v21  ;;  %v1982_v34 = vmul.f32 %v1518_v36, %v1390_v25 }
 0x2c8   :  { %v1840_v42 = vadd.f32 %v1839_v23, %v3813_v5 }
 0x2c9   :  { %617 = vperm.xlu2 %2557, %v4553_v8   ;;  %611 = vperm.xlu1 %2556, %v4553_v8  }
 0x2ca   :  { %v1841_v0 = vrot.slane %v1840_v42, 4 }
 0x2cb   :  { %v503_v18 = vpop.permute.xlu1 %502 }
 0x2cc   :  { %v938_v15 = vmul.f32 %v3731_v24, %v503_v18 }
 0x2ce   :  { %v1133_v32 = vsel %vm2979_vm9, 0.0, %v938_v15  ;;  %v1265_v15 = vld [vmem:[#allocation7 + $0x258] sm:$0xff] }
 0x2cf   :  { %v1389_v33 = vmul.f32 %v1261_v13, %v1133_v32  ;;  %v1842_v13 = vadd.f32 %v1841_v0, %v1840_v42 }
 0x2d1   :  { %v1664_v48 = vadd.f32 %v1663_v2, %v1389_v33  ;;  %v1981_v56 = vmul.f32 %v1517_v37, %v1389_v33  ;;  %2559 = vset.pattern.permute.xlu2 %v4511_v27  ;;  %2558 = vset.pattern.permute.xlu1 %v4564_v3  ;;  %v942_v2 = vmul.f32 %v3731_v24, %v527_v10 }
 0x2d3   :  { %v1665_v58 = vadd.f32 %v1664_v48, %v1390_v25  ;;  %v2128_v9 = vadd.f32 %v2127_v60, %v1981_v56  ;;  %v1137_v36 = vsel %vm4552_vm13, 0.0, %v942_v2  ;;  %v1264_v60 = vld [vmem:[#allocation7 + $0x250] sm:$0xff]  ;;  %v1843_v25 = vrot.slane %v1842_v13, 2  ;;  %v1267_v2 = vld [vmem:[#allocation7 + $0x268] sm:$0xff] }
 0x2d4   :  { %v1393_v17 = vmul.f32 %v1265_v15, %v1137_v36 }
 0x2d5   :  { %v2129_v18 = vadd.f32 %v2128_v9, %v1982_v34  ;;  %v1666_v35 = vadd.f32 %v1665_v58, %v1391_v41  ;;  %v4566_v41 = vld [vmem:[#allocation25_spill] sm:$0xff]  ;;  %v1844_v58 = vadd.f32 %v1843_v25, %v1842_v13  ;;  %v539_v9 = vpop.permute.xlu2 %538 }
 0x2d6   :  { %v1985_v48 = vmul.f32 %v1521_v22, %v1393_v17  ;;  %v944_v10 = vmul.f32 %v3731_v24, %v539_v9  ;;  %v1268_v13 = vld [vmem:[#allocation7 + $0x270] sm:$0xff] }
 0x2d7   :  { %v2130_v12 = vadd.f32 %v2129_v18, %v1983_v28  ;;  %v1845_v28 = vrot.slane %v1844_v58, 1  ;;  %v4567_v18 = vld [vmem:[#allocation51_spill] sm:$0xff] }
 0x2d8   :  { %v1139_v22 = vsel %vm4556_vm15, 0.0, %v944_v10  ;;  %v4569_v10 = vld [vmem:[#allocation41_spill] sm:$0xff] }
 0x2d9   :  { %629 = vperm.xlu2 %2559, %v4553_v8   ;;  %623 = vperm.xlu1 %2558, %v4553_v8   ;;  %v3831_v0 = vadd.f32 %v1845_v28, %v1844_v58  ;;  %v1395_v36 = vmul.f32 %v1267_v2, %v1139_v22 }
 0x2db   :  { %v521_v37 = vpop.permute.xlu1 %520  ;;  %2600 = vrcp.f32 %v3831_v0  ;;  %vm2328_vm8 = vweird.f32 %v3831_v0 }
 0x2dc   :  { %v941_v1 = vmul.f32 %v3731_v24, %v521_v37 }
 0x2de   :  { %v1136_v52 = vsel %vm3006_vm10, 0.0, %v941_v1 }
 0x2df   :  { %v1392_v32 = vmul.f32 %v1264_v60, %v1136_v52 }
 0x2e1   :  { %v1667_v33 = vadd.f32 %v1666_v35, %v1392_v32  ;;  %v1984_v23 = vmul.f32 %v1520_v30, %v1392_v32  ;;  %2561 = vset.pattern.permute.xlu2 %v4505_v11  ;;  %2560 = vset.pattern.permute.xlu1 %v4566_v41  ;;  %v945_v30 = vmul.f32 %v3731_v24, %v4567_v18 }
 0x2e2   :  { %v1987_v32 = vmul.f32 %v3801_v40, %v1395_v36 }
 0x2e3   :  { %v2131_v56 = vadd.f32 %v2130_v12, %v1984_v23  ;;  %v1668_v34 = vadd.f32 %v1667_v33, %v1393_v17  ;;  %v1266_v12 = vld [vmem:[#allocation7 + $0x260] sm:$0xff]  ;;  %v1140_v15 = vsel %vm3331_vm14, 0.0, %v945_v30  ;;  %v2601_v23 = vpop.eup %2600  ;;  %v558_v40 = vpop.permute.xlu2 %557 }
 0x2e4   :  { %v1396_v1 = vmul.f32 %v1268_v13, %v1140_v15  ;;  %v2324_v28 = vmul.f32 %v2601_v23, %v3831_v0  ;;  %v4571_v13 = vld [vmem:[#allocation13_spill] sm:$0xff]  ;;  %vm2329_vm2 = vweird.f32 %v2601_v23  ;;  %v1526_v15 = vld [vmem:[#allocation5 + $0x280] sm:$0xff] }
 0x2e5   :  { %v2132_v42 = vadd.f32 %v2131_v56, %v1985_v48  ;;  %vm3866_vm14 = vmor %vm2328_vm8, %vm2329_vm2  ;;  %vm4575_vm8 = vnez %v4521_v19  ;;  %vm4576_vm2 = vnez %v4540_v39 }
 0x2e6   :  { %v1988_v48 = vmul.f32 %v3808_v21, %v1396_v1  ;;  %v2325_v30 = vsub.f32 1.0, %v2324_v28 }
 0x2e8   :  { %v2326_v22 = vmul.f32 %v2601_v23, %v2325_v30 }
 0x2e9   :  { %647 = vperm.xlu2 %2561, %v4553_v8   ;;  %641 = vperm.xlu1 %2560, %v4553_v8  }
 0x2eb   :  { %v533_v35 = vpop.permute.xlu1 %532 }
 0x2ec   :  { %v943_v37 = vmul.f32 %v3731_v24, %v533_v35  ;;  %v3852_v35 = vld [vmem:[#allocation2] sm:$0xff] }
 0x2ed   :  { %v848_v21 = vrot.slane %v3852_v35, 5 }
 0x2ee   :  { %v1138_v8 = vsel %vm4568_vm1, 0.0, %v943_v37 }
 0x2ef   :  { %v1394_v60 = vmul.f32 %v1266_v12, %v1138_v8 }
 0x2f1   :  { %v1669_v52 = vadd.f32 %v1668_v34, %v1394_v60  ;;  %v1986_v17 = vmul.f32 %v3793_v63, %v1394_v60  ;;  %2563 = vset.pattern.permute.xlu2 %v4519_v6  ;;  %2562 = vset.pattern.permute.xlu1 %v4520_v50  ;;  %v1269_v34 = vld [vmem:[#allocation7 + $0x278] sm:$0xff]  ;;  %v1527_v60 = vld [vmem:[#allocation5 + $0x288] sm:$0xff] }
 0x2f3   :  { %v1670_v25 = vadd.f32 %v1669_v52, %v1395_v36  ;;  %v2133_v33 = vadd.f32 %v2132_v42, %v1986_v17  ;;  %v1847_v52 = vadd.f32 %v1527_v60, %v1526_v15  ;;  %v2327_v17 = vadd.f32 %v2601_v23, %v2326_v22 }
 0x2f5   :  { %v2134_v56 = vadd.f32 %v2133_v33, %v1987_v32  ;;  %v1671_v58 = vadd.f32 %v1670_v25, %v1396_v1  ;;  %v2334_v1 = vand.u32 2147483648, %v3831_v0  ;;  %v2332_v32 = vand.u32 2147483647, %v3831_v0  ;;  %v570_v25 = vpop.permute.xlu2 %569 }
 0x2f6   :  { %v2331_v30 = vsel %vm3866_vm14, %v2601_v23, %v2327_v17  ;;  %vm2259_vm14 = vcmp.eq.f32.partialorder %v3831_v0, 0.0  ;;  %v1272_v17 = vld [vmem:[#allocation7 + $0x290] sm:$0xff] }
 0x2f7   :  { %v2135_v9 = vadd.f32 %v2134_v56, %v1988_v48 }
 0x2f9   :  { %660 = vperm.xlu2 %2563, %v4569_v10   ;;  %654 = vperm.xlu1 %2562, %v4569_v10  }
 0x2fb   :  { %v551_v63 = vpop.permute.xlu1 %550 }
 0x2fc   :  { %v946_v18 = vmul.f32 %v3731_v24, %v551_v63  ;;  %v3859_v24 = vperm.slane %v848_v21, 0  ;;  %v2335_v63 = vor.u32 1.1754944e-38, %v2334_v1  ;;  %v1270_v21 = vld [vmem:[#allocation7 + $0x280] sm:$0xff] }
 0x2fe   :  { %v1141_v42 = vsel %vm4570_vm12, 0.0, %v946_v18  ;;  %vm2333_vm12 = vcmp.eq.f32.partialorder %v2332_v32, 8.507059e+37 }
 0x2ff   :  { %v1397_v2 = vmul.f32 %v1269_v34, %v1141_v42  ;;  %v949_v34 = vmul.f32 %v3859_v24, %v570_v25  ;;  %v2336_v23 = vsel %vm2333_vm12, %v2335_v63, %v2331_v30  ;;  %v1271_v25 = vld [vmem:[#allocation7 + $0x288] sm:$0xff] }
 0x300   :  { %v2387_v0 = vsel %vm2259_vm14, 0.0, %v2336_v23  ;;  %vm4581_vm14 = vnez %v4495_v59 }
 0x301   :  { %v1672_v12 = vadd.f32 %v1671_v58, %v1397_v2  ;;  %v1989_v37 = vmul.f32 %v3813_v5, %v1397_v2  ;;  %2565 = vset.pattern.permute.xlu2 %v4560_v44  ;;  %2564 = vset.pattern.permute.xlu1 %v4571_v13  ;;  %v947_v5 = vmul.f32 %v3859_v24, %v558_v40  ;;  %v1528_v58 = vld [vmem:[#allocation5 + $0x290] sm:$0xff]  ;;  %v4574_v40 = vld [vmem:[#allocation52_spill] sm:$0xff]  ;;  %v1144_v32 = vsel %vm2897_vm3, 0.0, %v949_v34 }
 0x302   :  { %v1848_v18 = vadd.f32 %v1847_v52, %v1528_v58  ;;  %v950_v42 = vmul.f32 %v3859_v24, %v4574_v40  ;;  %v1400_v63 = vmul.f32 %v1272_v17, %v1144_v32  ;;  %v1531_v17 = vld [vmem:[#allocation5 + $0x2a8] sm:$0xff] }
 0x303   :  { %v1673_v8 = vrot.slane %v1672_v12, 4  ;;  %v2136_v36 = vadd.f32 %v2135_v9, %v1989_v37  ;;  %v1142_v2 = vsel %vm4575_vm8, 0.0, %v947_v5  ;;  %v1529_v37 = vld [vmem:[#allocation5 + $0x298] sm:$0xff]  ;;  %vm2244_vm8 = vcmask 1044484  }
 0x304   :  { %v1398_v52 = vmul.f32 %v1270_v21, %v1142_v2  ;;  %v1145_v56 = vsel %vm2917_vm4, 0.0, %v950_v42  ;;  %v1530_v2 = vld [vmem:[#allocation5 + $0x2a0] sm:$0xff] }
 0x305   :  { %v1674_v33 = vadd.f32 %v1673_v8, %v1672_v12  ;;  %v2137_v48 = vrot.slane %v2136_v36, 4 }
 0x307   :  { %v1675_v9 = vrot.slane %v1674_v33, 2  ;;  %v2138_v28 = vadd.f32 %v2137_v48, %v2136_v36  ;;  %v1273_v48 = vld [vmem:[#allocation7 + $0x298] sm:$0xff] }
 0x308   :  { %v1401_v34 = vmul.f32 %v1273_v48, %v1145_v56  ;;  %v1532_v56 = vld [vmem:[#allocation5 + $0x2b0] sm:$0xff] }
 0x309   :  { %v1676_v22 = vadd.f32 %v1675_v9, %v1674_v33  ;;  %v2139_v12 = vrot.slane %v2138_v28, 2  ;;  %678 = vperm.xlu2 %2565, %v4569_v10   ;;  %672 = vperm.xlu1 %2564, %v4569_v10   ;;  %v1849_v33 = vadd.f32 %v1848_v18, %v1529_v37 }
 0x30a   :  { %v1993_v32 = vmul.f32 %v1529_v37, %v1401_v34  ;;  %v1274_v37 = vld [vmem:[#allocation7 + $0x2a0] sm:$0xff] }
 0x30b   :  { %v1677_v8 = vrot.slane %v1676_v22, 1  ;;  %v2140_v36 = vadd.f32 %v2139_v12, %v2138_v28  ;;  %v564_v1 = vpop.permute.xlu1 %563  ;;  %v1990_v12 = vmul.f32 %v1526_v15, %v1398_v52 }
 0x30c   :  { %v948_v5 = vmul.f32 %v3859_v24, %v564_v1  ;;  %v1850_v1 = vadd.f32 %v1849_v33, %v1530_v2 }
 0x30d   :  { %v2141_v9 = vrot.slane %v2140_v36, 1  ;;  %v1678_v40 = vadd.f32 %v1677_v8, %v1676_v22  ;;  %v1992_v8 = vmul.f32 %v1528_v58, %v1400_v63  ;;  %v1533_v58 = vld [vmem:[#allocation5 + $0x2b8] sm:$0xff] }
 0x30e   :  { %v1143_v28 = vsel %vm4576_vm2, 0.0, %v948_v5  ;;  %v1851_v5 = vadd.f32 %v1850_v1, %v1531_v17 }
 0x30f   :  { %v2142_v30 = vadd.f32 %v2141_v9, %v2140_v36  ;;  %v1399_v21 = vmul.f32 %v1271_v25, %v1143_v28  ;;  %vm2210_vm12 = vcmp.gt.f32.partialorder %v1678_v40, 0.0 }
 0x310   :  { %v2459_v18 = vsel %vm2210_vm12, 1.0, %v4534_v20 }
 0x311   :  { %v1679_v11 = vadd.f32 %v1399_v21, %v1398_v52  ;;  %v1991_v41 = vmul.f32 %v1527_v60, %v1399_v21  ;;  %2567 = vset.pattern.permute.xlu2 %v2794_v14  ;;  %2566 = vset.pattern.permute.xlu1 %v4541_v4  ;;  %v3892_v42 = vsel %vm2244_vm8, %v2459_v18, %v3761_v49  ;;  %v588_v52 = vpop.permute.xlu2 %587 }
 0x312   :  { %v2412_v22 = vmul.f32 %v2387_v0, %v2142_v30  ;;  %v952_v48 = vmul.f32 %v3859_v24, %v588_v52  ;;  %v1534_v30 = vld [vmem:[#allocation5 + $0x2c0] sm:$0xff] }
 0x313   :  { %v1680_v36 = vadd.f32 %v1679_v11, %v1400_v63  ;;  %v2143_v23 = vadd.f32 %v1991_v41, %v1990_v12  ;;  %v1852_v11 = vadd.f32 %v1851_v5, %v1532_v56  ;;  %v1275_v41 = vld [vmem:[#allocation7 + $0x2a8] sm:$0xff]  ;;  %v4577_v12 = vld [vmem:[#allocation19_spill] sm:$0xff]  ;;  %v1536_v5 = vld [vmem:[#allocation5 + $0x2d0] sm:$0xff] }
 0x314   :  { %v3896_v15 = vsel %vm2244_vm8, %v2412_v22, %v3764_v45  ;;  %v1147_v45 = vsel %vm2938_vm6, 0.0, %v952_v48  ;;  %v4578_v48 = vld [vmem:[#allocation53_spill] sm:$0xff]  ;;  %vm4580_vm8 = vnez %v4507_v31 }
 0x315   :  { %v2144_v60 = vadd.f32 %v2143_v23, %v1992_v8  ;;  %v1681_v25 = vadd.f32 %v1680_v36, %v1401_v34  ;;  %v1853_v40 = vadd.f32 %v1852_v11, %v1533_v58  ;;  %v1403_v0 = vmul.f32 %v1275_v41, %v1147_v45  ;;  %v1535_v36 = vld [vmem:[#allocation5 + $0x2c8] sm:$0xff]  ;;  %v1276_v45 = vld [vmem:[#allocation7 + $0x2b0] sm:$0xff] }
 0x316   :  { %v955_v11 = vmul.f32 %v3859_v24, %v4578_v48 }
 0x317   :  { %v2145_v33 = vadd.f32 %v2144_v60, %v1993_v32  ;;  %v1854_v1 = vadd.f32 %v1853_v40, %v1534_v30  ;;  %v1995_v18 = vmul.f32 %v1531_v17, %v1403_v0 }
 0x319   :  { %690 = vperm.xlu2 %2567, %v4569_v10   ;;  %684 = vperm.xlu1 %2566, %v4569_v10   ;;  %v600_v23 = vpop.permute.xlu2 %599  ;;  %v1855_v52 = vadd.f32 %v1854_v1, %v1535_v36 }
 0x31a   :  { %v954_v60 = vmul.f32 %v3859_v24, %v600_v23 }
 0x31b   :  { %v582_v49 = vpop.permute.xlu1 %581 }
 0x31c   :  { %v951_v9 = vmul.f32 %v3859_v24, %v582_v49  ;;  %v1277_v49 = vld [vmem:[#allocation7 + $0x2b8] sm:$0xff]  ;;  %v1149_v41 = vsel %vm2979_vm9, 0.0, %v954_v60  ;;  %v3931_v60 = vld [vmem:[#allocation5 + $0x2f0] sm:$0xff] }
 0x31e   :  { %v1146_v28 = vsel %vm2931_vm5, 0.0, %v951_v9  ;;  %v3919_v9 = vld [vmem:[#allocation5 + $0x2e0] sm:$0xff] }
 0x31f   :  { %v1402_v63 = vmul.f32 %v1274_v37, %v1146_v28  ;;  %v1278_v28 = vld [vmem:[#allocation7 + $0x2c0] sm:$0xff] }
 0x321   :  { %v1682_v21 = vadd.f32 %v1681_v25, %v1402_v63  ;;  %v1994_v34 = vmul.f32 %v1530_v2, %v1402_v63  ;;  %2569 = vset.pattern.permute.xlu2 %v4562_v43  ;;  %2568 = vset.pattern.permute.xlu1 %v4577_v12  ;;  %v3911_v2 = vld [vmem:[#allocation5 + $0x2d8] sm:$0xff]  ;;  %v1856_v25 = vadd.f32 %v1855_v52, %v1536_v5 }
 0x323   :  { %v2146_v22 = vadd.f32 %v2145_v33, %v1994_v34  ;;  %v1683_v8 = vadd.f32 %v1682_v21, %v1403_v0  ;;  %v1857_v33 = vadd.f32 %v1856_v25, %v3911_v2  ;;  %v1150_v0 = vsel %vm4550_vm0, 0.0, %v955_v11  ;;  %v3926_v21 = vld [vmem:[#allocation5 + $0x2e8] sm:$0xff] }
 0x324   :  { %v1405_v34 = vmul.f32 %v1277_v49, %v1149_v41  ;;  %v618_v41 = vpop.permute.xlu2 %617 }
 0x325   :  { %v2147_v32 = vadd.f32 %v2146_v22, %v1995_v18  ;;  %v1858_v40 = vadd.f32 %v1857_v33, %v3919_v9  ;;  %v1406_v22 = vmul.f32 %v1278_v28, %v1150_v0  ;;  %v3934_v33 = vld [vmem:[#allocation5 + $0x2f8] sm:$0xff]  ;;  %v1279_v0 = vld [vmem:[#allocation7 + $0x2c8] sm:$0xff] }
 0x326   :  { %v1997_v48 = vmul.f32 %v1533_v58, %v1405_v34  ;;  %v1280_v58 = vld [vmem:[#allocation7 + $0x2d0] sm:$0xff] }
 0x327   :  { %v1859_v18 = vadd.f32 %v1858_v40, %v3926_v21  ;;  %v1998_v49 = vmul.f32 %v1534_v30, %v1406_v22  ;;  %v4579_v40 = vld [vmem:[#allocation43_spill] sm:$0xff] }
 0x329   :  { %708 = vperm.xlu2 %2569, %v4569_v10   ;;  %702 = vperm.xlu1 %2568, %v4569_v10   ;;  %v1860_v25 = vadd.f32 %v1859_v18, %v3931_v60 }
 0x32b   :  { %v594_v17 = vpop.permute.xlu1 %593 }
 0x32c   :  { %v953_v37 = vmul.f32 %v3859_v24, %v594_v17 }
 0x32e   :  { %v1148_v63 = vsel %vm2953_vm7, 0.0, %v953_v37 }
 0x32f   :  { %v1404_v1 = vmul.f32 %v1276_v45, %v1148_v63 }
 0x331   :  { %v1684_v23 = vadd.f32 %v1683_v8, %v1404_v1  ;;  %v1996_v52 = vmul.f32 %v1532_v56, %v1404_v1  ;;  %2571 = vset.pattern.permute.xlu2 %v4519_v6  ;;  %2570 = vset.pattern.permute.xlu1 %v4520_v50  ;;  %v1861_v8 = vadd.f32 %v1860_v25, %v3934_v33 }
 0x332   :  { %v957_v6 = vmul.f32 %v3859_v24, %v618_v41 }
 0x333   :  { %v1685_v11 = vadd.f32 %v1684_v23, %v1405_v34  ;;  %v2148_v17 = vadd.f32 %v2147_v32, %v1996_v52  ;;  %v1862_v50 = vrot.slane %v1861_v8, 4 }
 0x334   :  { %v1152_v32 = vsel %vm3006_vm10, 0.0, %v957_v6 }
 0x335   :  { %v2149_v45 = vadd.f32 %v2148_v17, %v1997_v48  ;;  %v1686_v37 = vadd.f32 %v1685_v11, %v1406_v22  ;;  %v1863_v63 = vadd.f32 %v1862_v50, %v1861_v8  ;;  %v1408_v1 = vmul.f32 %v1280_v58, %v1152_v32  ;;  %v630_v17 = vpop.permute.xlu2 %629  ;;  %v636_v58 = vpop.permute.xlu0 %635 }
 0x337   :  { %v2150_v56 = vadd.f32 %v2149_v45, %v1998_v49  ;;  %v1864_v52 = vrot.slane %v1863_v63, 2  ;;  %v2000_v25 = vmul.f32 %v1536_v5, %v1408_v1  ;;  %v959_v45 = vmul.f32 %v3859_v24, %v630_v17  ;;  %v1284_v17 = vld [vmem:[#allocation7 + $0x2f0] sm:$0xff] }
 0x339   :  { %757 = vperm.xlu2 %2571, %v4579_v40   ;;  %751 = vperm.xlu1 %2570, %v4579_v40   ;;  %v1865_v41 = vadd.f32 %v1864_v52, %v1863_v63  ;;  %v1283_v52 = vld [vmem:[#allocation7 + $0x2e8] sm:$0xff] }
 0x33b   :  { %v612_v28 = vpop.permute.xlu1 %611  ;;  %v1866_v8 = vrot.slane %v1865_v41, 1 }
 0x33c   :  { %v956_v30 = vmul.f32 %v3859_v24, %v612_v28 }
 0x33e   :  { %v1151_v34 = vsel %vm3015_vm11, 0.0, %v956_v30 }
 0x33f   :  { %v1407_v18 = vmul.f32 %v1279_v0, %v1151_v34 }
 0x341   :  { %v1687_v22 = vadd.f32 %v1686_v37, %v1407_v18  ;;  %v1999_v23 = vmul.f32 %v1535_v36, %v1407_v18  ;;  %2574 = vset.pattern.permute.xlu2 %v4560_v44  ;;  %2573 = vset.pattern.permute.xlu1 %v4571_v13  ;;  %v1282_v36 = vld [vmem:[#allocation7 + $0x2e0] sm:$0xff]  ;;  %v1154_v44 = vsel %vm4568_vm1, 0.0, %v959_v45  ;;  %v1281_v13 = vld [vmem:[#allocation7 + $0x2d8] sm:$0xff] }
 0x342   :  { %v1410_v50 = vmul.f32 %v1282_v36, %v1154_v44 }
 0x343   :  { %v2151_v48 = vadd.f32 %v2150_v56, %v1999_v23  ;;  %v1688_v11 = vadd.f32 %v1687_v22, %v1408_v1  ;;  %v3953_v56 = vadd.f32 %v1866_v8, %v1865_v41  ;;  %v960_v1 = vmul.f32 %v3859_v24, %v636_v58  ;;  %v648_v18 = vpop.permute.xlu2 %647 }
 0x344   :  { %v2002_v30 = vmul.f32 %v3919_v9, %v1410_v50  ;;  %v849_v41 = vrot.slane %v3852_v35, 6 }
 0x345   :  { %v2152_v49 = vadd.f32 %v2151_v48, %v2000_v25  ;;  %2602 = vrcp.f32 %v3953_v56  ;;  %v1285_v48 = vld [vmem:[#allocation7 + $0x2f8] sm:$0xff]  ;;  %vm2343_vm12 = vweird.f32 %v3953_v56 }
 0x346   :  { %v3983_v58 = vperm.slane %v849_v41, 0 }
 0x349   :  { %775 = vperm.xlu2 %2574, %v4579_v40   ;;  %769 = vperm.xlu1 %2573, %v4579_v40  }
 0x34b   :  { %v624_v37 = vpop.permute.xlu1 %623  ;;  %v3963_v23 = vpop.eup %2602 }
 0x34c   :  { %v958_v5 = vmul.f32 %v3859_v24, %v624_v37 }
 0x34e   :  { %v1153_v6 = vsel %vm4552_vm13, 0.0, %v958_v5 }
 0x34f   :  { %v1409_v28 = vmul.f32 %v1281_v13, %v1153_v6 }
 0x351   :  { %v1689_v32 = vadd.f32 %v1688_v11, %v1409_v28  ;;  %v2001_v0 = vmul.f32 %v3911_v2, %v1409_v28  ;;  %2576 = vset.pattern.permute.xlu2 %v2794_v14  ;;  %2575 = vset.pattern.permute.xlu1 %v4541_v4  ;;  %v1155_v2 = vsel %vm4556_vm15, 0.0, %v960_v1  ;;  %v962_v14 = vmul.f32 %v3859_v24, %v648_v18 }
 0x352   :  { %v2339_v4 = vmul.f32 %v3963_v23, %v3953_v56  ;;  %v1411_v9 = vmul.f32 %v1283_v52, %v1155_v2 }
 0x353   :  { %v1690_v63 = vadd.f32 %v1689_v32, %v1410_v50  ;;  %v2153_v34 = vadd.f32 %v2152_v49, %v2001_v0  ;;  %v1157_v11 = vsel %vm4580_vm8, 0.0, %v962_v14  ;;  %vm2344_vm8 = vweird.f32 %v3963_v23 }
 0x354   :  { %v2340_v8 = vsub.f32 1.0, %v2339_v4  ;;  %v2003_v37 = vmul.f32 %v3926_v21, %v1411_v9  ;;  %v1413_v36 = vmul.f32 %v1285_v48, %v1157_v11 }
 0x355   :  { %v2154_v22 = vadd.f32 %v2153_v34, %v2002_v30  ;;  %v1691_v13 = vadd.f32 %v1690_v63, %v1411_v9  ;;  %v2347_v34 = vand.u32 2147483647, %v3953_v56 }
 0x356   :  { %v2341_v28 = vmul.f32 %v3963_v23, %v2340_v8  ;;  %v2005_v32 = vmul.f32 %v3934_v33, %v1413_v36 }
 0x357   :  { %v2155_v50 = vadd.f32 %v2154_v22, %v2003_v37  ;;  %v1287_v22 = vld [vmem:[#allocation7 + $0x308] sm:$0xff]  ;;  %vm2348_vm15 = vcmp.eq.f32.partialorder %v2347_v34, 8.507059e+37 }
 0x359   :  { %787 = vperm.xlu2 %2576, %v4579_v40   ;;  %781 = vperm.xlu1 %2575, %v4579_v40  }
 0x35b   :  { %v642_v25 = vpop.permute.xlu1 %641 }
 0x35c   :  { %v961_v49 = vmul.f32 %v3859_v24, %v642_v25  ;;  %v661_v24 = vpop.permute.xlu2 %660 }
 0x35e   :  { %v1156_v45 = vsel %vm4581_vm14, 0.0, %v961_v49  ;;  %vm3992_vm14 = vmor %vm2343_vm12, %vm2344_vm8  ;;  %v1286_v49 = vld [vmem:[#allocation7 + $0x300] sm:$0xff]  ;;  %vm2260_vm8 = vcmp.eq.f32.partialorder %v3953_v56, 0.0  ;;  %vm4584_vm12 = vnez %v4521_v19  ;;  %v4134_v19 = vld [vmem:[#allocation5 + $0x358] sm:$0xff] }
 0x35f   :  { %v1412_v44 = vmul.f32 %v1284_v17, %v1156_v45  ;;  %v4004_v45 = vld [vmem:[#allocation5 + $0x308] sm:$0xff]  ;;  %4593 = vst [vmem:[#allocation44_spill] sm:$0xff] %v4134_v19 }
 0x361   :  { %v1692_v5 = vadd.f32 %v1691_v13, %v1412_v44  ;;  %v2004_v6 = vmul.f32 %v3931_v60, %v1412_v44  ;;  %2579 = vset.pattern.permute.xlu2 %v4562_v43  ;;  %2578 = vset.pattern.permute.xlu1 %v4577_v12  ;;  %v964_v60 = vmul.f32 %v3983_v58, %v661_v24  ;;  %v2349_v43 = vand.u32 2147483648, %v3953_v56  ;;  %v4007_v44 = vld [vmem:[#allocation5 + $0x300] sm:$0xff] }
 0x362   :  { %v2342_v12 = vadd.f32 %v3963_v23, %v2341_v28 }
 0x363   :  { %v1693_v0 = vadd.f32 %v1692_v5, %v1413_v36  ;;  %v2156_v21 = vadd.f32 %v2155_v50, %v2004_v6  ;;  %v1159_v52 = vsel %vm4576_vm2, 0.0, %v964_v60  ;;  %v2350_v4 = vor.u32 1.1754944e-38, %v2349_v43 }
 0x364   :  { %v2346_v9 = vsel %vm3992_vm14, %v3963_v23, %v2342_v12  ;;  %v1415_v17 = vmul.f32 %v1287_v22, %v1159_v52  ;;  %vm2246_vm14 = vcmask 1045509   ;;  %v679_v12 = vpop.permute.xlu2 %678  ;;  %v1544_v22 = vld [vmem:[#allocation5 + $0x310] sm:$0xff]  ;;  %v1290_v52 = vld [vmem:[#allocation7 + $0x320] sm:$0xff] }
 0x365   :  { %v1694_v30 = vrot.slane %v1693_v0, 4  ;;  %v2157_v63 = vadd.f32 %v2156_v21, %v2005_v32  ;;  %v2351_v36 = vsel %vm2348_vm15, %v2350_v4, %v2346_v9  ;;  %v1545_v4 = vld [vmem:[#allocation5 + $0x318] sm:$0xff] }
 0x366   :  { %v2007_v50 = vmul.f32 %v4004_v45, %v1415_v17  ;;  %v2388_v24 = vsel %vm2260_vm8, 0.0, %v2351_v36 }
 0x367   :  { %v1695_v1 = vadd.f32 %v1694_v30, %v1693_v0  ;;  %v2158_v18 = vrot.slane %v2157_v63, 4 }
 0x369   :  { %v1696_v2 = vrot.slane %v1695_v1, 2  ;;  %v2159_v14 = vadd.f32 %v2158_v18, %v2157_v63  ;;  %805 = vperm.xlu2 %2579, %v4579_v40   ;;  %799 = vperm.xlu1 %2578, %v4579_v40   ;;  %v4586_v63 = vld [vmem:[#allocation55_spill] sm:$0xff]  ;;  %v967_v18 = vmul.f32 %v3983_v58, %v679_v12 }
 0x36a   :  { %v965_v43 = vmul.f32 %v3983_v58, %v4586_v63 }
 0x36b   :  { %v2160_v25 = vrot.slane %v2159_v14, 2  ;;  %v655_v48 = vpop.permute.xlu1 %654  ;;  %v1697_v11 = vadd.f32 %v1696_v2, %v1695_v1  ;;  %v1288_v1 = vld [vmem:[#allocation7 + $0x310] sm:$0xff]  ;;  %v1162_v2 = vsel %vm2931_vm5, 0.0, %v967_v18 }
 0x36c   :  { %v963_v41 = vmul.f32 %v3983_v58, %v655_v48  ;;  %v1418_v48 = vmul.f32 %v1290_v52, %v1162_v2  ;;  %v4085_v2 = vld [vmem:[#allocation5 + $0x3b0] sm:$0xff] }
 0x36d   :  { %v2161_v8 = vadd.f32 %v2160_v25, %v2159_v14  ;;  %v1698_v37 = vrot.slane %v1697_v11, 1  ;;  %v1289_v14 = vld [vmem:[#allocation7 + $0x318] sm:$0xff] }
 0x36e   :  { %v1158_v23 = vsel %vm4584_vm12, 0.0, %v963_v41 }
 0x36f   :  { %v1414_v13 = vmul.f32 %v1286_v49, %v1158_v23  ;;  %v1699_v5 = vadd.f32 %v1698_v37, %v1697_v11  ;;  %v2162_v6 = vrot.slane %v2161_v8, 1  ;;  %v1546_v49 = vld [vmem:[#allocation5 + $0x320] sm:$0xff] }
 0x370   :  { %v2010_v36 = vmul.f32 %v1546_v49, %v1418_v48 }
 0x371   :  { %v1700_v28 = vadd.f32 %v1415_v17, %v1414_v13  ;;  %v2006_v32 = vmul.f32 %v4007_v44, %v1414_v13  ;;  %2581 = vset.pattern.permute.xlu2 %v4548_v53  ;;  %2580 = vset.pattern.permute.xlu1 %v4548_v53  ;;  %vm2211_vm15 = vcmp.gt.f32.partialorder %v1699_v5, 0.0  ;;  %v2163_v56 = vadd.f32 %v2162_v6, %v2161_v8  ;;  %v4588_v6 = vld [vmem:[#allocation25_spill] sm:$0xff] }
 0x372   :  { %v2460_v0 = vsel %vm2211_vm15, 1.0, %v4534_v20  ;;  %v1160_v53 = vsel %vm2897_vm3, 0.0, %v965_v43 }
 0x373   :  { %v2164_v21 = vadd.f32 %v2007_v50, %v2006_v32  ;;  %v4017_v60 = vsel %vm2246_vm14, %v2460_v0, %v3892_v42  ;;  %v2413_v30 = vmul.f32 %v2388_v24, %v2163_v56  ;;  %v1416_v42 = vmul.f32 %v1288_v1, %v1160_v53  ;;  %v4058_v50 = vld [vmem:[#allocation5 + $0x380] sm:$0xff]  ;;  %v4068_v0 = vld [vmem:[#allocation5 + $0x390] sm:$0xff] }
 0x374   :  { %4585 = vst [vmem:[#allocation37_spill] sm:$0xff] %v4017_v60  ;;  %v1868_v32 = vadd.f32 %v4004_v45, %v4007_v44  ;;  %v4076_v1 = vld [vmem:[#allocation5 + $0x3a0] sm:$0xff]  ;;  %v4079_v44 = vld [vmem:[#allocation5 + $0x3a8] sm:$0xff] }
 0x375   :  { %v4022_v34 = vsel %vm2246_vm14, %v2413_v30, %v3896_v15  ;;  %v2008_v25 = vmul.f32 %v1544_v22, %v1416_v42  ;;  %v1701_v17 = vadd.f32 %v1700_v28, %v1416_v42  ;;  %v4082_v42 = vld [vmem:[#allocation5 + $0x328] sm:$0xff]  ;;  %vm2248_vm14 = vcmask 1046534  }
 0x376   :  { %4587 = vst [vmem:[#allocation17_spill] sm:$0xff] %v4022_v34  ;;  %v4136_v34 = vld [vmem:[#allocation5 + $0x3e0] sm:$0xff] }
 0x377   :  { %v2165_v37 = vadd.f32 %v2164_v21, %v2008_v25  ;;  %v4071_v21 = vld [vmem:[#allocation5 + $0x398] sm:$0xff] }
 0x379   :  { %811 = vperm.xlu2 %2581, %v4579_v40   ;;  %714 = vperm.xlu1 %2580, %v4569_v10  }
 0x37b   :  { %v673_v33 = vpop.permute.xlu1 %672 }
 0x37c   :  { %v966_v15 = vmul.f32 %v3983_v58, %v673_v33 }
 0x37e   :  { %v1161_v9 = vsel %vm2917_vm4, 0.0, %v966_v15  ;;  %v4088_v15 = vld [vmem:[#allocation5 + $0x330] sm:$0xff] }
 0x37f   :  { %v1417_v11 = vmul.f32 %v1289_v14, %v1161_v9  ;;  %v4091_v9 = vld [vmem:[#allocation5 + $0x3b8] sm:$0xff] }
 0x381   :  { %v1702_v41 = vadd.f32 %v1701_v17, %v1417_v11  ;;  %v2009_v8 = vmul.f32 %v1545_v4, %v1417_v11  ;;  %2584 = vset.pattern.permute.xlu2 %v4511_v27  ;;  %2583 = vset.pattern.permute.xlu1 %v4564_v3  ;;  %v4589_v3 = vld [vmem:[#allocation24_spill] sm:$0xff] }
 0x383   :  { %v2166_v23 = vadd.f32 %v2165_v37, %v2009_v8  ;;  %v4036_v13 = vadd.f32 %v1702_v41, %v1418_v48  ;;  %v4094_v48 = vld [vmem:[#allocation5 + $0x338] sm:$0xff]  ;;  %v850_v41 = vrot.slane %v3852_v35, 7  ;;  %v4100_v8 = vld [vmem:[#allocation5 + $0x3c0] sm:$0xff] }
 0x385   :  { %v4038_v5 = vadd.f32 %v2166_v23, %v2010_v36  ;;  %v4103_v36 = vld [vmem:[#allocation5 + $0x340] sm:$0xff] }
 0x389   :  { %726 = vperm.xlu2 %2584, %v4569_v10   ;;  %817 = vperm.xlu1 %2583, %v4579_v40  }
 0x38b   :  { %v4062_v28 = vpop.permute.xlu1 %684 }
 0x391   :  { %2586 = vset.pattern.permute.xlu2 %v4497_v7  ;;  %2585 = vset.pattern.permute.xlu1 %v4511_v27  ;;  %v4054_v7 = vpop.permute.xlu2 %690  ;;  %v4056_v27 = vld [vmem:[#allocation5 + $0x388] sm:$0xff] }
 0x392   :  { %v1889_v24 = vadd.f32 %v4056_v27, %v4058_v50 }
 0x399   :  { %732 = vperm.xlu2 %2586, %v4569_v10   ;;  %823 = vperm.xlu1 %2585, %v4579_v40   ;;  %v4066_v56 = vpop.permute.xlu2 %708 }
 0x39b   :  { %v4074_v63 = vpop.permute.xlu1 %702 }
 0x3a1   :  { %2588 = vset.pattern.permute.xlu2 %v4588_v6  ;;  %2587 = vset.pattern.permute.xlu1 %v4588_v6  ;;  %v758_v12 = vpop.permute.xlu2 %757  ;;  %v4106_v6 = vperm.slane %v850_v41, 0  ;;  %v1303_v41 = vld [vmem:[#allocation7 + $0x388] sm:$0xff] }
 0x3a9   :  { %835 = vperm.xlu2 %2588, %v4579_v40   ;;  %738 = vperm.xlu1 %2587, %v4569_v10   ;;  %v776_v52 = vpop.permute.xlu2 %775 }
 0x3ab   :  { %v752_v33 = vpop.permute.xlu1 %751 }
 0x3b1   :  { %2590 = vset.pattern.permute.xlu2 %v4589_v3  ;;  %2589 = vset.pattern.permute.xlu1 %v4589_v3  ;;  %v4108_v3 = vld [vmem:[#allocation5 + $0x3c8] sm:$0xff] }
 0x3b9   :  { %841 = vperm.xlu2 %2590, %v4579_v40   ;;  %744 = vperm.xlu1 %2589, %v4569_v10   ;;  %v1890_v10 = vadd.f32 %v1889_v24, %v4068_v0  ;;  %v1869_v40 = vadd.f32 %v1868_v32, %v1544_v22  ;;  %v4111_v32 = vld [vmem:[#allocation5 + $0x348] sm:$0xff] }
 0x3ba   :  { %4590 = vst [vmem:[#allocation42_spill] sm:$0xff] %v4111_v32 }
 0x3bb   :  { %v1891_v30 = vadd.f32 %v1890_v10, %v4071_v21  ;;  %v1870_v43 = vadd.f32 %v1869_v40, %v1545_v4  ;;  %v770_v11 = vpop.permute.xlu1 %769  ;;  %v979_v10 = vmul.f32 %v4106_v6, %v752_v33 }
 0x3bd   :  { %v1892_v53 = vadd.f32 %v1891_v30, %v4076_v1  ;;  %v1871_v45 = vadd.f32 %v1870_v43, %v1546_v49  ;;  %v4097_v49 = vpop.permute.xlu2 %787  ;;  %v980_v43 = vmul.f32 %v4106_v6, %v758_v12 }
 0x3bf   :  { %v1893_v18 = vadd.f32 %v1892_v53, %v4079_v44  ;;  %v1872_v22 = vadd.f32 %v1871_v45, %v4082_v42  ;;  %v4118_v53 = vld [vmem:[#allocation5 + $0x3d0] sm:$0xff]  ;;  %v1175_v12 = vsel %vm4576_vm2, 0.0, %v980_v43  ;;  %v1305_v43 = vld [vmem:[#allocation7 + $0x398] sm:$0xff] }
 0x3c0   :  { %v1431_v60 = vmul.f32 %v1303_v41, %v1175_v12  ;;  %v4149_v12 = vld [vmem:[#allocation5 + $0x360] sm:$0xff] }
 0x3c1   :  { %v1894_v14 = vadd.f32 %v1893_v18, %v4085_v2  ;;  %v1873_v4 = vadd.f32 %v1872_v22, %v4088_v15  ;;  %v1302_v18 = vld [vmem:[#allocation7 + $0x380] sm:$0xff]  ;;  %v1174_v22 = vsel %vm4584_vm12, 0.0, %v979_v10 }
 0x3c3   :  { %v1895_v25 = vadd.f32 %v1894_v14, %v4091_v9  ;;  %v1874_v17 = vadd.f32 %v1873_v4, %v4094_v48  ;;  %v4123_v14 = vld [vmem:[#allocation5 + $0x350] sm:$0xff]  ;;  %v4125_v4 = vld [vmem:[#allocation5 + $0x3d8] sm:$0xff] }
 0x3c4   :  { %4591 = vst [vmem:[#allocation27_spill] sm:$0xff] %v4123_v14 }
 0x3c5   :  { %v1896_v37 = vadd.f32 %v1895_v25, %v4100_v8  ;;  %v1875_v23 = vadd.f32 %v1874_v17, %v4103_v36  ;;  %v4114_v35 = vpop.permute.xlu2 %805  ;;  %v4592_v25 = vld [vmem:[#allocation56_spill] sm:$0xff] }
 0x3c6   :  { %v981_v17 = vmul.f32 %v4106_v6, %v4592_v25  ;;  %v1304_v25 = vld [vmem:[#allocation7 + $0x390] sm:$0xff] }
 0x3c7   :  { %v1897_v24 = vadd.f32 %v1896_v37, %v4108_v3  ;;  %v1876_v30 = vadd.f32 %v1875_v23, %v4111_v32  ;;  %v982_v37 = vmul.f32 %v4106_v6, %v770_v11  ;;  %v1430_v23 = vmul.f32 %v1302_v18, %v1174_v22  ;;  %v4153_v32 = vld [vmem:[#allocation5 + $0x3e8] sm:$0xff] }
 0x3c8   :  { %v1176_v39 = vsel %vm2897_vm3, 0.0, %v981_v17  ;;  %vm4597_vm3 = vnez %v4499_v55 }
 0x3c9   :  { %v1898_v45 = vadd.f32 %v1897_v24, %v4118_v53  ;;  %v1877_v33 = vadd.f32 %v1876_v30, %v4123_v14  ;;  %v1177_v11 = vsel %vm2917_vm4, 0.0, %v982_v37  ;;  %v1721_v18 = vadd.f32 %v1431_v60, %v1430_v23 }
 0x3ca   :  { %v983_v14 = vmul.f32 %v4106_v6, %v776_v52  ;;  %v1433_v38 = vmul.f32 %v1305_v43, %v1177_v11  ;;  %vm4599_vm4 = vnez %v4495_v59 }
 0x3cb   :  { %v782_v40 = vpop.permute.xlu1 %781  ;;  %v1899_v24 = vadd.f32 %v1898_v45, %v4125_v4  ;;  %v1878_v30 = vadd.f32 %v1877_v33, %v4134_v19  ;;  %v2022_v45 = vmul.f32 %v4058_v50, %v1430_v23  ;;  %v1432_v33 = vmul.f32 %v1304_v25, %v1176_v39  ;;  %v1307_v23 = vld [vmem:[#allocation7 + $0x3a8] sm:$0xff] }
 0x3cc   :  { %v984_v41 = vmul.f32 %v4106_v6, %v782_v40  ;;  %v2023_v19 = vmul.f32 %v4056_v27, %v1431_v60  ;;  %v1178_v52 = vsel %vm2931_vm5, 0.0, %v983_v14  ;;  %v4162_v60 = vld [vmem:[#allocation5 + $0x368] sm:$0xff]  ;;  %v4164_v27 = vld [vmem:[#allocation5 + $0x3f0] sm:$0xff]  ;;  %v985_v14 = vmul.f32 %v4106_v6, %v4097_v49 }
 0x3cd   :  { %v1900_v22 = vadd.f32 %v1899_v24, %v4136_v34  ;;  %v1879_v17 = vadd.f32 %v1878_v30, %v4149_v12  ;;  %v1722_v31 = vadd.f32 %v1721_v18, %v1432_v33  ;;  %v2024_v30 = vmul.f32 %v4068_v0, %v1432_v33  ;;  %v4594_v33 = vld [vmem:[#allocation49_spill] sm:$0xff] }
 0x3ce   :  { %v2185_v37 = vadd.f32 %v2023_v19, %v2022_v45  ;;  %v1179_v40 = vsel %vm2938_vm6, 0.0, %v984_v41  ;;  %v2025_v19 = vmul.f32 %v4071_v21, %v1433_v38  ;;  %v1434_v43 = vmul.f32 %v1306_v29, %v1178_v52  ;;  %v4176_v41 = vld [vmem:[#allocation5 + $0x370] sm:$0xff] }
 0x3cf   :  { %v1901_v50 = vadd.f32 %v1900_v22, %v4153_v32  ;;  %v1723_v25 = vadd.f32 %v1722_v31, %v1433_v38  ;;  %v1880_v61 = vadd.f32 %v1879_v17, %v4162_v60  ;;  %v1435_v18 = vmul.f32 %v1307_v23, %v1179_v40  ;;  %v4174_v22 = vld [vmem:[#allocation5 + $0x3f8] sm:$0xff]  ;;  %v1308_v17 = vld [vmem:[#allocation7 + $0x3b0] sm:$0xff] }
 0x3d0   :  { %v2186_v11 = vadd.f32 %v2185_v37, %v2024_v30  ;;  %v986_v38 = vmul.f32 %v4106_v6, %v4594_v33  ;;  %v1180_v49 = vsel %vm2953_vm7, 0.0, %v985_v14  ;;  %v4184_v37 = vld [vmem:[#allocation5 + $0x378] sm:$0xff]  ;;  %v968_v14 = vmul.f32 %v3983_v58, %v4062_v28 }
 0x3d1   :  { %v1902_v45 = vadd.f32 %v1901_v50, %v4164_v27  ;;  %v1724_v31 = vadd.f32 %v1723_v25, %v1434_v43  ;;  %v1881_v21 = vadd.f32 %v1880_v61, %v4176_v41  ;;  %4595 = vst [vmem:[#allocation40_spill] sm:$0xff] %v4184_v37  ;;  %v2026_v50 = vmul.f32 %v4076_v1, %v1434_v43  ;;  %v1309_v33 = vld [vmem:[#allocation7 + $0x3b8] sm:$0xff]  ;;  %v1310_v1 = vld [vmem:[#allocation7 + $0x3c0] sm:$0xff] }
 0x3d2   :  { %v2187_v0 = vadd.f32 %v2186_v11, %v2025_v19  ;;  %v2027_v23 = vmul.f32 %v4079_v44, %v1435_v18  ;;  %v1436_v19 = vmul.f32 %v1308_v17, %v1180_v49  ;;  %v969_v17 = vmul.f32 %v3983_v58, %v4054_v7 }
 0x3d3   :  { %v4138_v20 = vpop.permute.xlu2 %811  ;;  %v1725_v52 = vadd.f32 %v1724_v31, %v1435_v18  ;;  %v1903_v40 = vadd.f32 %v1902_v45, %v4174_v22  ;;  %v1882_v25 = vadd.f32 %v1881_v21, %v4184_v37  ;;  %v988_v31 = vmul.f32 %v4106_v6, %v4114_v35 }
 0x3d4   :  { %v2188_v61 = vadd.f32 %v2187_v0, %v2026_v50  ;;  %v1163_v28 = vsel %vm2938_vm6, 0.0, %v968_v14  ;;  %v1291_v50 = vld [vmem:[#allocation7 + $0x328] sm:$0xff]  ;;  %v830_v14 = vpop.permute.xlu0 %829 }
 0x3d5   :  { %v1726_v43 = vadd.f32 %v1725_v52, %v1436_v19  ;;  %v1904_v45 = vrot.slane %v1903_v40, 4  ;;  %v1883_v0 = vrot.slane %v1882_v25, 4  ;;  %v1183_v7 = vsel %vm3015_vm11, 0.0, %v988_v31  ;;  %v1312_v31 = vld [vmem:[#allocation7 + $0x3d0] sm:$0xff] }
 0x3d6   :  { %v2189_v18 = vadd.f32 %v2188_v61, %v2027_v23  ;;  %v4596_v61 = vld [vmem:[#allocation36_spill] sm:$0xff] }
 0x3d7   :  { %v1905_v23 = vadd.f32 %v1904_v45, %v1903_v40  ;;  %v970_v35 = vmul.f32 %v3983_v58, %v4596_v61  ;;  %v1313_v61 = vld [vmem:[#allocation7 + $0x3d8] sm:$0xff] }
 0x3db   :  { %v800_v10 = vpop.permute.xlu1 %799 }
 0x3dc   :  { %v987_v29 = vmul.f32 %v4106_v6, %v800_v10  ;;  %v1181_v10 = vsel %vm2979_vm9, 0.0, %v986_v38  ;;  %v2028_v38 = vmul.f32 %v4085_v2, %v1436_v19 }
 0x3dd   :  { %v1437_v21 = vmul.f32 %v1309_v33, %v1181_v10  ;;  %v1311_v33 = vld [vmem:[#allocation7 + $0x3c8] sm:$0xff]  ;;  %v1884_v10 = vadd.f32 %v1883_v0, %v1882_v25  ;;  %v1906_v0 = vrot.slane %v1905_v23, 2 }
 0x3de   :  { %v1182_v44 = vsel %vm4550_vm0, 0.0, %v987_v29  ;;  %v2190_v37 = vadd.f32 %v2189_v18, %v2028_v38  ;;  %v989_v29 = vmul.f32 %v4106_v6, %v4138_v20  ;;  %v1164_v20 = vsel %vm2953_vm7, 0.0, %v969_v17 }
 0x3df   :  { %v1438_v49 = vmul.f32 %v1310_v1, %v1182_v44  ;;  %v1727_v52 = vadd.f32 %v1726_v43, %v1437_v21  ;;  %v2029_v46 = vmul.f32 %v4091_v9, %v1437_v21  ;;  %v1292_v1 = vld [vmem:[#allocation7 + $0x330] sm:$0xff]  ;;  %v1419_v18 = vmul.f32 %v1291_v50, %v1163_v28 }
 0x3e0   :  { %v1439_v38 = vmul.f32 %v1311_v33, %v1183_v7  ;;  %v992_v9 = vmul.f32 %v4106_v6, %v830_v14  ;;  %v1420_v21 = vmul.f32 %v1292_v1, %v1164_v20  ;;  %v1885_v17 = vrot.slane %v1884_v10, 2  ;;  %v1314_v7 = vld [vmem:[#allocation7 + $0x3e0] sm:$0xff] }
 0x3e1   :  { %v1728_v44 = vadd.f32 %v1727_v52, %v1438_v49  ;;  %v2030_v40 = vmul.f32 %v4100_v8, %v1438_v49  ;;  %v2191_v25 = vadd.f32 %v2190_v37, %v2029_v46  ;;  %v1293_v8 = vld [vmem:[#allocation7 + $0x338] sm:$0xff]  ;;  %v1165_v49 = vsel %vm2979_vm9, 0.0, %v970_v35  ;;  %v1294_v20 = vld [vmem:[#allocation7 + $0x340] sm:$0xff] }
 0x3e2   :  { %v971_v28 = vmul.f32 %v3983_v58, %v4074_v63  ;;  %v1704_v37 = vadd.f32 %v4036_v13, %v1419_v18  ;;  %v1907_v14 = vadd.f32 %v1906_v0, %v1905_v23  ;;  %v1421_v51 = vmul.f32 %v1293_v8, %v1165_v49  ;;  %v1295_v49 = vld [vmem:[#allocation7 + $0x348] sm:$0xff] }
 0x3e3   :  { %v4168_v39 = vpop.permute.xlu2 %726  ;;  %v1729_v50 = vadd.f32 %v1728_v44, %v1439_v38  ;;  %v2192_v52 = vadd.f32 %v2191_v25, %v2030_v40  ;;  %v1187_v35 = vsel %vm4597_vm3, 0.0, %v992_v9  ;;  %v2012_v63 = vmul.f32 %v4088_v15, %v1420_v21 }
 0x3e4   :  { %v1886_v1 = vadd.f32 %v1885_v17, %v1884_v10  ;;  %v1166_v13 = vsel %vm4550_vm0, 0.0, %v971_v28 }
 0x3e5   :  { %v1422_v25 = vmul.f32 %v1294_v20, %v1166_v13 }
 0x3eb   :  { %v4160_v24 = vpop.permute.xlu1 %714 }
 0x3ec   :  { %v973_v15 = vmul.f32 %v3983_v58, %v4160_v24 }
 0x3f3   :  { %v4190_v11 = vpop.permute.xlu2 %732 }
 0x3fb   :  { %v818_v30 = vpop.permute.xlu1 %817 }
 0x3fc   :  { %v990_v2 = vmul.f32 %v4106_v6, %v818_v30  ;;  %v1184_v30 = vsel %vm3006_vm10, 0.0, %v989_v29  ;;  %v2011_v29 = vmul.f32 %v4082_v42, %v1419_v18 }
 0x3fd   :  { %v1440_v33 = vmul.f32 %v1312_v31, %v1184_v30  ;;  %v1315_v31 = vld [vmem:[#allocation7 + $0x3e8] sm:$0xff]  ;;  %v1908_v30 = vrot.slane %v1907_v14, 1 }
 0x3fe   :  { %v1185_v16 = vsel %vm4552_vm13, 0.0, %v990_v2  ;;  %v2031_v2 = vmul.f32 %v4108_v3, %v1439_v38  ;;  %v972_v3 = vmul.f32 %v3983_v58, %v4066_v56  ;;  %v2168_v23 = vadd.f32 %v4038_v5, %v2011_v29  ;;  %v1317_v29 = vld [vmem:[#allocation7 + $0x3f8] sm:$0xff] }
 0x3ff   :  { %v1441_v46 = vmul.f32 %v1313_v61, %v1185_v16  ;;  %v1730_v44 = vadd.f32 %v1729_v50, %v1440_v33  ;;  %v2032_v38 = vmul.f32 %v4118_v53, %v1440_v33  ;;  %v1887_v61 = vrot.slane %v1886_v1, 1  ;;  %v4598_v16 = vld [vmem:[#allocation54_spill] sm:$0xff]  ;;  %v4600_v33 = vld [vmem:[#allocation33_spill] sm:$0xff] }
 0x400   :  { %v2193_v42 = vadd.f32 %v2192_v52, %v2031_v2  ;;  %v2013_v56 = vmul.f32 %v4094_v48, %v1421_v51  ;;  %v974_v17 = vmul.f32 %v3983_v58, %v4598_v16  ;;  %v1443_v24 = vmul.f32 %v1315_v31, %v1187_v35  ;;  %v1300_v16 = vld [vmem:[#allocation7 + $0x370] sm:$0xff] }
 0x401   :  { %v1731_v10 = vadd.f32 %v1730_v44, %v1441_v46  ;;  %v2033_v54 = vmul.f32 %v4125_v4, %v1441_v46  ;;  %v1167_v4 = vsel %vm3015_vm11, 0.0, %v972_v3  ;;  %v2169_v8 = vadd.f32 %v2168_v23, %v2012_v63  ;;  %v4602_v3 = vld [vmem:[#allocation42_spill] sm:$0xff] }
 0x402   :  { %v4253_v48 = vadd.f32 %v1908_v30, %v1907_v14  ;;  %v2014_v52 = vmul.f32 %v4103_v36, %v1422_v25  ;;  %vm4601_vm5 = vnez %v4600_v33  ;;  %v1423_v46 = vmul.f32 %v1295_v49, %v1167_v4 }
 0x403   :  { %v836_v43 = vpop.permute.xlu2 %835  ;;  %v2035_v14 = vmul.f32 %v4153_v32, %v1443_v24  ;;  %v1169_v20 = vsel %vm4552_vm13, 0.0, %v974_v17  ;;  %v975_v44 = vmul.f32 %v3983_v58, %v4168_v39 }
 0x404   :  { %v993_v0 = vmul.f32 %v4106_v6, %v836_v43  ;;  %v1296_v43 = vld [vmem:[#allocation7 + $0x350] sm:$0xff]  ;;  %2604 = vrcp.f32 %v4253_v48  ;;  %vm2373_vm6 = vweird.f32 %v4253_v48  ;;  %vm2262_vm8 = vcmp.eq.f32.partialorder %v4253_v48, 0.0 }
 0x40b   :  { %v824_v19 = vpop.permute.xlu1 %823 }
 0x40c   :  { %v991_v45 = vmul.f32 %v4106_v6, %v824_v19 }
 0x40e   :  { %v1186_v19 = vsel %vm4568_vm1, 0.0, %v991_v45  ;;  %v1705_v45 = vadd.f32 %v1704_v37, %v1420_v21  ;;  %v2194_v21 = vadd.f32 %v2193_v42, %v2032_v38  ;;  %v1188_v37 = vsel %vm4599_vm4, 0.0, %v993_v0  ;;  %v4603_v38 = vld [vmem:[#allocation27_spill] sm:$0xff]  ;;  %v4276_v0 = vpop.eup %2604 }
 0x40f   :  { %v1442_v40 = vmul.f32 %v1314_v7, %v1186_v19  ;;  %v4260_v7 = vadd.f32 %v1887_v61, %v1886_v1  ;;  %v1297_v1 = vld [vmem:[#allocation7 + $0x358] sm:$0xff]  ;;  %v1299_v61 = vld [vmem:[#allocation7 + $0x368] sm:$0xff]  ;;  %v2369_v55 = vmul.f32 %v4276_v0, %v4253_v48 }
 0x410   :  { %v1706_v28 = vadd.f32 %v1705_v45, %v1421_v51  ;;  %v2195_v50 = vadd.f32 %v2194_v21, %v2033_v54  ;;  %v2170_v51 = vadd.f32 %v2169_v8, %v2013_v56  ;;  %v2015_v45 = vmul.f32 %v4602_v3, %v1423_v46 }
 0x411   :  { %v1732_v5 = vadd.f32 %v1731_v10, %v1442_v40  ;;  %v2034_v53 = vmul.f32 %v4136_v34, %v1442_v40  ;;  %v1316_v34 = vld [vmem:[#allocation7 + $0x3f0] sm:$0xff]  ;;  %2606 = vrcp.f32 %v4260_v7  ;;  %v976_v40 = vmul.f32 %v3983_v58, %v4190_v11  ;;  %v1298_v11 = vld [vmem:[#allocation7 + $0x360] sm:$0xff] }
 0x412   :  { %v1707_v47 = vadd.f32 %v1706_v28, %v1422_v25  ;;  %v1444_v63 = vmul.f32 %v1316_v34, %v1188_v37  ;;  %v2171_v13 = vadd.f32 %v2170_v51, %v2014_v52  ;;  %v1425_v30 = vmul.f32 %v1297_v1, %v1169_v20 }
 0x413   :  { %v842_v18 = vpop.permute.xlu2 %841  ;;  %v1733_v19 = vadd.f32 %v1732_v5, %v1443_v24  ;;  %v2196_v2 = vadd.f32 %v2195_v50, %v2034_v53  ;;  %v1171_v56 = vsel %vm4597_vm3, 0.0, %v976_v40  ;;  %v4604_v24 = vld [vmem:[#allocation44_spill] sm:$0xff]  ;;  %vm2358_vm7 = vweird.f32 %v4260_v7 }
 0x414   :  { %v994_v9 = vmul.f32 %v4106_v6, %v842_v18  ;;  %v1168_v6 = vsel %vm3006_vm10, 0.0, %v973_v15  ;;  %v1708_v23 = vadd.f32 %v1707_v47, %v1423_v46  ;;  %v2036_v62 = vmul.f32 %v4164_v27, %v1444_v63 }
 0x415   :  { %v1424_v35 = vmul.f32 %v1296_v43, %v1168_v6  ;;  %v2197_v18 = vadd.f32 %v2196_v2, %v2035_v14  ;;  %v1734_v32 = vadd.f32 %v1733_v19, %v1444_v63  ;;  %v2172_v39 = vadd.f32 %v2171_v13, %v2015_v45 }
 0x416   :  { %v1189_v26 = vsel %vm4601_vm5, 0.0, %v994_v9  ;;  %v1170_v9 = vsel %vm4568_vm1, 0.0, %v975_v44  ;;  %v2017_v4 = vmul.f32 %v4604_v24, %v1425_v30  ;;  %v1427_v57 = vmul.f32 %v1299_v61, %v1171_v56  ;;  %v4605_v44 = vld [vmem:[#allocation40_spill] sm:$0xff] }
 0x417   :  { %v1445_v36 = vmul.f32 %v1317_v29, %v1189_v26  ;;  %v2016_v31 = vmul.f32 %v4603_v38, %v1424_v35  ;;  %v1709_v25 = vadd.f32 %v1708_v23, %v1424_v35  ;;  %v2198_v21 = vadd.f32 %v2197_v18, %v2036_v62  ;;  %v4282_v27 = vpop.eup %2606  ;;  %v1301_v26 = vld [vmem:[#allocation7 + $0x378] sm:$0xff] }
 0x418   :  { %v1426_v8 = vmul.f32 %v1298_v11, %v1170_v9  ;;  %v2354_v28 = vmul.f32 %v4282_v27, %v4260_v7  ;;  %v2019_v59 = vmul.f32 %v4162_v60, %v1427_v57  ;;  %v2370_v46 = vsub.f32 1.0, %v2369_v55 }
 0x419   :  { %v1735_v15 = vadd.f32 %v1734_v32, %v1445_v36  ;;  %v2037_v10 = vmul.f32 %v4174_v22, %v1445_v36  ;;  %v2173_v5 = vadd.f32 %v2172_v39, %v2016_v31  ;;  %v1710_v49 = vadd.f32 %v1709_v25, %v1425_v30 }
 0x41a   :  { %v2018_v34 = vmul.f32 %v4149_v12, %v1426_v8  ;;  %v2355_v2 = vsub.f32 1.0, %v2354_v28  ;;  %vm2359_vm9 = vweird.f32 %v4282_v27  ;;  %v2364_v3 = vand.u32 2147483648, %v4260_v7 }
 0x41b   :  { %v739_v42 = vpop.permute.xlu1 %738  ;;  %v1736_v22 = vrot.slane %v1735_v15, 4  ;;  %v2199_v53 = vadd.f32 %v2198_v21, %v2037_v10  ;;  %v2174_v43 = vadd.f32 %v2173_v5, %v2017_v4  ;;  %v1711_v37 = vadd.f32 %v1710_v49, %v1426_v8  ;;  %vm4308_vm11 = vmor %vm2358_vm7, %vm2359_vm9 }
 0x41c   :  { %v977_v54 = vmul.f32 %v3983_v58, %v739_v42  ;;  %v2356_v60 = vmul.f32 %v4282_v27, %v2355_v2  ;;  %v2371_v42 = vmul.f32 %v4276_v0, %v2370_v46  ;;  %vm2374_vm10 = vweird.f32 %v4276_v0 }
 0x41d   :  { %v1737_v50 = vadd.f32 %v1736_v22, %v1735_v15  ;;  %v2200_v52 = vrot.slane %v2199_v53, 4  ;;  %v1712_v47 = vadd.f32 %v1711_v37, %v1427_v57  ;;  %v2175_v51 = vadd.f32 %v2174_v43, %v2018_v34  ;;  %vm4316_vm0 = vmor %vm2373_vm6, %vm2374_vm10  ;;  %v4611_v34 = vld [vmem:[#allocation37_spill] sm:$0xff] }
 0x41e   :  { %v1172_v17 = vsel %vm4599_vm4, 0.0, %v977_v54  ;;  %v2357_v45 = vadd.f32 %v4282_v27, %v2356_v60  ;;  %v2362_v23 = vand.u32 2147483647, %v4260_v7  ;;  %v2379_v38 = vand.u32 2147483648, %v4253_v48 }
 0x41f   :  { %v1428_v6 = vmul.f32 %v1300_v16, %v1172_v17  ;;  %v2201_v14 = vadd.f32 %v2200_v52, %v2199_v53  ;;  %v1738_v36 = vrot.slane %v1737_v50, 2  ;;  %v2176_v20 = vadd.f32 %v2175_v51, %v2019_v59 }
 0x420   :  { %v2372_v10 = vadd.f32 %v4276_v0, %v2371_v42  ;;  %v2377_v54 = vand.u32 2147483647, %v4253_v48  ;;  %v2365_v61 = vor.u32 1.1754944e-38, %v2364_v3  ;;  %v2361_v56 = vsel %vm4308_vm11, %v4282_v27, %v2357_v45 }
 0x421   :  { %v2020_v35 = vmul.f32 %v4176_v41, %v1428_v6  ;;  %v1713_v12 = vadd.f32 %v1712_v47, %v1428_v6  ;;  %v2202_v18 = vrot.slane %v2201_v14, 2  ;;  %v1739_v41 = vadd.f32 %v1738_v36, %v1737_v50 }
 0x422   :  { %vm2363_vm13 = vcmp.eq.f32.partialorder %v2362_v23, 8.507059e+37  ;;  %v2380_v21 = vor.u32 1.1754944e-38, %v2379_v38  ;;  %v2376_v53 = vsel %vm4316_vm0, %v4276_v0, %v2372_v10  ;;  %vm2378_vm1 = vcmp.eq.f32.partialorder %v2377_v54, 8.507059e+37 }
 0x423   :  { %v2177_v1 = vadd.f32 %v2176_v20, %v2020_v35  ;;  %v1740_v30 = vrot.slane %v1739_v41, 1  ;;  %v2203_v25 = vadd.f32 %v2202_v18, %v2201_v14  ;;  %vm2261_vm2 = vcmp.eq.f32.partialorder %v4260_v7, 0.0 }
 0x424   :  { %v2366_v8 = vsel %vm2363_vm13, %v2365_v61, %v2361_v56  ;;  %v2381_v49 = vsel %vm2378_vm1, %v2380_v21, %v2376_v53  ;;  %vm2250_vm3 = vcmask 1047559   ;;  %v4610_v6 = vmov 0.0  }
 0x425   :  { %v1741_v16 = vadd.f32 %v1740_v30, %v1739_v41  ;;  %v2204_v17 = vrot.slane %v2203_v25, 1  ;;  %v2389_v55 = vsel %vm2261_vm2, 0.0, %v2366_v8  ;;  %v2390_v43 = vsel %vm2262_vm8, 0.0, %v2381_v49 }
 0x427   :  { %vm2213_vm12 = vcmp.gt.f32.partialorder %v1741_v16, 0.0  ;;  %v2205_v28 = vadd.f32 %v2204_v17, %v2203_v25 }
 0x428   :  { %v2462_v52 = vsel %vm2213_vm12, 1.0, %v4610_v6 }
 0x429   :  { %v2415_v48 = vmul.f32 %v2390_v43, %v2205_v28 }
 0x42b   :  { %v745_v29 = vpop.permute.xlu1 %744 }
 0x42c   :  { %v978_v19 = vmul.f32 %v3983_v58, %v745_v29  ;;  %v4612_v29 = vld [vmem:[#allocation17_spill] sm:$0xff] }
 0x42e   :  { %v1173_v63 = vsel %vm4601_vm5, 0.0, %v978_v19 }
 0x42f   :  { %v1429_v13 = vmul.f32 %v1301_v26, %v1173_v63 }
 0x431   :  { %v1714_v58 = vadd.f32 %v1713_v12, %v1429_v13  ;;  %v2021_v40 = vmul.f32 %v4605_v44, %v1429_v13 }
 0x433   :  { %v1715_v33 = vrot.slane %v1714_v58, 4  ;;  %v2178_v32 = vadd.f32 %v2177_v1, %v2021_v40 }
 0x435   :  { %v1716_v31 = vadd.f32 %v1715_v33, %v1714_v58  ;;  %v2179_v62 = vrot.slane %v2178_v32, 4 }
 0x437   :  { %v1717_v11 = vrot.slane %v1716_v31, 2  ;;  %v2180_v9 = vadd.f32 %v2179_v62, %v2178_v32 }
 0x439   :  { %v2181_v5 = vrot.slane %v2180_v9, 2  ;;  %v1718_v22 = vadd.f32 %v1717_v11, %v1716_v31 }
 0x43b   :  { %v2182_v24 = vadd.f32 %v2181_v5, %v2180_v9  ;;  %v1719_v4 = vrot.slane %v1718_v22, 1 }
 0x43d   :  { %v1720_v27 = vadd.f32 %v1719_v4, %v1718_v22  ;;  %v2183_v57 = vrot.slane %v2182_v24, 1 }
 0x43f   :  { %vm2212_vm15 = vcmp.gt.f32.partialorder %v1720_v27, 0.0  ;;  %v2184_v0 = vadd.f32 %v2183_v57, %v2182_v24 }
 0x440   :  { %v2461_v50 = vsel %vm2212_vm15, 1.0, %v4610_v6 }
 0x441   :  { %v2249_v7 = vsel %vm2248_vm14, %v2461_v50, %v4611_v34  ;;  %v2414_v37 = vmul.f32 %v2389_v55, %v2184_v0 }
 0x442   :  { %v2251_v59 = vsel %vm2250_vm3, %v2462_v52, %v2249_v7 }
 0x443   :  { %2253 = vadd.xlane.f32.xlu0 %v2251_v59  ;;  %v2429_v26 = vsel %vm2248_vm14, %v2414_v37, %v4612_v29 }
 0x444   :  { %v2430_v19 = vsel %vm2250_vm3, %v2415_v48, %v2429_v26 }
 0x445   :  { %2432 = vadd.xlane.f32.xlu1 %v2430_v19 }
 0x4b6   :  { %v2254_v2 = vpop.xlane.xlu0 %2253 }
 0x4b7   :  { %2608 = vrcp.f32 %v2254_v2  ;;  %v2403_v35 = vand.u32 2147483648, %v2254_v2  ;;  %v2401_v63 = vand.u32 2147483647, %v2254_v2  ;;  %vm2397_vm5 = vweird.f32 %v2254_v2 }
 0x4b8   :  { %vm2391_vm9 = vcmp.eq.f32.partialorder %v2254_v2, 0.0  ;;  %v2433_v60 = vpop.xlane.xlu1 %2432 }
 0x4b9   :  { %v2404_v20 = vor.u32 1.1754944e-38, %v2403_v35  ;;  %vm2402_vm7 = vcmp.eq.f32.partialorder %v2401_v63, 8.507059e+37 }
 0x4bd   :  { %v2609_v46 = vpop.eup %2608 }
 0x4be   :  { %v2393_v47 = vmul.f32 %v2609_v46, %v2254_v2  ;;  %vm2398_vm4 = vweird.f32 %v2609_v46 }
 0x4bf   :  { %vm2399_vm6 = vmor %vm2397_vm5, %vm2398_vm4 }
 0x4c0   :  { %v2394_v51 = vsub.f32 1.0, %v2393_v47 }
 0x4c2   :  { %v2395_v14 = vmul.f32 %v2609_v46, %v2394_v51 }
 0x4c4   :  { %v2396_v36 = vadd.f32 %v2609_v46, %v2395_v14 }
 0x4c6   :  { %v2400_v12 = vsel %vm2399_vm6, %v2609_v46, %v2396_v36 }
 0x4c7   :  { %v2405_v13 = vsel %vm2402_vm7, %v2404_v20, %v2400_v12 }
 0x4c8   :  { %v2407_v42 = vsel %vm2391_vm9, 0.0, %v2405_v13 }
 0x4c9   :  { %v2434_v1 = vmul.f32 %v2433_v60, %v2407_v42 }
 0x4cb   :  { %2435 = vst [vmem:[#allocation8] sm:$0xff] %v2434_v1 }
 0x4cc   :  { %2446 = dma.vmem_to_hbm [thread:$0]  %s2442_s2, 128, %s2444_s30, [#allocation4]  }
 0x4cd   :  { %2712 = dma.done.wait [#allocation4], 128  }
 0x4ce   :  { %2713 = vsyncadd [#allocation4], 4294967168 }
 0x4cf   :  { %2451 = vsyncpa [#allocation3], 1 }
 0x4d0   :  { %2452 = vsyncpa [#allocation6], 1 }
 0x4d1   :  { %2453 = vsyncpa [#allocation4], 1 }

</bundles_post_ra>
